<compile_context>
chip_gen: v5e
topology: v5e:2x2
jax: 0.10.0
libtpu: 0.0.40
codegen_flags: <defaults>
</compile_context>

<pallas_src>
import functools

import jax
import jax.numpy as jnp
from jax.experimental import pallas as pl
from jax.experimental.pallas import tpu as pltpu


# -----------------------------------------------------------------------------
# Pallas kernels
# -----------------------------------------------------------------------------
def chunk_blocks_kernel(x_ref, cos_ref, sin_ref,
                        ln1_ref, wqkv_ref, wo_ref,
                        ln2_ref, wgu_ref, wd_ref, finalw_ref,
                        o_ref, x_scratch, mask_scratch,
                        *, num_heads, head_dim, eps, fold_final_norm):
    """All decoder blocks of the chunk, fused.

    grid = (num_blocks, batch): layer axis outermost, batch innermost, so the
    per-layer weights (index_map constant over b) are streamed exactly once
    while every batch element's residual lives in `x_scratch` (f32 VMEM).

    Per grid step ref shapes:
      x_ref      : (1, S, H)      input hidden states
      cos/sin    : (S, d)         RoPE tables (per head-dim, not tiled)
      ln1_ref    : (1, 1, H)      input RMSNorm weight (layer l)
      wqkv_ref   : (1, H, 3H)     fused Q|K|V projection (layer l)
      wo_ref     : (1, H, H)      attention output projection (layer l)
      ln2_ref    : (1, 1, H)      post-attention RMSNorm weight (layer l)
      wgu_ref    : (1, H, 2I)     fused gate|up projection (layer l)
      wd_ref     : (1, I, H)      down projection (layer l)
      finalw_ref : (1, H)         final RMSNorm weight (used iff fold_final_norm)
      o_ref      : (1, S, H)      chunk output (valid data written at last layer)
      x_scratch  : (B, S, H) f32  residual carry
      mask_scratch: (S, S) f32    causal additive mask (built once)
    """
    l = pl.program_id(0)
    b = pl.program_id(1)
    n_layers = pl.num_programs(0)

    _, S, H = x_ref.shape
    nH, d = num_heads, head_dim
    I = wd_ref.shape[1]
    wdt = wqkv_ref.dtype                      # compute dtype fed to the MXU

    @pl.when(l == 0)
    def _():
        x_scratch[b] = x_ref[0].astype(jnp.float32)
        row = jax.lax.broadcasted_iota(jnp.int32, (S, S), 0)
        col = jax.lax.broadcasted_iota(jnp.int32, (S, S), 1)
        mask_scratch[...] = jnp.where(row >= col, jnp.float32(0.0),
                                      jnp.float32(-1e9))

    x = x_scratch[b]                          # (S, H) f32

    cos = cos_ref[...].astype(jnp.float32)    # (S, d)
    sin = sin_ref[...].astype(jnp.float32)

    def rms_norm(v, w):
        var = jnp.mean(v * v, axis=-1, keepdims=True)
        return v * jax.lax.rsqrt(var + eps) * w

    def rope(t):                              # t: (nH, S, d) f32
        rot = jnp.concatenate([-t[..., d // 2:], t[..., :d // 2]], axis=-1)
        return t * cos[None] + rot * sin[None]

    # ---- self attention (all heads vectorized) ------------------------------
    h = rms_norm(x, ln1_ref[0].astype(jnp.float32)).astype(wdt)
    qkv = jnp.dot(h, wqkv_ref[0], preferred_element_type=jnp.float32)   # (S, 3H)
    q, k, v = qkv[:, :H], qkv[:, H:2 * H], qkv[:, 2 * H:]

    # Head split: (S, H) -> (nH, S, d).
    # TODO(synk): pltpu.einshape could avoid the swapaxes relayout copies.
    qh = jnp.swapaxes(q.reshape(S, nH, d), 0, 1)
    kh = jnp.swapaxes(k.reshape(S, nH, d), 0, 1)
    vh = jnp.swapaxes(v.reshape(S, nH, d), 0, 1)

    scale = jnp.float32(1.0 / (d ** 0.5))
    qh = (rope(qh) * scale).astype(wdt)       # fold 1/sqrt(d) into q (O(S*H))
    kh = rope(kh).astype(wdt)
    vh = vh.astype(wdt)

    # TODO(synk): flash/online-softmax tiling over K for long sequences so the
    # (nH, S, S) score/prob tensors are never materialized (required on v7x).
    s = jnp.einsum("hqd,hkd->hqk", qh, kh,
                   preferred_element_type=jnp.float32)    # (nH, S, S)
    s = s + mask_scratch[...][None]
    m = jnp.max(s, axis=-1, keepdims=True)
    p = jnp.exp(s - m)
    denom = jnp.sum(p, axis=-1, keepdims=True)            # (nH, S, 1)
    o = jnp.einsum("hqk,hkd->hqd", p.astype(wdt), vh,
                   preferred_element_type=jnp.float32)    # (nH, S, d)
    o = o * (1.0 / denom)                                  # exact, post-PV

    attn = jnp.swapaxes(o, 0, 1).reshape(S, H).astype(wdt)
    attn = jnp.dot(attn, wo_ref[0], preferred_element_type=jnp.float32)
    x = x + attn

    # ---- SwiGLU MLP ----------------------------------------------------------
    h2 = rms_norm(x, ln2_ref[0].astype(jnp.float32)).astype(wdt)
    gu = jnp.dot(h2, wgu_ref[0], preferred_element_type=jnp.float32)    # (S, 2I)
    g, u = gu[:, :I], gu[:, I:]
    mlp_in = ((g * jax.nn.sigmoid(g)) * u).astype(wdt)
    mlp = jnp.dot(mlp_in, wd_ref[0], preferred_element_type=jnp.float32)
    x = x + mlp

    x_scratch[b] = x

    @pl.when(l == n_layers - 1)
    def _():
        if fold_final_norm:
            y = rms_norm(x, finalw_ref[...].astype(jnp.float32))
        else:
            y = x
        o_ref[0] = y.astype(o_ref.dtype)


def tail_kernel(x_ref, lmhead_ref, o_ref):
    """Pure lm_head matmul on one vocab tile (final RMSNorm already folded
    into the blocks kernel epilogue).

      x_ref      : (1, S, H)   already-normalized hidden states
      lmhead_ref : (H, tv)     vocab tile of the lm_head
      o_ref      : (1, S, tv)
    """
    h = x_ref[0].astype(lmhead_ref.dtype)
    o_ref[0] = jnp.dot(h, lmhead_ref[...],
                       preferred_element_type=jnp.float32).astype(o_ref.dtype)


# -----------------------------------------------------------------------------
# Config + concrete model chunk (JAX/Pallas analogue of BaseModelChunk)
# -----------------------------------------------------------------------------
class Config:
    def __init__(self, hidden_size=128, num_attention_heads=4,
                 intermediate_size=256, vocab_size=256, norm_eps=1e-5,
                 max_position_embeddings=16, rope_theta=10000.0):
        assert hidden_size % num_attention_heads == 0
        self.hidden_size = hidden_size
        self.num_attention_heads = num_attention_heads
        self.head_dim = hidden_size // num_attention_heads
        self.intermediate_size = intermediate_size
        self.vocab_size = vocab_size
        self.norm_eps = norm_eps
        self.max_position_embeddings = max_position_embeddings
        self.rope_theta = rope_theta


class ModelChunkPallas:
    """Concrete Pallas realization of `BaseModelChunk`."""

    def __init__(self, config, num_blocks, chunk_idx, dtype=jnp.float32,
                 include_tail=False, return_attn=False, jit_trace=False):
        self.dtype = dtype
        self.config = config
        self.num_blocks = num_blocks
        self.chunk_idx = chunk_idx
        self.include_tail = include_tail
        self.return_attn = return_attn   # TODO(synk): per-head attention-prob outputs not implemented.
        self.jit_trace = jit_trace
        self.device_list = []
        self._init_weights()

    # -- deterministic synthetic weights (no checkpoint load) ------------------
    def _init_weights(self):
        cfg = self.config
        H, I, V = cfg.hidden_size, cfg.intermediate_size, cfg.vocab_size
        L = self.num_blocks
        key = jax.random.PRNGKey(1234 + self.chunk_idx)

        def w(k, shape):
            return 0.05 * jax.random.normal(k, shape, jnp.float32)

        keys = jax.random.split(key, 7 * max(L, 1) + 2)
        wq = jnp.stack([w(keys[7 * i + 0], (H, H)) for i in range(L)]) if L else jnp.zeros((0, H, H))
        wk = jnp.stack([w(keys[7 * i + 1], (H, H)) for i in range(L)]) if L else jnp.zeros((0, H, H))
        wv = jnp.stack([w(keys[7 * i + 2], (H, H)) for i in range(L)]) if L else jnp.zeros((0, H, H))
        wo = jnp.stack([w(keys[7 * i + 3], (H, H)) for i in range(L)]) if L else jnp.zeros((0, H, H))
        wg = jnp.stack([w(keys[7 * i + 4], (H, I)) for i in range(L)]) if L else jnp.zeros((0, H, I))
        wu = jnp.stack([w(keys[7 * i + 5], (H, I)) for i in range(L)]) if L else jnp.zeros((0, H, I))
        wd = jnp.stack([w(keys[7 * i + 6], (I, H)) for i in range(L)]) if L else jnp.zeros((0, I, H))

        dt = self.dtype
        self.ln1 = jnp.ones((L, 1, H), dt)
        self.ln2 = jnp.ones((L, 1, H), dt)
        # Individual weights kept for the pure-JAX reference.
        self.wq, self.wk, self.wv = wq.astype(dt), wk.astype(dt), wv.astype(dt)
        self.wo = wo.astype(dt)
        self.wg, self.wu, self.wd = wg.astype(dt), wu.astype(dt), wd.astype(dt)
        # Fused weights streamed by the kernel.
        self.wqkv = jnp.concatenate([wq, wk, wv], axis=-1).astype(dt)   # (L, H, 3H)
        self.wgu = jnp.concatenate([wg, wu], axis=-1).astype(dt)        # (L, H, 2I)

        self.final_norm = jnp.ones((1, H), dt)
        if self.include_tail:
            k1, _ = jax.random.split(keys[-1])
            self.lm_head = (0.05 * jax.random.normal(k1, (H, V), jnp.float32)).astype(dt)

    def load_weights(self, state_dict, state_dict_start_idx, verbose=False):
        # TODO(synk): map a real checkpoint's tensors onto the fused/stacked weights; synthetic weights only.
        return state_dict_start_idx

    def get_example_inputs(self, num_token=16, cache_size=16, get_dym_shape=False):
        cfg = self.config
        B = 2
        hidden = jax.random.normal(jax.random.PRNGKey(0),
                                   (B, num_token, cfg.hidden_size), self.dtype)
        cos, sin = self._rope(num_token)     # (S, head_dim)
        # TODO(synk): KV-cache example inputs (cache_size) omitted; chunk runs prefill-style
        # with an in-kernel causal mask.
        return hidden, cos, sin

    # -- helpers ----------------------------------------------------------------
    def _rope(self, S):
        d = self.config.head_dim
        inv_freq = 1.0 / (self.config.rope_theta **
                          (jnp.arange(0, d, 2, dtype=jnp.float32) / d))
        pos = jnp.arange(S, dtype=jnp.float32)
        freqs = pos[:, None] * inv_freq[None, :]          # (S, d/2)
        emb = jnp.concatenate([freqs, freqs], axis=-1)    # (S, d)
        return jnp.cos(emb).astype(self.dtype), jnp.sin(emb).astype(self.dtype)

    @staticmethod
    def _vmem_cap():
        try:
            info = pltpu.get_tpu_info()
            cap = int(getattr(info, "vmem_capacity_bytes", 0))
            if cap > 0:
                return cap
        except Exception:
            pass
        return 64 << 20   # conservative fallback (v7x-sized)

    def _block_vmem_limit(self, B, S):
        cfg = self.config
        H, I = cfg.hidden_size, cfg.intermediate_size
        nH, d = cfg.num_attention_heads, cfg.head_dim
        bpe = jnp.dtype(self.dtype).itemsize
        # Double-buffered streamed per-layer weights + I/O blocks + scratch
        # + f32 intermediates (qkv/heads/scores/mlp) + headroom.
        w_bytes = (4 * H * H + 3 * H * I + 3 * H) * bpe
        io_bytes = (2 * S * H + 2 * S * d) * bpe
        scratch = (B * S * H + S * S) * 4
        inter = (12 * S * H + 2 * S * I + 3 * nH * S * S) * 4
        est = 2 * (w_bytes + io_bytes) + scratch + inter + (4 << 20)
        cap = self._vmem_cap()
        # TODO(synk): for real (H, I) sizes, tile the output-feature axis of the
        # projections instead of relying on whole-layer residency (v7x 64 MiB).
        return int(min(max(est, 32 << 20), (cap * 85) // 100))

    # -- pallas_call wrappers ----------------------------------------------------
    def _run_blocks(self, x, cos, sin):
        cfg = self.config
        B, S, H = x.shape
        I = cfg.intermediate_size
        d = cfg.head_dim
        L = self.num_blocks
        if L == 0:
            return x

        kernel = functools.partial(chunk_blocks_kernel,
                                   num_heads=cfg.num_attention_heads,
                                   head_dim=d, eps=cfg.norm_eps,
                                   fold_final_norm=self.include_tail)
        # layer axis outermost / batch innermost: weight block index constant
        # over b, so each layer's weights are streamed exactly once.
        x_map = lambda l, b: (b, 0, 0)
        w_map = lambda l, b: (l, 0, 0)
        c_map = lambda l, b: (0, 0)

        return pl.pallas_call(
            kernel,
            out_shape=jax.ShapeDtypeStruct((B, S, H), self.dtype),
            grid=(L, B),
            in_specs=[
                pl.BlockSpec((1, S, H), x_map),       # x
                pl.BlockSpec((S, d), c_map),          # cos
                pl.BlockSpec((S, d), c_map),          # sin
                pl.BlockSpec((1, 1, H), w_map),       # ln1
                pl.BlockSpec((1, H, 3 * H), w_map),   # fused wqkv
                pl.BlockSpec((1, H, H), w_map),       # wo
                pl.BlockSpec((1, 1, H), w_map),       # ln2
                pl.BlockSpec((1, H, 2 * I), w_map),   # fused wg|wu
                pl.BlockSpec((1, I, H), w_map),       # wd
                pl.BlockSpec((1, H), c_map),          # final norm weight
            ],
            out_specs=pl.BlockSpec((1, S, H), x_map),
            scratch_shapes=[pltpu.VMEM((B, S, H), jnp.float32),
                            pltpu.VMEM((S, S), jnp.float32)],
            compiler_params=pltpu.CompilerParams(
                dimension_semantics=("arbitrary", "arbitrary"),
                vmem_limit_bytes=self._block_vmem_limit(B, S)),
        )(x, cos, sin,
          self.ln1, self.wqkv, self.wo, self.ln2, self.wgu, self.wd,
          self.final_norm)

    def _run_tail(self, x):
        cfg = self.config
        B, S, H = x.shape
        V = cfg.vocab_size
        cap = self._vmem_cap()
        tv_max = 2048 if cap >= (96 << 20) else 1024     # smaller tile on v7x
        tv = V if V <= tv_max else tv_max
        assert V % tv == 0
        bpe = jnp.dtype(self.dtype).itemsize
        est = 2 * (H * tv * bpe) + (2 * S * H + 2 * S * tv) * 4 + (4 << 20)
        # vocab-tile axis outermost / batch innermost: lm_head tile is resident
        # across the batch, streamed once per tile.
        return pl.pallas_call(
            tail_kernel,
            out_shape=jax.ShapeDtypeStruct((B, S, V), self.dtype),
            grid=(V // tv, B),
            in_specs=[
                pl.BlockSpec((1, S, H), lambda vt, b: (b, 0, 0)),
                pl.BlockSpec((H, tv), lambda vt, b: (0, vt)),
            ],
            out_specs=pl.BlockSpec((1, S, tv), lambda vt, b: (b, 0, vt)),
            compiler_params=pltpu.CompilerParams(
                dimension_semantics=("arbitrary", "arbitrary"),
                vmem_limit_bytes=int(min(max(est, 32 << 20), (cap * 85) // 100))),
        )(x, self.lm_head)

    # -- forward ------------------------------------------------------------------
    def forward(self, hidden_states, cos, sin):
        x = self._run_blocks(hidden_states,
                             cos.astype(self.dtype), sin.astype(self.dtype))
        if self.include_tail:
            if self.num_blocks == 0:
                # Degenerate chunk: final norm not folded (no block epilogue).
                eps = self.config.norm_eps
                xf = x.astype(jnp.float32)
                x = (xf * jax.lax.rsqrt(jnp.mean(xf * xf, -1, keepdims=True) + eps)
                     * self.final_norm.astype(jnp.float32)).astype(self.dtype)
            return self._run_tail(x)
        return x

    __call__ = forward


# -----------------------------------------------------------------------------
# Pure-JAX reference (mirrors the kernel math) for a correctness check
# -----------------------------------------------------------------------------
def _reference_forward(model, x, cos, sin):
    cfg = model.config
    nH, d, eps = cfg.num_attention_heads, cfg.head_dim, cfg.norm_eps
    x = x.astype(jnp.float32)
    cos = cos.astype(jnp.float32)
    sin = sin.astype(jnp.float32)

    def rms(v, w):
        return v * jax.lax.rsqrt(jnp.mean(v * v, -1, keepdims=True) + eps) * w

    def rot_half(v):
        return jnp.concatenate([-v[..., d // 2:], v[..., :d // 2]], -1)

    B, S, _ = x.shape
    mask = jnp.where(jnp.arange(S)[:, None] >= jnp.arange(S)[None, :], 0.0, -1e9)

    for l in range(model.num_blocks):
        h = rms(x, model.ln1[l].astype(jnp.float32))
        q = h @ model.wq[l].astype(jnp.float32)
        k = h @ model.wk[l].astype(jnp.float32)
        v = h @ model.wv[l].astype(jnp.float32)
        attn = jnp.zeros_like(x)
        for hd in range(nH):
            sl = slice(hd * d, (hd + 1) * d)
            qh, kh, vh = q[..., sl], k[..., sl], v[..., sl]
            qh = qh * cos + rot_half(qh) * sin
            kh = kh * cos + rot_half(kh) * sin
            s = jnp.einsum("bqd,bkd->bqk", qh, kh) / (d ** 0.5) + mask
            p = jax.nn.softmax(s, axis=-1)
            oh = jnp.einsum("bqk,bkd->bqd", p, vh)
            attn = attn + oh @ model.wo[l].astype(jnp.float32)[sl, :]
        x = x + attn
        h2 = rms(x, model.ln2[l].astype(jnp.float32))
        g = h2 @ model.wg[l].astype(jnp.float32)
        u = h2 @ model.wu[l].astype(jnp.float32)
        x = x + ((g * jax.nn.sigmoid(g)) * u) @ model.wd[l].astype(jnp.float32)
    if model.include_tail:
        out = rms(x, model.final_norm.astype(jnp.float32)) @ model.lm_head.astype(jnp.float32)
        return out.astype(model.dtype)
    return x.astype(model.dtype)


if __name__ == "__main__":
    # Small but lane-filling shapes: hidden/intermediate are multiples of 128.
    cfg = Config(hidden_size=128, num_attention_heads=4, intermediate_size=256,
                 vocab_size=256, max_position_embeddings=16)
    model = ModelChunkPallas(cfg, num_blocks=2, chunk_idx=0,
                             dtype=jnp.float32, include_tail=True)

    hidden, cos, sin = model.get_example_inputs(num_token=16)

    out = model(hidden, cos, sin)
    out = jax.block_until_ready(out)

    ref = _reference_forward(model, hidden, cos, sin)
    assert out.shape == (2, 16, cfg.vocab_size), out.shape
    assert bool(jnp.all(jnp.isfinite(out)))
    max_err = float(jnp.max(jnp.abs(out.astype(jnp.float32) - ref.astype(jnp.float32))))
    assert jnp.allclose(out.astype(jnp.float32), ref.astype(jnp.float32),
                        atol=2e-3, rtol=2e-3), max_err

    print("KERNEL_OK")
</pallas_src>

<mosaic_0001>
module attributes {stable_mosaic.version = 11 : i64} {
  func.func @chunk_blocks_kernel(%arg0: i32, %arg1: i32, %arg2: memref<1x16x128xf32, #tpu.memory_space<vmem>>, %arg3: memref<16x32xf32, #tpu.memory_space<vmem>>, %arg4: memref<16x32xf32, #tpu.memory_space<vmem>>, %arg5: memref<1x1x128xf32, #tpu.memory_space<vmem>>, %arg6: memref<1x128x384xf32, #tpu.memory_space<vmem>>, %arg7: memref<1x128x128xf32, #tpu.memory_space<vmem>>, %arg8: memref<1x1x128xf32, #tpu.memory_space<vmem>>, %arg9: memref<1x128x512xf32, #tpu.memory_space<vmem>>, %arg10: memref<1x256x128xf32, #tpu.memory_space<vmem>>, %arg11: memref<1x128xf32, #tpu.memory_space<vmem>>, %arg12: memref<1x16x128xf32, #tpu.memory_space<vmem>>, %arg13: memref<2x16x128xf32, #tpu.memory_space<vmem>>, %arg14: memref<16x16xf32, #tpu.memory_space<vmem>>) attributes {dimension_semantics = [#tpu.dimension_semantics<arbitrary>, #tpu.dimension_semantics<arbitrary>], iteration_bounds = array<i64: 2, 2>, scalar_prefetch = 0 : i64, scratch_operands = 2 : i64, tpu.core_type = #tpu.core_type<tc>, window_params = [{transform_indices = @transform_0, window_bounds = array<i64: 1, 16, 128>}, {pipeline_mode = #tpu.pipeline_mode<synchronous>, transform_indices = @transform_1, window_bounds = array<i64: 16, 32>}, {pipeline_mode = #tpu.pipeline_mode<synchronous>, transform_indices = @transform_2, window_bounds = array<i64: 16, 32>}, {transform_indices = @transform_3, window_bounds = array<i64: 1, 1, 128>}, {transform_indices = @transform_4, window_bounds = array<i64: 1, 128, 384>}, {transform_indices = @transform_5, window_bounds = array<i64: 1, 128, 128>}, {transform_indices = @transform_6, window_bounds = array<i64: 1, 1, 128>}, {transform_indices = @transform_7, window_bounds = array<i64: 1, 128, 512>}, {transform_indices = @transform_8, window_bounds = array<i64: 1, 256, 128>}, {pipeline_mode = #tpu.pipeline_mode<synchronous>, transform_indices = @transform_9, window_bounds = array<i64: 1, 128>}, {transform_indices = @transform_10, window_bounds = array<i64: 1, 16, 128>}]} {
    %c0_i32 = arith.constant 0 : i32
    %0 = arith.cmpi eq, %arg0, %c0_i32 : i32
    %1 = arith.extui %0 : i1 to i32
    %c0_i32_0 = arith.constant 0 : i32
    %2 = arith.cmpi ne, %1, %c0_i32_0 : i32
    scf.if %2 {
      %c0_47 = arith.constant 0 : index
      %c0_48 = arith.constant 0 : index
      %c0_49 = arith.constant 0 : index
      %120 = vector.load %arg2[%c0_47, %c0_48, %c0_49] : memref<1x16x128xf32, #tpu.memory_space<vmem>>, vector<1x16x128xf32>
      %121 = vector.shape_cast %120 : vector<1x16x128xf32> to vector<16x128xf32>
      %122 = arith.index_cast %arg1 : i32 to index
      %c0_50 = arith.constant 0 : index
      %c0_51 = arith.constant 0 : index
      %123 = vector.load %arg13[%122, %c0_50, %c0_51] : memref<2x16x128xf32, #tpu.memory_space<vmem>>, vector<1x16x128xf32>
      %124 = vector.shape_cast %123 : vector<1x16x128xf32> to vector<16x128xf32>
      %125 = vector.shape_cast %121 : vector<16x128xf32> to vector<1x16x128xf32>
      tpu.vector_store %arg13[%122, %c0_50, %c0_51], %125 {strides = array<i32>} : memref<2x16x128xf32, #tpu.memory_space<vmem>>, vector<1x16x128xf32>,
      %126 = tpu.iota {dimensions = array<i32: 0>} : vector<16x16xi32>
      %127 = tpu.iota {dimensions = array<i32: 1>} : vector<16x16xi32>
      %128 = arith.cmpi sge, %126, %127 : vector<16x16xi32>
      %cst_52 = arith.constant 0.000000e+00 : f32
      %cst_53 = arith.constant -1.000000e+09 : f32
      %129 = vector.broadcast %cst_52 : f32 to vector<16x16xf32>
      %130 = vector.broadcast %cst_53 : f32 to vector<16x16xf32>
      %131 = arith.select %128, %129, %130 : vector<16x16xi1>, vector<16x16xf32>
      %c0_54 = arith.constant 0 : index
      %c0_55 = arith.constant 0 : index
      %132 = vector.load %arg14[%c0_54, %c0_55] : memref<16x16xf32, #tpu.memory_space<vmem>>, vector<16x16xf32>
      tpu.vector_store %arg14[%c0_54, %c0_55], %131 {strides = array<i32>} : memref<16x16xf32, #tpu.memory_space<vmem>>, vector<16x16xf32>,
    } else {
    }
    %3 = arith.index_cast %arg1 : i32 to index
    %c0 = arith.constant 0 : index
    %c0_1 = arith.constant 0 : index
    %4 = vector.load %arg13[%3, %c0, %c0_1] : memref<2x16x128xf32, #tpu.memory_space<vmem>>, vector<1x16x128xf32>
    %5 = vector.shape_cast %4 : vector<1x16x128xf32> to vector<16x128xf32>
    %c0_2 = arith.constant 0 : index
    %c0_3 = arith.constant 0 : index
    %6 = vector.load %arg3[%c0_2, %c0_3] : memref<16x32xf32, #tpu.memory_space<vmem>>, vector<16x32xf32>
    %c0_4 = arith.constant 0 : index
    %c0_5 = arith.constant 0 : index
    %7 = vector.load %arg4[%c0_4, %c0_5] : memref<16x32xf32, #tpu.memory_space<vmem>>, vector<16x32xf32>
    %c0_6 = arith.constant 0 : index
    %c0_7 = arith.constant 0 : index
    %c0_8 = arith.constant 0 : index
    %8 = vector.load %arg5[%c0_6, %c0_7, %c0_8] : memref<1x1x128xf32, #tpu.memory_space<vmem>>, vector<1x1x128xf32>
    %9 = vector.shape_cast %8 : vector<1x1x128xf32> to vector<1x128xf32>
    %10 = arith.mulf %5, %5 : vector<16x128xf32>
    %cst = arith.constant dense<0.000000e+00> : vector<16xf32>
    %11 = vector.multi_reduction <add>, %10, %cst [1] : vector<16x128xf32> to vector<16xf32>
    %12 = vector.shape_cast %11 : vector<16xf32> to vector<16x1xf32>
    %cst_9 = arith.constant 1.280000e+02 : f32
    %13 = vector.broadcast %cst_9 : f32 to vector<16x1xf32>
    %14 = arith.divf %12, %13 : vector<16x1xf32>
    %cst_10 = arith.constant 9.99999974E-6 : f32
    %15 = vector.broadcast %cst_10 : f32 to vector<16x1xf32>
    %16 = arith.addf %14, %15 : vector<16x1xf32>
    %17 = math.rsqrt %16 : vector<16x1xf32>
    %18 = vector.broadcast %17 : vector<16x1xf32> to vector<16x128xf32>
    %19 = arith.mulf %5, %18 : vector<16x128xf32>
    %20 = vector.broadcast %9 : vector<1x128xf32> to vector<16x128xf32>
    %21 = arith.mulf %19, %20 : vector<16x128xf32>
    %c0_11 = arith.constant 0 : index
    %c0_12 = arith.constant 0 : index
    %c0_13 = arith.constant 0 : index
    %22 = vector.load %arg6[%c0_11, %c0_12, %c0_13] : memref<1x128x384xf32, #tpu.memory_space<vmem>>, vector<1x128x384xf32>
    %23 = vector.shape_cast %22 : vector<1x128x384xf32> to vector<128x384xf32>
    %cst_14 = arith.constant dense<0.000000e+00> : vector<16x384xf32>
    %24 = tpu.matmul %21, %23, %cst_14 {dimension_numbers = #tpu.dot_dimension_numbers<[1], [0], [0], [1], [0, 0, 1, 1], [], []>} : vector<16x128xf32>, vector<128x384xf32>, vector<16x384xf32> -> vector<16x384xf32>
    %25 = vector.extract_strided_slice %24 {offsets = [0, 0], sizes = [16, 128], strides = [1, 1]} : vector<16x384xf32> to vector<16x128xf32>
    %26 = vector.extract_strided_slice %24 {offsets = [0, 128], sizes = [16, 128], strides = [1, 1]} : vector<16x384xf32> to vector<16x128xf32>
    %27 = vector.extract_strided_slice %24 {offsets = [0, 256], sizes = [16, 128], strides = [1, 1]} : vector<16x384xf32> to vector<16x128xf32>
    %28 = vector.shape_cast %25 : vector<16x128xf32> to vector<16x4x32xf32>
    %29 = tpu.transpose %28, [1, 0, 2] : vector<16x4x32xf32> -> vector<4x16x32xf32>
    %30 = vector.shape_cast %26 : vector<16x128xf32> to vector<16x4x32xf32>
    %31 = tpu.transpose %30, [1, 0, 2] : vector<16x4x32xf32> -> vector<4x16x32xf32>
    %32 = vector.shape_cast %27 : vector<16x128xf32> to vector<16x4x32xf32>
    %33 = tpu.transpose %32, [1, 0, 2] : vector<16x4x32xf32> -> vector<4x16x32xf32>
    %34 = vector.extract_strided_slice %29 {offsets = [0, 0, 16], sizes = [4, 16, 16], strides = [1, 1, 1]} : vector<4x16x32xf32> to vector<4x16x16xf32>
    %cst_15 = arith.constant 0.000000e+00 : f32
    %35 = vector.broadcast %cst_15 : f32 to vector<4x16x16xf32>
    %36 = arith.subf %35, %34 : vector<4x16x16xf32>
    %37 = vector.extract_strided_slice %29 {offsets = [0, 0, 0], sizes = [4, 16, 16], strides = [1, 1, 1]} : vector<4x16x32xf32> to vector<4x16x16xf32>
    %38 = tpu.concatenate %36, %37 in 2 : vector<4x16x16xf32>, vector<4x16x16xf32> -> vector<4x16x32xf32>
    %39 = vector.shape_cast %6 : vector<16x32xf32> to vector<1x16x32xf32>
    %40 = vector.broadcast %39 : vector<1x16x32xf32> to vector<4x16x32xf32>
    %41 = arith.mulf %29, %40 : vector<4x16x32xf32>
    %42 = vector.shape_cast %7 : vector<16x32xf32> to vector<1x16x32xf32>
    %43 = vector.broadcast %42 : vector<1x16x32xf32> to vector<4x16x32xf32>
    %44 = arith.mulf %38, %43 : vector<4x16x32xf32>
    %45 = arith.addf %41, %44 : vector<4x16x32xf32>
    %cst_16 = arith.constant 0.176776692 : f32
    %46 = vector.broadcast %cst_16 : f32 to vector<4x16x32xf32>
    %47 = arith.mulf %45, %46 : vector<4x16x32xf32>
    %48 = vector.extract_strided_slice %31 {offsets = [0, 0, 16], sizes = [4, 16, 16], strides = [1, 1, 1]} : vector<4x16x32xf32> to vector<4x16x16xf32>
    %cst_17 = arith.constant 0.000000e+00 : f32
    %49 = vector.broadcast %cst_17 : f32 to vector<4x16x16xf32>
    %50 = arith.subf %49, %48 : vector<4x16x16xf32>
    %51 = vector.extract_strided_slice %31 {offsets = [0, 0, 0], sizes = [4, 16, 16], strides = [1, 1, 1]} : vector<4x16x32xf32> to vector<4x16x16xf32>
    %52 = tpu.concatenate %50, %51 in 2 : vector<4x16x16xf32>, vector<4x16x16xf32> -> vector<4x16x32xf32>
    %53 = vector.shape_cast %6 : vector<16x32xf32> to vector<1x16x32xf32>
    %54 = vector.broadcast %53 : vector<1x16x32xf32> to vector<4x16x32xf32>
    %55 = arith.mulf %31, %54 : vector<4x16x32xf32>
    %56 = vector.shape_cast %7 : vector<16x32xf32> to vector<1x16x32xf32>
    %57 = vector.broadcast %56 : vector<1x16x32xf32> to vector<4x16x32xf32>
    %58 = arith.mulf %52, %57 : vector<4x16x32xf32>
    %59 = arith.addf %55, %58 : vector<4x16x32xf32>
    "tpu.trace_start"() <{level = 10 : i32, message = "hqd,hkd->hqk"}> : () -> ()
    %cst_18 = arith.constant dense<0.000000e+00> : vector<4x16x16xf32>
    %60 = tpu.matmul %47, %59, %cst_18 {dimension_numbers = #tpu.dot_dimension_numbers<[2], [2], [1], [1], [0, 0, 0, 1, 1, 1], [0], [0]>} : vector<4x16x32xf32>, vector<4x16x32xf32>, vector<4x16x16xf32> -> vector<4x16x16xf32>
    "tpu.trace_stop"() : () -> ()
    %c0_19 = arith.constant 0 : index
    %c0_20 = arith.constant 0 : index
    %61 = vector.load %arg14[%c0_19, %c0_20] : memref<16x16xf32, #tpu.memory_space<vmem>>, vector<16x16xf32>
    %62 = vector.shape_cast %61 : vector<16x16xf32> to vector<1x16x16xf32>
    %63 = vector.broadcast %62 : vector<1x16x16xf32> to vector<4x16x16xf32>
    %64 = arith.addf %60, %63 : vector<4x16x16xf32>
    %cst_21 = arith.constant dense<0xFF800000> : vector<4x16xf32>
    %65 = vector.multi_reduction <maximumf>, %64, %cst_21 [2] : vector<4x16x16xf32> to vector<4x16xf32>
    %66 = vector.shape_cast %65 : vector<4x16xf32> to vector<4x16x1xf32>
    %67 = vector.broadcast %66 : vector<4x16x1xf32> to vector<4x16x16xf32>
    %68 = arith.subf %64, %67 : vector<4x16x16xf32>
    %69 = math.exp %68 : vector<4x16x16xf32>
    %cst_22 = arith.constant dense<0.000000e+00> : vector<4x16xf32>
    %70 = vector.multi_reduction <add>, %69, %cst_22 [2] : vector<4x16x16xf32> to vector<4x16xf32>
    %71 = vector.shape_cast %70 : vector<4x16xf32> to vector<4x16x1xf32>
    "tpu.trace_start"() <{level = 10 : i32, message = "hqk,hkd->hqd"}> : () -> ()
    %cst_23 = arith.constant dense<0.000000e+00> : vector<4x16x32xf32>
    %72 = tpu.matmul %69, %33, %cst_23 {dimension_numbers = #tpu.dot_dimension_numbers<[2], [1], [1], [2], [0, 0, 0, 1, 1, 2], [0], [0]>} : vector<4x16x16xf32>, vector<4x16x32xf32>, vector<4x16x32xf32> -> vector<4x16x32xf32>
    "tpu.trace_stop"() : () -> ()
    %cst_24 = arith.constant 1.000000e+00 : f32
    %73 = vector.broadcast %cst_24 : f32 to vector<4x16x1xf32>
    %74 = arith.divf %73, %71 : vector<4x16x1xf32>
    %75 = vector.broadcast %74 : vector<4x16x1xf32> to vector<4x16x32xf32>
    %76 = arith.mulf %72, %75 : vector<4x16x32xf32>
    %77 = tpu.transpose %76, [1, 0, 2] : vector<4x16x32xf32> -> vector<16x4x32xf32>
    %78 = vector.shape_cast %77 : vector<16x4x32xf32> to vector<16x128xf32>
    %c0_25 = arith.constant 0 : index
    %c0_26 = arith.constant 0 : index
    %c0_27 = arith.constant 0 : index
    %79 = vector.load %arg7[%c0_25, %c0_26, %c0_27] : memref<1x128x128xf32, #tpu.memory_space<vmem>>, vector<1x128x128xf32>
    %80 = vector.shape_cast %79 : vector<1x128x128xf32> to vector<128x128xf32>
    %cst_28 = arith.constant dense<0.000000e+00> : vector<16x128xf32>
    %81 = tpu.matmul %78, %80, %cst_28 {dimension_numbers = #tpu.dot_dimension_numbers<[1], [0], [0], [1], [0, 0, 1, 1], [], []>} : vector<16x128xf32>, vector<128x128xf32>, vector<16x128xf32> -> vector<16x128xf32>
    %82 = arith.addf %5, %81 : vector<16x128xf32>
    %c0_29 = arith.constant 0 : index
    %c0_30 = arith.constant 0 : index
    %c0_31 = arith.constant 0 : index
    %83 = vector.load %arg8[%c0_29, %c0_30, %c0_31] : memref<1x1x128xf32, #tpu.memory_space<vmem>>, vector<1x1x128xf32>
    %84 = vector.shape_cast %83 : vector<1x1x128xf32> to vector<1x128xf32>
    %85 = arith.mulf %82, %82 : vector<16x128xf32>
    %cst_32 = arith.constant dense<0.000000e+00> : vector<16xf32>
    %86 = vector.multi_reduction <add>, %85, %cst_32 [1] : vector<16x128xf32> to vector<16xf32>
    %87 = vector.shape_cast %86 : vector<16xf32> to vector<16x1xf32>
    %cst_33 = arith.constant 1.280000e+02 : f32
    %88 = vector.broadcast %cst_33 : f32 to vector<16x1xf32>
    %89 = arith.divf %87, %88 : vector<16x1xf32>
    %cst_34 = arith.constant 9.99999974E-6 : f32
    %90 = vector.broadcast %cst_34 : f32 to vector<16x1xf32>
    %91 = arith.addf %89, %90 : vector<16x1xf32>
    %92 = math.rsqrt %91 : vector<16x1xf32>
    %93 = vector.broadcast %92 : vector<16x1xf32> to vector<16x128xf32>
    %94 = arith.mulf %82, %93 : vector<16x128xf32>
    %95 = vector.broadcast %84 : vector<1x128xf32> to vector<16x128xf32>
    %96 = arith.mulf %94, %95 : vector<16x128xf32>
    %c0_35 = arith.constant 0 : index
    %c0_36 = arith.constant 0 : index
    %c0_37 = arith.constant 0 : index
    %97 = vector.load %arg9[%c0_35, %c0_36, %c0_37] : memref<1x128x512xf32, #tpu.memory_space<vmem>>, vector<1x128x512xf32>
    %98 = vector.shape_cast %97 : vector<1x128x512xf32> to vector<128x512xf32>
    %cst_38 = arith.constant dense<0.000000e+00> : vector<16x512xf32>
    %99 = tpu.matmul %96, %98, %cst_38 {dimension_numbers = #tpu.dot_dimension_numbers<[1], [0], [0], [1], [0, 0, 1, 1], [], []>} : vector<16x128xf32>, vector<128x512xf32>, vector<16x512xf32> -> vector<16x512xf32>
    %100 = vector.extract_strided_slice %99 {offsets = [0, 0], sizes = [16, 256], strides = [1, 1]} : vector<16x512xf32> to vector<16x256xf32>
    %101 = vector.extract_strided_slice %99 {offsets = [0, 256], sizes = [16, 256], strides = [1, 1]} : vector<16x512xf32> to vector<16x256xf32>
    %102 = arith.negf %100 : vector<16x256xf32>
    %103 = math.exp %102 : vector<16x256xf32>
    %cst_39 = arith.constant 1.000000e+00 : f32
    %104 = vector.broadcast %cst_39 : f32 to vector<16x256xf32>
    %105 = arith.addf %104, %103 : vector<16x256xf32>
    %106 = arith.divf %104, %105 : vector<16x256xf32>
    %107 = arith.mulf %100, %106 : vector<16x256xf32>
    %108 = arith.mulf %107, %101 : vector<16x256xf32>
    %c0_40 = arith.constant 0 : index
    %c0_41 = arith.constant 0 : index
    %c0_42 = arith.constant 0 : index
    %109 = vector.load %arg10[%c0_40, %c0_41, %c0_42] : memref<1x256x128xf32, #tpu.memory_space<vmem>>, vector<1x256x128xf32>
    %110 = vector.shape_cast %109 : vector<1x256x128xf32> to vector<256x128xf32>
    %cst_43 = arith.constant dense<0.000000e+00> : vector<16x128xf32>
    %111 = tpu.matmul %108, %110, %cst_43 {dimension_numbers = #tpu.dot_dimension_numbers<[1], [0], [0], [1], [0, 0, 1, 1], [], []>} : vector<16x256xf32>, vector<256x128xf32>, vector<16x128xf32> -> vector<16x128xf32>
    %112 = arith.addf %82, %111 : vector<16x128xf32>
    %113 = arith.index_cast %arg1 : i32 to index
    %c0_44 = arith.constant 0 : index
    %c0_45 = arith.constant 0 : index
    %114 = vector.load %arg13[%113, %c0_44, %c0_45] : memref<2x16x128xf32, #tpu.memory_space<vmem>>, vector<1x16x128xf32>
    %115 = vector.shape_cast %114 : vector<1x16x128xf32> to vector<16x128xf32>
    %116 = vector.shape_cast %112 : vector<16x128xf32> to vector<1x16x128xf32>
    tpu.vector_store %arg13[%113, %c0_44, %c0_45], %116 {strides = array<i32>} : memref<2x16x128xf32, #tpu.memory_space<vmem>>, vector<1x16x128xf32>,
    %c1_i32 = arith.constant 1 : i32
    %117 = arith.cmpi eq, %arg0, %c1_i32 : i32
    %118 = arith.extui %117 : i1 to i32
    %c0_i32_46 = arith.constant 0 : i32
    %119 = arith.cmpi ne, %118, %c0_i32_46 : i32
    scf.if %119 {
      %c0_47 = arith.constant 0 : index
      %c0_48 = arith.constant 0 : index
      %120 = vector.load %arg11[%c0_47, %c0_48] : memref<1x128xf32, #tpu.memory_space<vmem>>, vector<1x128xf32>
      %121 = arith.mulf %112, %112 : vector<16x128xf32>
      %cst_49 = arith.constant dense<0.000000e+00> : vector<16xf32>
      %122 = vector.multi_reduction <add>, %121, %cst_49 [1] : vector<16x128xf32> to vector<16xf32>
      %123 = vector.shape_cast %122 : vector<16xf32> to vector<16x1xf32>
      %cst_50 = arith.constant 1.280000e+02 : f32
      %124 = vector.broadcast %cst_50 : f32 to vector<16x1xf32>
      %125 = arith.divf %123, %124 : vector<16x1xf32>
      %cst_51 = arith.constant 9.99999974E-6 : f32
      %126 = vector.broadcast %cst_51 : f32 to vector<16x1xf32>
      %127 = arith.addf %125, %126 : vector<16x1xf32>
      %128 = math.rsqrt %127 : vector<16x1xf32>
      %129 = vector.broadcast %128 : vector<16x1xf32> to vector<16x128xf32>
      %130 = arith.mulf %112, %129 : vector<16x128xf32>
      %131 = vector.broadcast %120 : vector<1x128xf32> to vector<16x128xf32>
      %132 = arith.mulf %130, %131 : vector<16x128xf32>
      %c0_52 = arith.constant 0 : index
      %c0_53 = arith.constant 0 : index
      %c0_54 = arith.constant 0 : index
      %133 = vector.load %arg12[%c0_52, %c0_53, %c0_54] : memref<1x16x128xf32, #tpu.memory_space<vmem>>, vector<1x16x128xf32>
      %134 = vector.shape_cast %133 : vector<1x16x128xf32> to vector<16x128xf32>
      %135 = vector.shape_cast %132 : vector<16x128xf32> to vector<1x16x128xf32>
      tpu.vector_store %arg12[%c0_52, %c0_53, %c0_54], %135 {strides = array<i32>} : memref<1x16x128xf32, #tpu.memory_space<vmem>>, vector<1x16x128xf32>,
    } else {
    }
    return
  }
  func.func @transform_0(%arg0: i32, %arg1: i32) -> (i32, i32, i32) {
    %c0_i32 = arith.constant 0 : i32
    %c0_i32_0 = arith.constant 0 : i32
    %c0_i32_1 = arith.constant 0 : i32
    return %arg1, %c0_i32, %c0_i32_0 : i32, i32, i32
  }
  func.func @transform_1(%arg0: i32, %arg1: i32) -> (i32, i32) {
    %c0_i32 = arith.constant 0 : i32
    %c0_i32_0 = arith.constant 0 : i32
    %c0_i32_1 = arith.constant 0 : i32
    return %c0_i32, %c0_i32_0 : i32, i32
  }
  func.func @transform_2(%arg0: i32, %arg1: i32) -> (i32, i32) {
    %c0_i32 = arith.constant 0 : i32
    %c0_i32_0 = arith.constant 0 : i32
    %c0_i32_1 = arith.constant 0 : i32
    return %c0_i32, %c0_i32_0 : i32, i32
  }
  func.func @transform_3(%arg0: i32, %arg1: i32) -> (i32, i32, i32) {
    %c0_i32 = arith.constant 0 : i32
    %c0_i32_0 = arith.constant 0 : i32
    %c0_i32_1 = arith.constant 0 : i32
    return %arg0, %c0_i32, %c0_i32_0 : i32, i32, i32
  }
  func.func @transform_4(%arg0: i32, %arg1: i32) -> (i32, i32, i32) {
    %c0_i32 = arith.constant 0 : i32
    %c0_i32_0 = arith.constant 0 : i32
    %c0_i32_1 = arith.constant 0 : i32
    return %arg0, %c0_i32, %c0_i32_0 : i32, i32, i32
  }
  func.func @transform_5(%arg0: i32, %arg1: i32) -> (i32, i32, i32) {
    %c0_i32 = arith.constant 0 : i32
    %c0_i32_0 = arith.constant 0 : i32
    %c0_i32_1 = arith.constant 0 : i32
    return %arg0, %c0_i32, %c0_i32_0 : i32, i32, i32
  }
  func.func @transform_6(%arg0: i32, %arg1: i32) -> (i32, i32, i32) {
    %c0_i32 = arith.constant 0 : i32
    %c0_i32_0 = arith.constant 0 : i32
    %c0_i32_1 = arith.constant 0 : i32
    return %arg0, %c0_i32, %c0_i32_0 : i32, i32, i32
  }
  func.func @transform_7(%arg0: i32, %arg1: i32) -> (i32, i32, i32) {
    %c0_i32 = arith.constant 0 : i32
    %c0_i32_0 = arith.constant 0 : i32
    %c0_i32_1 = arith.constant 0 : i32
    return %arg0, %c0_i32, %c0_i32_0 : i32, i32, i32
  }
  func.func @transform_8(%arg0: i32, %arg1: i32) -> (i32, i32, i32) {
    %c0_i32 = arith.constant 0 : i32
    %c0_i32_0 = arith.constant 0 : i32
    %c0_i32_1 = arith.constant 0 : i32
    return %arg0, %c0_i32, %c0_i32_0 : i32, i32, i32
  }
  func.func @transform_9(%arg0: i32, %arg1: i32) -> (i32, i32) {
    %c0_i32 = arith.constant 0 : i32
    %c0_i32_0 = arith.constant 0 : i32
    %c0_i32_1 = arith.constant 0 : i32
    return %c0_i32, %c0_i32_0 : i32, i32
  }
  func.func @transform_10(%arg0: i32, %arg1: i32) -> (i32, i32, i32) {
    %c0_i32 = arith.constant 0 : i32
    %c0_i32_0 = arith.constant 0 : i32
    %c0_i32_1 = arith.constant 0 : i32
    return %arg1, %c0_i32, %c0_i32_0 : i32, i32, i32
  }
}

</mosaic_0001>

<bundles_post_ra>
// kernel: tpu_custom_call.1
= control target key start
LH: loop header
LB: loop body
LE: loop exit
PB: predicated region body
PF: predicated region fallthrough
CT: control target
= control target key end

     0   :  { %s5205_s0 = inlined_call_operand.hbm [shape: f32[2,16,128], index: 0, kind: input, shape index: {}]   ;;  %s5206_s1 = inlined_call_operand.hbm [shape: f32[16,32], index: 1, kind: input, shape index: {}]   ;;  %s5207_s2 = inlined_call_operand.hbm [shape: f32[16,32], index: 2, kind: input, shape index: {}]   ;;  %s5208_s3 = inlined_call_operand.vmem [shape: f32[2,1,128], index: 3, kind: input, shape index: {}]   ;;  %s5209_s4 = inlined_call_operand.hbm [shape: f32[2,128,384], index: 4, kind: input, shape index: {}]   ;;  %s5210_s5 = inlined_call_operand.hbm [shape: f32[2,128,128], index: 5, kind: input, shape index: {}]   ;;  %s5211_s6 = inlined_call_operand.vmem [shape: f32[2,1,128], index: 6, kind: input, shape index: {}]   ;;  %s5212_s7 = inlined_call_operand.hbm [shape: f32[2,128,512], index: 7, kind: input, shape index: {}]   ;;  %s5213_s8 = inlined_call_operand.hbm [shape: f32[2,256,128], index: 8, kind: input, shape index: {}]   ;;  %s5214_s9 = inlined_call_operand.vmem [shape: f32[1,128], index: 9, kind: input, shape index: {}]   ;;  %s5215_s10 = inlined_call_operand.hbm [shape: f32[2,16,128], index: 10, kind: output, shape index: {}]  }
   0x1   :  { %5231 = sst [smem:[#allocation33_spill]] %s5205_s0 }
   0x2   :  { %5232 = sst [smem:[#allocation34_spill]] %s5206_s1 }
   0x3   :  { %5233 = sst [smem:[#allocation35_spill]] %s5207_s2 }
   0x4   :  { %5234 = sst [smem:[#allocation36_spill]] %s5208_s3 }
   0x5   :  { %5235 = sst [smem:[#allocation37_spill]] %s5209_s4 }
   0x6   :  { %5236 = sst [smem:[#allocation38_spill]] %s5210_s5 }
   0x7   :  { %5237 = sst [smem:[#allocation39_spill]] %s5211_s6 }
   0x8   :  { %5238 = sst [smem:[#allocation40_spill]] %s5212_s7 }
   0x9   :  { %5239 = sst [smem:[#allocation41_spill]] %s5213_s8 }
   0xa   :  { %5240 = sst [smem:[#allocation42_spill]] %s5214_s9 }
   0xb   :  { %5241 = sst [smem:[#allocation43_spill]] %s5215_s10 }
   0xc   :  { %15 = vsyncpa [#allocation5], 0 }
   0xd   :  { %17 = vsyncpa [#allocation5 + $0x1], 0 }
   0xe   :  { %18 = vsyncpa [#allocation8], 0 }
   0xf   :  { %19 = vsyncpa [#allocation11], 0 }
  0x10   :  { %21 = vsyncpa [#allocation11 + $0x1], 0 }
  0x11   :  { %22 = vsyncpa [#allocation14], 0 }
  0x12   :  { %24 = vsyncpa [#allocation14 + $0x1], 0 }
  0x13   :  { %25 = vsyncpa [#allocation6], 0 }
  0x14   :  { %27 = vsyncpa [#allocation6 + $0x1], 0  ;;  %s3862_s13 = smov 0   ;;  %s3864_s14 = smov 0  }
  0x15   :  { %s3866_s15 = smov 0   ;;  %s3868_s16 = smov 0  }
  0x16   :  { %s3870_s17 = smov 0   ;;  %s3872_s18 = smov 0  }
  0x17   :  { %s3874_s19 = smov 0   ;;  %s3876_s20 = smov 0  }
  0x18   :  { %s3878_s21 = smov 0   ;;  %s3880_s22 = smov 0  }
  0x19   :  { %s3882_s23 = smov 0  }
  0x1a LB: > { %5242 = sst [smem:[#allocation22_spill]] %s3750_s14  ;;  %s3916_s24 = sadd.s32 4294967295, %s3786_s23   ;;  %s3786_s23 = sphi %s3882_s23, %s33_s23   ;;  %s3782_s22 = sphi %s3880_s22, %s5314_s22   ;;  %s3778_s21 = sphi %s3878_s21, %s5306_s21   ;;  %s3774_s20 = sphi %s3876_s20, %s5313_s20   ;;  %s3770_s19 = sphi %s3874_s19, %s5305_s19   ;;  %s3766_s18 = sphi %s3872_s18, %s5312_s18   ;;  %s3762_s17 = sphi %s3870_s17, %s5311_s17   ;;  %s3758_s16 = sphi %s3868_s16, %s5310_s16   ;;  %s3754_s15 = sphi %s3866_s15, %s5309_s15   ;;  %s3750_s14 = sphi %s3864_s14, %s5308_s14   ;;  %s3746_s13 = sphi %s3862_s13, %s5301_s13  }
  0x1b   : > { %5243 = sst [smem:[#allocation23_spill]] %s3766_s18  ;;  %p159_p0 = scmp.ne.s32.totalorder %s3750_s14, %s3746_s13 }
  0x1c   : > { %5244 = sst [smem:[#allocation24_spill]] %s3770_s19  ;;  %p66_p1 = scmp.eq.s32.totalorder %s3916_s24, 0 }
  0x1d   : > { %5245 = sst [smem:[#allocation25_spill]] %s3774_s20  ;;  %p308_p2 = scmp.eq.s32.totalorder %s3916_s24, 3 }
  0x1e   : > { %5246 = sst [smem:[#allocation26_spill]] %s3778_s21  ;;  %p3130_p3 = scmp.ge.s32.totalorder %s3786_s23, 1 }
  0x1f   : > { %p321_p4 = scmp.lt.s32.totalorder %s3786_s23, 5  ;;  %p3925_p5 = por %p159_p0, %p66_p1 }
  0x20   : > { %s5251_s1 = sld [smem:[#allocation34_spill]]  ;;  %s3788_s30 = smov [#allocation7]  }
  0x21   : > { %s5247_s25 = scalar_select %p3925_p5, 1, 0 }
  0x22   : > { %p3929_p6 = pnand %p3130_p3, %p321_p4  ;;  %s334_s11 = sshll.u32 %s3788_s30, 4  ;;  %s335_s11 = int_to_ptr.vmem [resolvable:$true] %s334_s11 }
  0x23   : > { %5248 = sst [smem:[#allocation27_spill]] %s5247_s25  ;;  %s5218_s13 = smov 128  }
  0x24   : > { %s5249_s26 = scalar_select %p3929_p6, 1, 0 }
  0x25   : > { %p3220_p7 = pneg %p3929_p6  ;;  %s5220_s27 = smov 8  }
  0x26   : > { %5250 = sst [smem:[#allocation28_spill]] %s5249_s26  ;;  %s332_s29 = sshll.u32 %s5251_s1, 4  ;;  %s333_s29 = int_to_ptr.hbm [resolvable:$true] %s332_s29 }
  0x27   : > { %p3940_p8 = pnand %p3220_p7, %p66_p1  ;;  %p60_p9 = scmp.eq.s32.totalorder %s3786_s23, 0 }
  0x28   : > { %p153_p10 = scmp.ne.s32.totalorder %s3754_s15, %s3750_s14  ;;  %p3249_p11 = scmp.lt.s32.totalorder %s3786_s23, 4 }
  0x29   : > { %3223 = dma.hbm_to_vmem [thread:$0]  (!%p3940_p8), %s333_s29, 256, %s335_s11, [#allocation8], %s5218_s13, %s5218_s13, %s5220_s27  }
  0x2a   : > { %s393_s1 = sand.u32 1, %s3786_s23   ;;  %s3956_s30 = sand.u32 1, %s3754_s15  }
  0x2b   : > { %p155_p12 = por %p153_p10, %p60_p9  ;;  %s3197_s10 = smul.u32 384, %s3956_s30 }
  0x2c   : > { %s3198_s9 = smul.u32 384, %s3782_s22  ;;  %s5254_s4 = sld [smem:[#allocation37_spill]] }
  0x2d   : > { %p3964_p13 = pnand %p3249_p11, %p155_p12  ;;  %s397_s13 = scalar_lea.vmem [#allocation10], %s3197_s10 }
  0x2e   : > { %s405_s27 = sshll.u32 %s397_s13, 4  ;;  %s3971_s3 = scalar_lea.sflag [#allocation11], %s393_s1  ;;  %s406_s27 = int_to_ptr.vmem [resolvable:$true] %s405_s27 }
  0x2f   : > { %s3791_s20 = smov 384   ;;  %s3792_s25 = smov 24  }
  0x30   : > { %s3141_s14 = sshll.u32 %s3956_s30, 9  ;;  %s3194_s26 = sshll.u32 %s3782_s22, 9 }
  0x31   : > { %s5255_s7 = sld [smem:[#allocation40_spill]]  ;;  %s447_s10 = scalar_lea.vmem [#allocation13], %s3141_s14 }
  0x32   : > { %s402_s28 = scalar_lea.hbm %s5254_s4, %s3198_s9  ;;  %s455_s13 = sshll.u32 %s447_s10, 4  ;;  %s456_s13 = int_to_ptr.vmem [resolvable:$true] %s455_s13 }
  0x33   : > { %s403_s6 = sshll.u32 %s402_s28, 4  ;;  %s5256_s2 = sld [smem:[#allocation35_spill]]  ;;  %s404_s6 = int_to_ptr.hbm [resolvable:$true] %s403_s6 }
  0x34   : > { %3233 = dma.hbm_to_vmem [thread:$0]  (!%p3964_p13), %s404_s6, 6144, %s406_s27, %s3971_s3, %s3791_s20, %s3791_s20, %s3792_s25  }
  0x35   : > { %s3984_s20 = scalar_lea.sflag [#allocation14], %s393_s1  ;;  %s3793_s5 = smov 512  }
  0x36   : > { %s3794_s8 = smov 32   ;;  %s3795_s14 = smov [#allocation9]  }
  0x37   : > { %s452_s9 = scalar_lea.hbm %s5255_s7, %s3194_s26  ;;  %s348_s25 = sshll.u32 %s3795_s14, 4  ;;  %s349_s25 = int_to_ptr.vmem [resolvable:$true] %s348_s25 }
  0x38   : > { %s453_s28 = sshll.u32 %s452_s9, 4  ;;  %s5257_s26 = smov 8   ;;  %s454_s28 = int_to_ptr.hbm [resolvable:$true] %s453_s28 }
  0x39   : > { %s346_s6 = sshll.u32 %s5256_s2, 4  ;;  %s5258_s27 = smov 128   ;;  %s347_s6 = int_to_ptr.hbm [resolvable:$true] %s346_s6 }
  0x3a   : > { %3239 = dma.hbm_to_vmem [thread:$0]  (!%p3964_p13), %s454_s28, 8192, %s456_s13, %s3984_s20, %s3793_s5, %s3793_s5, %s3794_s8  }
  0x3b   : > { %3226 = dma.hbm_to_vmem [thread:$0]  (!%p3940_p8), %s347_s6, 256, %s349_s25, [#allocation8], %s5258_s27, %s5258_s27, %s5257_s26  }
  0x3c   : > { %s3129_s1 = sadd.s32 4294967294, %s3786_s23   ;;  %s42_s9 = sadd.s32 1, %s3778_s21 }
  0x3d   : > { %p43_p0 = scmp.ge.s32.totalorder %s42_s9, 2  ;;  %s45_s10 = sadd.s32 1, %s3782_s22 }
  0x3e   : > { %s52_s13 = sadd.s32 1, %s3766_s18  ;;  %p59_p3 = scmp.ne.s32.totalorder %s3766_s18, %s3762_s17 }
  0x3f   : > { %s5316_s9 = smov (%p43_p0, %s42_s9), 0  ;;  %s5318_s10 = smov (!%p43_p0, %s45_s10), %s3782_s22 }
  0x40   : > { %5259 = sst [smem:[#allocation29_spill]] %s5316_s9  ;;  %s49_s12 = ssub.s32 %s3778_s21, %s5316_s9 }
  0x41   : > { %p4007_p4 = por %p60_p9, %p59_p3  ;;  %p47_p7 = scmp.ge.s32.totalorder %s5318_s10, 2 }
  0x42   : > { %p50_p8 = scmp.eq.s32.totalorder %s49_s12, 0  ;;  %p65_p10 = scmp.ne.s32.totalorder %s3762_s17, %s3758_s16 }
  0x43   : > { %p4015_p12 = por %p308_p2, %p59_p3  ;;  %s5320_s10 = smov (%p47_p7, %s5318_s10), 0 }
  0x44   : > { %5262 = sst [smem:[#allocation30_spill]] %s5320_s10  ;;  %p4026_p9 = por %p66_p1, %p65_p10 }
  0x45   : > { %s4022_s11 = scalar_select %p50_p8, %s3766_s18, %s52_s13  }
  0x46   : > { %s143_s5 = ssub.s32 %s3782_s22, %s5320_s10  ;;  %p314_p2 = scmp.eq.s32.totalorder %s3129_s1, 3 }
  0x47   : > { %5263 = sst [smem:[#allocation31_spill]] %s4022_s11  ;;  %p144_p0 = scmp.eq.s32.totalorder %s143_s5, 0 }
  0x48   : > { %s365_s8 = sand.u32 1, %s3766_s18   ;;  %s3192_s14 = sshll.u32 %s3778_s21, 4 }
  0x49   : > { %s5265_s25 = sadd.s32 1, %s3754_s15  ;;  %p4039_p3 = por %p314_p2, %p65_p10 }
  0x4a   : > { %s4037_s12 = scalar_select %p144_p0, %s3754_s15, %s5265_s25  }
  0x4b   : > { %s3134_s2 = sshll.u32 %s365_s8, 4  ;;  %s5268_s0 = sld [smem:[#allocation33_spill]] }
  0x4c   : > { %5266 = sst [smem:[#allocation32_spill]] %s4037_s12  ;;  %s369_s1 = scalar_lea.vmem [#allocation4], %s3134_s2 }
  0x4d   : > { %s377_s5 = sshll.u32 %s369_s1, 4  ;;  %p3228_p7 = pnand %p3249_p11, %p4007_p4  ;;  %s378_s5 = int_to_ptr.vmem [resolvable:$true] %s377_s5 }
  0x4e   : > { %s3138_s25 = sshll.u32 %s3956_s30, 7  ;;  %s3193_s10 = sshll.u32 %s3782_s22, 7 }
  0x4f   : > { %s366_s21 = scalar_lea.sflag [#allocation5], %s365_s8  ;;  %s419_s2 = scalar_lea.vmem [#allocation12], %s3138_s25 }
  0x50   : > { %s3144_s28 = sshll.u32 %s3956_s30, 8  ;;  %s3195_s8 = sshll.u32 %s3782_s22, 8 }
  0x51   : > { %s374_s9 = scalar_lea.hbm %s5268_s0, %s3192_s14  ;;  %s427_s0 = sshll.u32 %s419_s2, 4  ;;  %s428_s0 = int_to_ptr.vmem [resolvable:$true] %s427_s0 }
  0x52   : > { %s375_s11 = sshll.u32 %s374_s9, 4  ;;  %s5269_s9 = sld [smem:[#allocation38_spill]]  ;;  %s376_s11 = int_to_ptr.hbm [resolvable:$true] %s375_s11 }
  0x53   : > { %3230 = dma.hbm_to_vmem [thread:$0]  (!%p3228_p7), %s376_s11, 256, %s378_s5, %s366_s21, %s5258_s27, %s5258_s27, %s5257_s26  }
  0x54   : > { %s5270_s11 = sld [smem:[#allocation41_spill]]  ;;  %s469_s4 = scalar_lea.vmem [#allocation15], %s3144_s28 }
  0x55   : > { %s477_s7 = sshll.u32 %s469_s4, 4  ;;  %s478_s7 = int_to_ptr.vmem [resolvable:$true] %s477_s7 }
  0x58   : > { %s424_s14 = scalar_lea.hbm %s5269_s9, %s3193_s10 }
  0x59   : > { %s425_s1 = sshll.u32 %s424_s14, 4  ;;  %489 = sbr.rel (%p3929_p6) target bundleno = 2065 (0x811), region = 60  ;;  %s426_s1 = int_to_ptr.hbm [resolvable:$true] %s425_s1 }
  0x5a   : > { %3236 = dma.hbm_to_vmem [thread:$0]  (!%p3964_p13), %s426_s1, 2048, %s428_s0, %s3971_s3, %s5258_s27, %s5258_s27, %s5257_s26  }
  0x5b   : > { %s474_s5 = scalar_lea.hbm %s5270_s11, %s3195_s8  ;;  %s4078_s0 = sand.u32 (!%p3929_p6), 1, %s3762_s17  }
  0x5c   : > { %s475_s12 = sshll.u32 %s474_s5, 4  ;;  %s3148_s3 = sshll.u32 (!%p3929_p6), %s4078_s0, 4  ;;  %s476_s12 = int_to_ptr.hbm [resolvable:$true] %s475_s12 }
  0x5d   : > { %3242 = dma.hbm_to_vmem [thread:$0]  (!%p3964_p13), %s476_s12, 4096, %s478_s7, %s3984_s20, %s5258_s27, %s5258_s27, %s5257_s26  }
  0x5e   : > { %s492_s18 = scalar_lea.sflag [#allocation5], %s4078_s0  ;;  %s4082_s10 = scalar_lea.vmem [#allocation4], %s3148_s3 }
  0x5f   : > { %3725 = dma.done.wait (%p4026_p9), %s492_s18, 256  }
  0x60   : > { %3727 = vsyncadd (%p4026_p9), %s492_s18, 4294967040 }
  0x61   : > { %3729 = dma.done.wait (%p66_p1), [#allocation8], 512  }
  0x62   : > { %3731 = vsyncadd (%p66_p1), [#allocation8], 4294966784  ;;  %s5272_s19 = sld [smem:[#allocation22_spill]]  ;;  %s511_s26 = sand.u32 1, %s3916_s24  }
  0x63   : > { %s512_s25 = scalar_lea.sflag [#allocation11], %s511_s26 }
  0x68   : > { %s513_s27 = sand.u32 1, %s5272_s19  }
  0x69   : > { %s3199_s12 = smul.u32 384, %s513_s27 }
  0x6b   : > { %s4094_s9 = scalar_lea.vmem [#allocation10], %s3199_s12 }
  0x6c   : > { %3733 = dma.done.wait (%p3925_p5), %s512_s25, 8192  }
  0x6d   : > { %3735 = vsyncadd (%p3925_p5), %s512_s25, 4294959104  ;;  %s3151_s6 = sshll.u32 %s513_s27, 7  ;;  %s3152_s14 = sshll.u32 %s513_s27, 9 }
  0x6e   : > { %s4100_s2 = scalar_lea.vmem [#allocation12], %s3151_s6  ;;  %s532_s1 = scalar_lea.sflag [#allocation14], %s511_s26 }
  0x6f   : > { %s4102_s28 = scalar_lea.vmem [#allocation13], %s3152_s14 }
  0x70   : > { %3737 = dma.done.wait (%p3925_p5), %s532_s1, 12288  }
  0x71   : > { %3739 = vsyncadd (%p3925_p5), %s532_s1, 4294955008  ;;  %s5274_s24 = sld [smem:[#allocation25_spill]]  ;;  %s3153_s8 = sshll.u32 %s513_s27, 8 }
  0x72   : > { %s5275_s4 = sld [smem:[#allocation36_spill]]  ;;  %s4120_s12 = scalar_lea.vmem [#allocation15], %s3153_s8 }
  0x73   : > { %s5276_s19 = sld [smem:[#allocation39_spill]]  ;;  %s4122_s20 = scalar_lea.vmem [#allocation16], %s3148_s3 }
  0x77   : > { %p609_p1 = scmp.lt.s32.totalorder %s5274_s24, 1  ;;  %p3155_p5 = scmp.ne.s32.totalorder %s5274_s24, 0 }
  0x78   : > { %s5277_s27 = sld [smem:[#allocation24_spill]] (!%p3155_p5) }
  0x79   : > { %s4110_s21 = scalar_select %p609_p1, %s5274_s24, 1 }
  0x7a   : > { %618 = sbr.rel (%p3155_p5) target bundleno = 136 (0x88), region = 92 }
  0x7b   : > { %s611_s7 = scalar_lea.vmem %s5275_s4, %s4110_s21  ;;  %s614_s26 = scalar_lea.vmem %s5276_s19, %s4110_s21 }
  0x7e   : > { %s3156_s25 = sshll.u32 (!%p3155_p5), %s5277_s27, 4 }
  0x7f   : > { %v619_v0 = vld [vmem:[%s4082_s10] sm:$0xff]  ;;  %v620_v1 = vld [vmem:[%s4082_s10 + $0x8] sm:$0xff]  ;;  %v625_v2 = vlaneseq  ;;  %s622_s6 = scalar_lea.vmem [#allocation2], %s3156_s25  ;;  %vm634_vm0 = vcmask 130048   ;;  %v3796_v6 = vmov -1e+09  }
  0x80   : > { %623 = vst [vmem:[%s622_s6] sm:$0xff] %v619_v0 }
  0x81   : > { %v626_v3 = vshrl.u32 %v625_v2, 7  ;;  %v629_v4 = vand.u32 127, %v625_v2  ;;  %624 = vst [vmem:[%s622_s6 + $0x8] sm:$0xff] %v620_v1 }
  0x83   : > { %vm630_vm1 = vcmp.ge.s32.totalorder %v626_v3, %v629_v4  ;;  %v627_v5 = vadd.s32 8, %v626_v3 }
  0x84   : > { %v632_v7 = vsel %vm630_vm1, 0.0, %v3796_v6 }
  0x85   : > { %635 = vst.msk [vmem:[#allocation3] sm:$0xff] %vm634_vm0, %v632_v7  ;;  %vm631_vm2 = vcmp.ge.s32.totalorder %v627_v5, %v629_v4 }
  0x86   : > { %v633_v8 = vsel %vm631_vm2, 0.0, %v3796_v6 }
  0x87   : > { %636 = vst.msk [vmem:[#allocation3 + $0x8] sm:$0xff] %vm634_vm0, %v633_v8 }
  0x88 PF: > { %s5278_s3 = sld [smem:[#allocation24_spill]]  ;;  %v735_v9 = vld [vmem:[%s4094_s9 + $0x168] sm:$0xff]  ;;  %v736_v10 = vld [vmem:[%s4094_s9 + $0x170] sm:$0xff]  ;;  %v737_v11 = vld [vmem:[%s4094_s9 + $0x178] sm:$0xff]  ;;  %v3797_v28 = vmov 128.0   ;;  %s3798_s8 = smov 32  }
  0x89   : > { %738 = vmatpush.msra.mxu0 %v735_v9  ;;  %761 = vmatpush.msra.mxu1 %v736_v10  ;;  %v732_v12 = vld [vmem:[%s4094_s9 + $0x150] sm:$0xff]  ;;  %v733_v13 = vld [vmem:[%s4094_s9 + $0x158] sm:$0xff]  ;;  %v734_v14 = vld [vmem:[%s4094_s9 + $0x160] sm:$0xff]  ;;  %3377 = vrcp.f32 %v3797_v28  ;;  %s3799_s11 = smov 64   ;;  %s3800_s5 = smov 96   ;;  %vm828_vm10 = vcmask 1047556  }
  0x8a   : > { %784 = vmatpush.msra.mxu2 %v737_v11  ;;  %v729_v16 = vld [vmem:[%s4094_s9 + $0x138] sm:$0xff]  ;;  %v730_v18 = vld [vmem:[%s4094_s9 + $0x140] sm:$0xff]  ;;  %v731_v19 = vld [vmem:[%s4094_s9 + $0x148] sm:$0xff]  ;;  %s3803_s4 = smov 16   ;;  %vm1600_vm11 = vcmask 130048   ;;  %vm1747_vm12 = vcmask 261120  }
  0x8b   : > { %739 = vmatpush.msra.mxu0 %v732_v12  ;;  %762 = vmatpush.msra.mxu1 %v733_v13  ;;  %v726_v22 = vld [vmem:[%s4094_s9 + $0x120] sm:$0xff]  ;;  %v727_v23 = vld [vmem:[%s4094_s9 + $0x128] sm:$0xff]  ;;  %v728_v24 = vld [vmem:[%s4094_s9 + $0x130] sm:$0xff] }
  0x8c   : > { %785 = vmatpush.msra.mxu2 %v734_v14  ;;  %v723_v25 = vld [vmem:[%s4094_s9 + $0x108] sm:$0xff]  ;;  %v724_v26 = vld [vmem:[%s4094_s9 + $0x110] sm:$0xff]  ;;  %v725_v27 = vld [vmem:[%s4094_s9 + $0x118] sm:$0xff] }
  0x8d   : > { %740 = vmatpush.msra.mxu0 %v729_v16  ;;  %763 = vmatpush.msra.mxu1 %v730_v18  ;;  %v720_v29 = vld [vmem:[%s4094_s9 + $0xf0] sm:$0xff]  ;;  %v721_v30 = vld [vmem:[%s4094_s9 + $0xf8] sm:$0xff]  ;;  %v722_v31 = vld [vmem:[%s4094_s9 + $0x100] sm:$0xff] }
  0x8e   : > { %s3157_s10 = sshll.u32 %s5278_s3, 4  ;;  %786 = vmatpush.msra.mxu2 %v731_v19  ;;  %v717_v32 = vld [vmem:[%s4094_s9 + $0xd8] sm:$0xff]  ;;  %v718_v33 = vld [vmem:[%s4094_s9 + $0xe0] sm:$0xff]  ;;  %v719_v34 = vld [vmem:[%s4094_s9 + $0xe8] sm:$0xff] }
  0x8f   : > { %s4137_s14 = scalar_lea.vmem [#allocation2], %s3157_s10  ;;  %741 = vmatpush.msra.mxu0 %v726_v22  ;;  %764 = vmatpush.msra.mxu1 %v727_v23  ;;  %v714_v35 = vld [vmem:[%s4094_s9 + $0xc0] sm:$0xff]  ;;  %v715_v36 = vld [vmem:[%s4094_s9 + $0xc8] sm:$0xff]  ;;  %v716_v37 = vld [vmem:[%s4094_s9 + $0xd0] sm:$0xff]  ;;  %v3378_v38 = vpop.eup %3377 }
  0x90   : > { %v4140_v15 = vld [vmem:[%s4137_s14] sm:$0xff]  ;;  %v4148_v20 = vld [vmem:[%s4137_s14 + $0x8] sm:$0xff]  ;;  %787 = vmatpush.msra.mxu2 %v728_v24  ;;  %v711_v39 = vld [vmem:[%s4094_s9 + $0xa8] sm:$0xff]  ;;  %v653_v45 = vmul.f32 128.0, %v3378_v38  ;;  %vm657_vm3 = vweird.f32 %v3378_v38 }
  0x91   : > { %v646_v17 = vmul.f32 %v4140_v15, %v4140_v15  ;;  %v647_v21 = vmul.f32 %v4148_v20, %v4148_v20  ;;  %742 = vmatpush.msra.mxu0 %v723_v25  ;;  %765 = vmatpush.msra.mxu1 %v724_v26  ;;  %v712_v40 = vld [vmem:[%s4094_s9 + $0xb0] sm:$0xff]  ;;  %v713_v41 = vld [vmem:[%s4094_s9 + $0xb8] sm:$0xff]  ;;  %v710_v44 = vld [vmem:[%s4094_s9 + $0xa0] sm:$0xff] }
  0x92   : > { %788 = vmatpush.msra.mxu2 %v725_v27  ;;  %v708_v42 = vld [vmem:[%s4094_s9 + $0x90] sm:$0xff]  ;;  %v709_v43 = vld [vmem:[%s4094_s9 + $0x98] sm:$0xff]  ;;  %v706_v47 = vld [vmem:[%s4094_s9 + $0x80] sm:$0xff]  ;;  %v654_v52 = vsub.f32 1.0, %v653_v45 }
  0x93   : > { %648 = vadd.xlane.f32.xlu0 %v646_v17  ;;  %743 = vmatpush.msra.mxu0 %v720_v29  ;;  %v705_v46 = vld [vmem:[%s4094_s9 + $0x78] sm:$0xff]  ;;  %v707_v48 = vld [vmem:[%s4094_s9 + $0x88] sm:$0xff]  ;;  %v702_v49 = vld [vmem:[%s4094_s9 + $0x60] sm:$0xff] }
  0x94   : > { %766 = vmatpush.msra.mxu1 %v721_v30  ;;  %789 = vmatpush.msra.mxu2 %v722_v31  ;;  %v703_v50 = vld [vmem:[%s4094_s9 + $0x68] sm:$0xff]  ;;  %v704_v51 = vld [vmem:[%s4094_s9 + $0x70] sm:$0xff]  ;;  %v701_v55 = vld [vmem:[%s4094_s9 + $0x58] sm:$0xff]  ;;  %v655_v59 = vmul.f32 %v3378_v38, %v654_v52 }
  0x95   : > { %744 = vmatpush.msra.mxu0 %v717_v32  ;;  %v699_v53 = vld [vmem:[%s4094_s9 + $0x48] sm:$0xff]  ;;  %v700_v54 = vld [vmem:[%s4094_s9 + $0x50] sm:$0xff]  ;;  %v697_v57 = vld [vmem:[%s4094_s9 + $0x38] sm:$0xff] }
  0x96   : > { %767 = vmatpush.msra.mxu1 %v718_v33  ;;  %790 = vmatpush.msra.mxu2 %v719_v34  ;;  %v696_v56 = vld [vmem:[%s4094_s9 + $0x30] sm:$0xff]  ;;  %v698_v58 = vld [vmem:[%s4094_s9 + $0x40] sm:$0xff]  ;;  %v693_v60 = vld [vmem:[%s4094_s9 + $0x18] sm:$0xff]  ;;  %v656_v2 = vadd.f32 %v3378_v38, %v655_v59 }
  0x97   : > { %745 = vmatpush.msra.mxu0 %v714_v35  ;;  %v694_v61 = vld [vmem:[%s4094_s9 + $0x20] sm:$0xff]  ;;  %v695_v62 = vld [vmem:[%s4094_s9 + $0x28] sm:$0xff]  ;;  %v692_v1 = vld [vmem:[%s4094_s9 + $0x10] sm:$0xff] }
  0x98   : > { %768 = vmatpush.msra.mxu1 %v715_v36  ;;  %791 = vmatpush.msra.mxu2 %v716_v37  ;;  %v690_v63 = vld [vmem:[%s4094_s9] sm:$0xff]  ;;  %v691_v0 = vld [vmem:[%s4094_s9 + $0x8] sm:$0xff]  ;;  %v4191_v3 = vsel %vm657_vm3, %v3378_v38, %v656_v2  ;;  %v3375_v19 = vld [vmem:[%s611_s7] ss:$0 sm:$0xff]  ;;  %v3801_v36 = vmov 1983009808  }
  0x99   : > { %746 = vmatpush.msra.mxu0 %v711_v39  ;;  %v833_v37 = vunpack.c.l.s4 %v3801_v36  ;;  %s3804_s7 = smov 112  }
  0x9a   : > { %769 = vmatpush.msra.mxu1 %v712_v40  ;;  %792 = vmatpush.msra.mxu2 %v713_v41 }
  0x9b   : > { %650 = vadd.xlane.f32.xlu0 %v647_v21  ;;  %747 = vmatpush.msra.mxu0 %v708_v42  ;;  %v4233_v39 = vunpack.c.0.s8 %v833_v37 }
  0x9c   : > { %770 = vmatpush.msra.mxu1 %v709_v43  ;;  %793 = vmatpush.msra.mxu2 %v710_v44  ;;  %v3802_v43 = vmov 1934713408  }
  0x9d   : > { %748 = vmatpush.msra.mxu0 %v705_v46  ;;  %v857_v44 = vunpack.c.l.s4 %v3802_v43 }
  0x9e   : > { %771 = vmatpush.msra.mxu1 %v706_v47  ;;  %794 = vmatpush.msra.mxu2 %v707_v48 }
  0x9f   : > { %749 = vmatpush.msra.mxu0 %v702_v49 }
  0xa0   : > { %772 = vmatpush.msra.mxu1 %v703_v50  ;;  %795 = vmatpush.msra.mxu2 %v704_v51 }
  0xa1   : > { %750 = vmatpush.msra.mxu0 %v699_v53 }
  0xa2   : > { %773 = vmatpush.msra.mxu1 %v700_v54  ;;  %796 = vmatpush.msra.mxu2 %v701_v55  ;;  %v4243_v55 = vunpack.c.0.s8 %v857_v44 }
  0xa3   : > { %751 = vmatpush.msra.mxu0 %v696_v56 }
  0xa4   : > { %774 = vmatpush.msra.mxu1 %v697_v57  ;;  %797 = vmatpush.msra.mxu2 %v698_v58 }
  0xa5   : > { %752 = vmatpush.msra.mxu0 %v693_v60 }
  0xa6   : > { %775 = vmatpush.msra.mxu1 %v694_v61  ;;  %798 = vmatpush.msra.mxu2 %v695_v62 }
  0xa7   : > { %753 = vmatpush.msra.mxu0 %v690_v63 }
  0xa8   : > { %776 = vmatpush.msra.mxu1 %v691_v0  ;;  %799 = vmatpush.msra.mxu2 %v692_v1 }
 0x106   : > { %v649_v4 = vpop.xlane.xlu0 %648 }
 0x107   : > { %v659_v5 = vmul.f32 %v4191_v3, %v649_v4 }
 0x109   : > { %v661_v6 = vadd.f32 1e-05, %v659_v5 }
 0x10b   : > { %3379 = vrsqrt.f32 %v661_v6  ;;  %vm669_vm5 = vweird.f32 %v661_v6 }
 0x10e   : > { %v651_v7 = vpop.xlane.xlu0 %650 }
 0x10f   : > { %v660_v8 = vmul.f32 %v4191_v3, %v651_v7 }
 0x111   : > { %v3380_v9 = vpop.eup %3379  ;;  %v662_v10 = vadd.f32 1e-05, %v660_v8 }
 0x112   : > { %v664_v11 = vmul.f32 %v3380_v9, %v661_v6  ;;  %vm670_vm4 = vweird.f32 %v3380_v9 }
 0x113   : > { %3381 = vrsqrt.f32 %v662_v10  ;;  %vm671_vm6 = vmor %vm669_vm5, %vm670_vm4  ;;  %vm679_vm8 = vweird.f32 %v662_v10 }
 0x114   : > { %v665_v12 = vmul.f32 %v3380_v9, %v664_v11 }
 0x116   : > { %v666_v13 = vmul.f32 0.5, %v665_v12 }
 0x118   : > { %v667_v14 = vsub.f32 1.5, %v666_v13 }
 0x119   : > { %v3382_v16 = vpop.eup %3381 }
 0x11a   : > { %v668_v17 = vmul.f32 %v3380_v9, %v667_v14  ;;  %v674_v18 = vmul.f32 %v3382_v16, %v662_v10  ;;  %vm680_vm7 = vweird.f32 %v3382_v16 }
 0x11b   : > { %vm681_vm9 = vmor %vm679_vm8, %vm680_vm7 }
 0x11c   : > { %v675_v21 = vmul.f32 %v3382_v16, %v674_v18  ;;  %v672_v22 = vsel %vm671_vm6, %v3380_v9, %v668_v17 }
 0x11d   : > { %v683_v23 = vmul.f32 %v672_v22, %v4140_v15 }
 0x11e   : > { %v676_v24 = vmul.f32 0.5, %v675_v21 }
 0x11f   : > { %v688_v25 = vmul.f32 %v3375_v19, %v683_v23 }
 0x120   : > { %v677_v26 = vsub.f32 1.5, %v676_v24 }
 0x121   : > { %754 = vmatmul.f32.vlgmr.msra.gmra.mxu0 %v688_v25  ;;  %777 = vmatmul.f32.vlgmr.msra.gmra.mxu1 %v688_v25 }
 0x122   : > { %v678_v27 = vmul.f32 %v3382_v16, %v677_v26  ;;  %800 = vmatmul.f32.vlgmr.msra.gmra.mxu2 %v688_v25 }
 0x124   : > { %v682_v28 = vsel %vm681_vm9, %v3382_v16, %v678_v27 }
 0x125   : > { %v684_v29 = vmul.f32 %v682_v28, %v4148_v20 }
 0x127   : > { %v689_v30 = vmul.f32 %v3375_v19, %v684_v29 }
 0x129   : > { %757 = vmatmul.f32.gmra.mxu0 %v689_v30  ;;  %780 = vmatmul.f32.gmra.mxu1 %v689_v30 }
 0x12a   : > { %803 = vmatmul.f32.gmra.mxu2 %v689_v30 }
 0x19e   : > { %v755_v31 = vpop.f32.mrf.mxu0  ;;  %v4202_v32 = vpop.f32.mrf.mxu1 }
 0x19f   : > { %1062 = vrot.lane.b32.xlu1 %v4202_v32, %s3798_s8  ;;  %1056 = vrot.lane.b32.xlu2 %v4202_v32, %s3799_s11  ;;  %v830_v42 = vrot.slane %v755_v31, 4 }
 0x1a0   : > { %815 = vrot.lane.b32.xlu0 %v755_v31, %s3799_s11 }
 0x1a6   : > { %v4209_v15 = vpop.f32.mrf.mxu0  ;;  %v4211_v20 = vpop.f32.mrf.mxu1 }
 0x1a7   : > { %821 = vrot.lane.b32.xlu2 %v755_v31, %s3798_s8  ;;  %1058 = vrot.lane.b32.xlu1 %v4211_v20, %s3799_s11  ;;  %v1126_v14 = vrot.slane %v4211_v20, 4 }
 0x1a8   : > { %811 = vrot.lane.b32.xlu0 %v4209_v15, %s3800_s5 }
 0x1af   : > { %1052 = vrot.lane.b32.xlu2 %v4211_v20, %s3800_s5  ;;  %1064 = vrot.lane.b32.xlu1 %v4211_v20, %s3798_s8 }
 0x1b7   : > { %809 = vrot.lane.b32.xlu2 %v755_v31, %s3800_s5  ;;  %1050 = vrot.lane.b32.xlu1 %v4202_v32, %s3800_s5 }
 0x1bf   : > { %823 = vrot.lane.b32.xlu2 %v4209_v15, %s3798_s8  ;;  %817 = vrot.lane.b32.xlu1 %v4209_v15, %s3799_s11 }
 0x1f9   : > { %v4229_v33 = vpop.permute.xlu2 %1056 }
 0x1fa   : > { %v1068_v23 = vrot.slane %v4229_v33, 4 }
 0x1fc   : > { %v1069_v43 = vsel %vm828_vm10, %v1068_v23, %v4202_v32 }
 0x201   : > { %v822_v34 = vpop.permute.xlu2 %821 }
 0x202   : > { %v840_v38 = vrot.slane %v822_v34, 4 }
 0x209   : > { %v4231_v35 = vpop.permute.xlu2 %1052 }
 0x20a   : > { %v1138_v16 = vrot.slane %v4231_v35, 4 }
 0x211   : > { %v4235_v40 = vpop.permute.xlu1 %1062  ;;  %v810_v41 = vpop.permute.xlu2 %809 }
 0x212   : > { %v841_v45 = vsel %vm828_vm10, %v840_v38, %v810_v41  ;;  %v842_v46 = vrot.slane %v810_v41, 4  ;;  %v816_v47 = vpop.permute.xlu0 %815 }
 0x213   : > { %v847_v48 = vperm.slane %v841_v45, %v4233_v39  ;;  %v827_v49 = vrot.slane %v816_v47, 4  ;;  %v831_v50 = vsel %vm828_vm10, %v816_v47, %v830_v42 }
 0x214   : > { %v843_v51 = vsel %vm828_vm10, %v822_v34, %v842_v46  ;;  %v839_v52 = vperm.slane %v831_v50, %v4233_v39 }
 0x215   : > { %v851_v53 = vperm.slane %v843_v51, %v4233_v39  ;;  %v852_v54 = vrot.slane %v847_v48, 4  ;;  %v829_v56 = vsel %vm828_vm10, %v827_v49, %v755_v31  ;;  %v1070_v31 = vrot.slane %v4202_v32, 4 }
 0x216   : > { %v835_v57 = vperm.slane %v829_v56, %v4233_v39  ;;  %v866_v58 = vrot.slane %v839_v52, 4  ;;  %v1075_v32 = vperm.slane %v1069_v43, %v4233_v39 }
 0x217   : > { %v864_v59 = vrot.slane %v851_v53, 4  ;;  %v1071_v44 = vsel %vm828_vm10, %v4229_v33, %v1070_v31 }
 0x218   : > { %v853_v60 = vsel %vm828_vm10, %v852_v54, %v835_v57  ;;  %v854_v61 = vrot.slane %v835_v57, 4  ;;  %v867_v62 = vsel %vm828_vm10, %v851_v53, %v866_v58  ;;  %v1079_v33 = vperm.slane %v1071_v44, %v4233_v39 }
 0x219   : > { %v859_v63 = vperm.slane %v853_v60, %v4243_v55  ;;  %v865_v0 = vsel %vm828_vm10, %v864_v59, %v839_v52  ;;  %v875_v1 = vperm.slane %v867_v62, %v4243_v55  ;;  %v1059_v2 = vpop.permute.xlu1 %1058  ;;  %v1080_v52 = vrot.slane %v4235_v40, 4 }
 0x21a   : > { %v855_v4 = vsel %vm828_vm10, %v847_v48, %v854_v61  ;;  %v871_v5 = vperm.slane %v865_v0, %v4243_v55  ;;  %v1124_v21 = vrot.slane %v1059_v2, 4  ;;  %v1127_v22 = vsel %vm828_vm10, %v1059_v2, %v1126_v14 }
 0x21b   : > { %v863_v6 = vperm.slane %v855_v4, %v4243_v55  ;;  %v882_v7 = vrot.slane %v875_v1, 4  ;;  %v876_v9 = vrot.slane %v859_v63, 4  ;;  %v1135_v34 = vperm.slane %v1127_v22, %v4233_v39 }
 0x21c   : > { %v880_v8 = vrot.slane %v871_v5, 4  ;;  %v1125_v38 = vsel %vm828_vm10, %v1124_v21, %v4211_v20  ;;  %v1094_v62 = vrot.slane %v1075_v32, 4 }
 0x21d   : > { %v878_v10 = vrot.slane %v863_v6, 4  ;;  %v883_v11 = vsel %vm828_vm10, 0.0, %v882_v7  ;;  %v877_v24 = vsel %vm828_vm10, 0.0, %v876_v9  ;;  %v951_v25 = vsel %vm828_vm10, %v882_v7, %v871_v5 }
 0x21e   : > { %v881_v12 = vsel %vm828_vm10, 0.0, %v880_v8  ;;  %v956_v13 = vrot.slane %v883_v11, 4  ;;  %v4279_v41 = vperm.slane %v951_v25, %v4233_v39  ;;  %v1131_v49 = vperm.slane %v1125_v38, %v4233_v39 }
 0x21f   : > { %v879_v17 = vsel %vm828_vm10, 0.0, %v878_v10  ;;  %v940_v36 = vsel %vm828_vm10, %v878_v10, %v859_v63  ;;  %v1162_v50 = vrot.slane %v1135_v34, 4  ;;  %v1106_v63 = vrot.slane %v1079_v33, 4 }
 0x220   : > { %v945_v18 = vrot.slane %v879_v17, 4  ;;  %v957_v19 = vsel %vm828_vm10, %v956_v13, %v881_v12  ;;  %v4291_v20 = vperm.slane %v940_v36, %v4233_v39  ;;  %v1150_v58 = vrot.slane %v1131_v49, 4  ;;  %v824_v17 = vpop.permute.xlu2 %823 }
 0x221   : > { %v4266_v26 = vperm.slane %v957_v19, %v4233_v39  ;;  %v1065_v27 = vpop.permute.xlu1 %1064  ;;  %v896_v36 = vrot.slane %v824_v17, 4 }
 0x222   : > { %v1136_v28 = vrot.slane %v1065_v27, 4  ;;  %v1139_v29 = vsel %vm828_vm10, %v1065_v27, %v1138_v16  ;;  %v946_v30 = vsel %vm828_vm10, %v945_v18, %v877_v24 }
 0x223   : > { %v4274_v37 = vperm.slane %v946_v30, %v4233_v39  ;;  %v974_v42 = vrot.slane %v4266_v26, 4  ;;  %v1147_v45 = vperm.slane %v1139_v29, %v4233_v39 }
 0x224   : > { %v1137_v47 = vsel %vm828_vm10, %v1136_v28, %v4231_v35 }
 0x225   : > { %v962_v46 = vrot.slane %v4274_v37, 4  ;;  %v975_v48 = vsel %vm828_vm10, %v974_v42, %v4279_v41  ;;  %v1143_v35 = vperm.slane %v1137_v47, %v4233_v39  ;;  %v1163_v53 = vsel %vm828_vm10, %v1147_v45, %v1162_v50 }
 0x226   : > { %v4304_v56 = vperm.slane %v975_v48, %v4243_v55  ;;  %v1160_v57 = vrot.slane %v1147_v45, 4  ;;  %v1171_v0 = vperm.slane %v1163_v53, %v4243_v55 }
 0x227   : > { %v963_v51 = vsel %vm828_vm10, %v962_v46, %v4291_v20  ;;  %v1148_v2 = vrot.slane %v1143_v35, 4  ;;  %v1151_v4 = vsel %vm828_vm10, %v1143_v35, %v1150_v58  ;;  %v886_v35 = vrot.slane %v4209_v15, 4 }
 0x228   : > { %v4308_v61 = vperm.slane %v963_v51, %v4243_v55  ;;  %v986_v6 = vrot.slane %v4304_v56, 4  ;;  %v1161_v7 = vsel %vm828_vm10, %v1160_v57, %v1135_v34  ;;  %v1159_v13 = vperm.slane %v1151_v4, %v4243_v55 }
 0x229   : > { %v1051_v54 = vpop.permute.xlu1 %1050  ;;  %v4330_v18 = vperm.slane %v1161_v7, %v4243_v55  ;;  %v1149_v24 = vsel %vm828_vm10, %v1148_v2, %v1131_v49  ;;  %v1178_v25 = vrot.slane %v1171_v0, 4 }
 0x22a   : > { %v1081_v59 = vsel %vm828_vm10, %v1080_v52, %v1051_v54  ;;  %v1082_v60 = vrot.slane %v1051_v54, 4  ;;  %v4322_v12 = vsel %vm828_vm10, %v986_v6, %v4308_v61  ;;  %v4344_v47 = vperm.slane %v1149_v24, %v4243_v55  ;;  %v812_v52 = vpop.permute.xlu0 %811 }
 0x22b   : > { %v1087_v1 = vperm.slane %v1081_v59, %v4233_v39  ;;  %1576 = vrot.lane.b32.xlu1 %v4322_v12, %s3803_s4  ;;  %v1179_v48 = vsel %vm828_vm10, 0.0, %v1178_v25  ;;  %v4347_v50 = vrot.slane %v1159_v13, 4  ;;  %v897_v58 = vsel %vm828_vm10, %v896_v36, %v812_v52 }
 0x22c   : > { %v1083_v5 = vsel %vm828_vm10, %v4235_v40, %v1082_v60  ;;  %v1250_v59 = vrot.slane %v1179_v48, 4  ;;  %v903_v13 = vperm.slane %v897_v58, %v4233_v39  ;;  %v988_v58 = vrot.slane %v4308_v61, 4 }
 0x22d   : > { %v1091_v8 = vperm.slane %v1083_v5, %v4233_v39  ;;  %v1092_v9 = vrot.slane %v1087_v1, 4  ;;  %v1095_v10 = vsel %vm828_vm10, %v1087_v1, %v1094_v62  ;;  %v1172_v62 = vrot.slane %v4344_v47, 4 }
 0x22e   : > { %v1103_v11 = vperm.slane %v1095_v10, %v4243_v55  ;;  %v908_v48 = vrot.slane %v903_v13, 4  ;;  %v4424_v61 = vsel %vm828_vm10, %v4304_v56, %v988_v58 }
 0x22f   : > { %v1093_v14 = vsel %vm828_vm10, %v1092_v9, %v1075_v32  ;;  %v1104_v40 = vrot.slane %v1091_v8, 4  ;;  %v1107_v16 = vsel %vm828_vm10, %v1091_v8, %v1106_v63  ;;  %v1176_v32 = vrot.slane %v4330_v18, 4 }
 0x230   : > { %v1099_v19 = vperm.slane %v1093_v14, %v4243_v55  ;;  %v1115_v21 = vperm.slane %v1107_v16, %v4243_v55  ;;  %v1118_v22 = vrot.slane %v1103_v11, 4  ;;  %v898_v9 = vrot.slane %v812_v52, 4 }
 0x231   : > { %v818_v23 = vpop.permute.xlu1 %817  ;;  %v1105_v27 = vsel %vm828_vm10, %v1104_v40, %v1079_v33  ;;  %v1177_v2 = vsel %vm828_vm10, 0.0, %v1176_v32 }
 0x232   : > { %v884_v28 = vrot.slane %v818_v23, 4  ;;  %v1111_v29 = vperm.slane %v1105_v27, %v4243_v55  ;;  %v1116_v30 = vrot.slane %v1099_v19, 4  ;;  %v1119_v31 = vsel %vm828_vm10, 0.0, %v1118_v22 }
 0x233   : > { %v1122_v34 = vrot.slane %v1115_v21, 4  ;;  %v1180_v38 = vsel %vm828_vm10, %v1118_v22, %v1099_v19  ;;  %v1185_v42 = vrot.slane %v1119_v31, 4  ;;  %v887_v63 = vsel %vm828_vm10, %v818_v23, %v886_v35 }
 0x234   : > { %v1117_v43 = vsel %vm828_vm10, 0.0, %v1116_v30  ;;  %v1120_v44 = vrot.slane %v1111_v29, 4  ;;  %v885_v46 = vsel %vm828_vm10, %v884_v28, %v4209_v15  ;;  %v1184_v51 = vperm.slane %v1180_v38, %v4233_v39 }
 0x235   : > { %v1123_v45 = vsel %vm828_vm10, 0.0, %v1122_v34  ;;  %v891_v53 = vperm.slane %v885_v46, %v4233_v39  ;;  %v1186_v54 = vsel %vm828_vm10, %v1185_v42, %v1117_v43  ;;  %v1191_v57 = vsel %vm828_vm10, %v1122_v34, %v1111_v29 }
 0x236   : > { %v1196_v49 = vrot.slane %v1123_v45, 4  ;;  %v1121_v33 = vsel %vm828_vm10, 0.0, %v1120_v44  ;;  %v1190_v60 = vperm.slane %v1186_v54, %v4233_v39  ;;  %v1195_v0 = vperm.slane %v1191_v57, %v4233_v39 }
 0x237   : > { %v1175_v15 = vsel %vm828_vm10, 0.0, %v4347_v50  ;;  %v1204_v5 = vrot.slane %v1184_v51, 4  ;;  %v910_v6 = vrot.slane %v891_v53, 4  ;;  %v895_v10 = vperm.slane %v887_v63, %v4233_v39 }
 0x238   : > { %v1197_v1 = vsel %vm828_vm10, %v1196_v49, %v1121_v33  ;;  %v1216_v7 = vrot.slane %v1195_v0, 4  ;;  %v1202_v8 = vrot.slane %v1190_v60, 4  ;;  %v1239_v14 = vrot.slane %v1175_v15, 4 }
 0x239   : > { %v1201_v4 = vperm.slane %v1197_v1, %v4233_v39  ;;  %v1251_v40 = vsel %vm828_vm10, %v1250_v59, %v1177_v2  ;;  %v1205_v16 = vsel %vm828_vm10, %v1190_v60, %v1204_v5  ;;  %v1173_v22 = vsel %vm828_vm10, 0.0, %v1172_v62 }
 0x23a   : > { %v1203_v21 = vsel %vm828_vm10, %v1202_v8, %v1184_v51  ;;  %v911_v23 = vsel %vm828_vm10, %v903_v13, %v910_v6  ;;  %v899_v29 = vsel %vm828_vm10, %v824_v17, %v898_v9  ;;  %v922_v30 = vrot.slane %v895_v10, 4 }
 0x23b   : > { %v1214_v11 = vrot.slane %v1201_v4, 4  ;;  %v1217_v19 = vsel %vm828_vm10, %v1201_v4, %v1216_v7  ;;  %v1209_v27 = vperm.slane %v1203_v21, %v4243_v55  ;;  %v4382_v34 = vperm.slane %v1205_v16, %v4243_v55 }
 0x23c   : > { %v4375_v24 = vperm.slane %v1217_v19, %v4243_v55  ;;  %v1240_v42 = vsel %vm828_vm10, %v1239_v14, %v1173_v22  ;;  %v1245_v43 = vsel %vm828_vm10, %v1178_v25, %v4330_v18  ;;  %v919_v44 = vperm.slane %v911_v23, %v4243_v55 }
 0x23d   : > { %v1215_v28 = vsel %vm828_vm10, %v1214_v11, %v1195_v0  ;;  %v1228_v38 = vrot.slane %v1209_v27, 4  ;;  %v1255_v46 = vperm.slane %v1251_v40, %v4233_v39  ;;  %v907_v17 = vperm.slane %v899_v29, %v4233_v39 }
 0x23e   : > { %v1221_v31 = vperm.slane %v1215_v28, %v4243_v55  ;;  %v1230_v36 = vrot.slane %v4375_v24, 4  ;;  %v1244_v25 = vperm.slane %v1240_v42, %v4233_v39  ;;  %v909_v33 = vsel %vm828_vm10, %v908_v48, %v891_v53 }
 0x23f   : > { %v923_v51 = vsel %vm828_vm10, %v907_v17, %v922_v30  ;;  %v1249_v52 = vperm.slane %v1245_v43, %v4233_v39  ;;  %v1268_v35 = vrot.slane %v1255_v46, 4  ;;  %v934_v54 = vrot.slane %v919_v44, 4 }
 0x240   : > { %v1226_v45 = vrot.slane %v1221_v31, 4  ;;  %v4393_v49 = vsel %vm828_vm10, %v1230_v36, %v4382_v34  ;;  %v4396_v32 = vsel %vm828_vm10, %v1221_v31, %v1228_v38  ;;  %v1234_v57 = vsel %vm828_vm10, %v4347_v50, %v4344_v47 }
 0x241   : > { %1697 = vrot.lane.b32.xlu0 %v4393_v49, %s3803_s4  ;;  %1693 = vrot.lane.b32.xlu1 %v4396_v32, %s3803_s4  ;;  %v915_v59 = vperm.slane %v909_v33, %v4243_v55  ;;  %v931_v60 = vperm.slane %v923_v51, %v4243_v55  ;;  %v1256_v53 = vrot.slane %v1244_v25, 4  ;;  %v1269_v62 = vsel %vm828_vm10, %v1268_v35, %v1249_v52 }
 0x242   : > { %v4403_v18 = vsel %vm828_vm10, %v1226_v45, %v1209_v27  ;;  %v920_v63 = vrot.slane %v907_v17, 4  ;;  %v1238_v0 = vperm.slane %v1234_v57, %v4233_v39  ;;  %v1270_v1 = vrot.slane %v1249_v52, 4 }
 0x243   : > { %1689 = vrot.lane.b32.xlu2 %v4403_v18, %s3803_s4  ;;  %v935_v15 = vsel %vm828_vm10, 0.0, %v934_v54  ;;  %v1641_v2 = vsub.f32 0.0, %v4403_v18  ;;  %v1645_v47 = vsub.f32 0.0, %v4393_v49  ;;  %v1275_v50 = vperm.slane %v1269_v62, %v4243_v55 }
 0x244   : > { %v921_v4 = vsel %vm828_vm10, %v920_v63, %v895_v10  ;;  %v932_v5 = vrot.slane %v915_v59, 4  ;;  %v938_v6 = vrot.slane %v931_v60, 4  ;;  %v1257_v7 = vsel %vm828_vm10, %v1256_v53, %v1238_v0 }
 0x245   : > { %v999_v8 = vrot.slane %v935_v15, 4  ;;  %v1258_v9 = vrot.slane %v1238_v0, 4  ;;  %v1271_v56 = vsel %vm828_vm10, %v1255_v46, %v1270_v1  ;;  %v927_v10 = vperm.slane %v921_v4, %v4243_v55 }
 0x246   : > { %v1263_v11 = vperm.slane %v1257_v7, %v4243_v55  ;;  %v1280_v13 = vrot.slane %v1275_v50, 4  ;;  %v976_v14 = vrot.slane %v4279_v41, 4  ;;  %v933_v40 = vsel %vm828_vm10, 0.0, %v932_v5 }
 0x247   : > { %v939_v16 = vsel %vm828_vm10, 0.0, %v938_v6  ;;  %v4440_v19 = vperm.slane %v1271_v56, %v4243_v55  ;;  %v1000_v21 = vsel %vm828_vm10, %v999_v8, %v933_v40  ;;  %v1259_v22 = vsel %vm828_vm10, %v1244_v25, %v1258_v9 }
 0x248   : > { %v964_v23 = vrot.slane %v4291_v20, 4  ;;  %v936_v27 = vrot.slane %v927_v10, 4  ;;  %v1528_v28 = vsub.f32 0.0, %v4322_v12  ;;  %v1010_v29 = vrot.slane %v939_v16, 4 }
 0x249   : > { %1580 = vrot.lane.b32.xlu0 %v4424_v61, %s3803_s4  ;;  %1657 = vrot.lane.b32.xlu1 %v1641_v2, %s3804_s7  ;;  %v4447_v30 = vsel %vm828_vm10, %v1280_v13, %v1263_v11  ;;  %v1282_v41 = vrot.slane %v1263_v11, 4  ;;  %v1530_v31 = vsub.f32 0.0, %v4424_v61  ;;  %v1004_v36 = vperm.slane %v1000_v21, %v4233_v39 }
 0x24a   : > { %v1267_v38 = vperm.slane %v1259_v22, %v4243_v55  ;;  %v1284_v20 = vrot.slane %v4440_v19, 4  ;;  %v977_v42 = vsel %vm828_vm10, %v4266_v26, %v976_v14  ;;  %v937_v43 = vsel %vm828_vm10, 0.0, %v936_v27 }
 0x24b   : > { %1665 = vrot.lane.b32.xlu2 %v1645_v47, %s3804_s7  ;;  %v994_v44 = vsel %vm828_vm10, %v934_v54, %v915_v59  ;;  %v1011_v45 = vsel %vm828_vm10, %v1010_v29, %v937_v43  ;;  %v4463_v46 = vsel %vm828_vm10, %v1275_v50, %v1282_v41  ;;  %v4466_v17 = vperm.slane %v977_v42, %v4243_v55  ;;  %v4542_v41 = vpop.f32.mrf.mxu2 }
 0x24c   : > { %v4469_v48 = vsel %vm828_vm10, %v1284_v20, %v1267_v38  ;;  %v965_v26 = vsel %vm828_vm10, %v4274_v37, %v964_v23  ;;  %v1016_v25 = vrot.slane %v1004_v36, 4  ;;  %v1015_v33 = vperm.slane %v1011_v45, %v4233_v39 }
 0x24d   : > { %v1644_v51 = vsub.f32 0.0, %v4463_v46  ;;  %v1643_v52 = vsub.f32 0.0, %v4396_v32  ;;  %v998_v35 = vperm.slane %v994_v44, %v4233_v39  ;;  %v1646_v54 = vsub.f32 0.0, %v4469_v48 }
 0x24e   : > { %v973_v57 = vperm.slane %v965_v26, %v4243_v55  ;;  %v990_v58 = vrot.slane %v4466_v17, 4  ;;  %v1005_v59 = vsel %vm828_vm10, %v938_v6, %v927_v10  ;;  %v1028_v60 = vrot.slane %v1015_v33, 4 }
 0x24f   : > { %v1017_v37 = vsel %vm828_vm10, %v1016_v25, %v998_v35  ;;  %v1009_v63 = vperm.slane %v1005_v59, %v4233_v39  ;;  %v1642_v50 = vsub.f32 0.0, %v4447_v30  ;;  %v1018_v7 = vrot.slane %v998_v35, 4 }
 0x250   : > { %v4486_v53 = vsel %vm828_vm10, %v990_v58, %v973_v57  ;;  %v1023_v62 = vperm.slane %v1017_v37, %v4243_v55  ;;  %v1286_v13 = vrot.slane %v1267_v38, 4  ;;  %v1232_v27 = vrot.slane %v4382_v34, 4  ;;  %v4568_v37 = vld [vmem:[#allocation9 + $0x8] sm:$0xff] }
 0x251   : > { %1691 = vrot.lane.b32.xlu1 %v4447_v30, %s3803_s4  ;;  %1544 = vrot.lane.b32.xlu0 %v1528_v28, %s3804_s7  ;;  %v1532_v0 = vsub.f32 0.0, %v4486_v53  ;;  %v1029_v1 = vsel %vm828_vm10, %v1028_v60, %v1009_v63  ;;  %v1030_v47 = vrot.slane %v1009_v63, 4  ;;  %v1019_v10 = vsel %vm828_vm10, %v1004_v36, %v1018_v7  ;;  %v4571_v63 = vld [vmem:[#allocation7 + $0x8] sm:$0xff] }
 0x252   : > { %v1042_v15 = vrot.slane %v1023_v62, 4  ;;  %v1035_v2 = vperm.slane %v1029_v1, %v4243_v55  ;;  %v1027_v14 = vperm.slane %v1019_v10, %v4243_v55  ;;  %v4522_v16 = vsel %vm828_vm10, %v4440_v19, %v1286_v13 }
 0x253   : > { %1548 = vrot.lane.b32.xlu2 %v1530_v31, %s3804_s7  ;;  %v1031_v8 = vsel %vm828_vm10, %v1015_v33, %v1030_v47  ;;  %v1648_v22 = vsub.f32 0.0, %v4522_v16  ;;  %v4536_v19 = vsel %vm828_vm10, %v4375_v24, %v1232_v27  ;;  %v992_v34 = vrot.slane %v973_v57, 4  ;;  %v4559_v20 = vpop.f32.mrf.mxu2 }
 0x254   : > { %v4499_v4 = vsel %vm828_vm10, %v1035_v2, %v1042_v15  ;;  %v1040_v6 = vrot.slane %v1035_v2, 4  ;;  %v1039_v56 = vperm.slane %v1031_v8, %v4243_v55  ;;  %v1647_v28 = vsub.f32 0.0, %v4536_v19  ;;  %v4575_v2 = vld [vmem:[#allocation9] sm:$0xff] }
 0x255   : > { %v1531_v5 = vsub.f32 0.0, %v4499_v4  ;;  %v1046_v29 = vrot.slane %v1027_v14, 4  ;;  %v4551_v24 = vsel %vm828_vm10, %v4466_v17, %v992_v34  ;;  %v3365_v42 = vpack.i.bf16 %v4542_v41, %v4559_v20 }
 0x256   : > { %v4509_v9 = vsel %vm828_vm10, %v1040_v6, %v1023_v62  ;;  %v1044_v40 = vrot.slane %v1039_v56, 4  ;;  %v1534_v38 = vsub.f32 0.0, %v4551_v24  ;;  %v4581_v6 = vld [vmem:[#allocation7] sm:$0xff] }
 0x257   : > { %v1529_v11 = vsub.f32 0.0, %v4509_v9  ;;  %v4547_v31 = vsel %vm828_vm10, %v1039_v56, %v1046_v29  ;;  %v1611_v56 = vmul.f32 %v4424_v61, %v4581_v6  ;;  %v1723_v10 = vmul.f32 %v4396_v32, %v4581_v6 }
 0x258   : > { %v4525_v21 = vsel %vm828_vm10, %v1044_v40, %v1027_v14  ;;  %v1535_v36 = vsub.f32 0.0, %v4547_v31  ;;  %v1726_v61 = vmul.f32 %v4469_v48, %v4571_v63  ;;  %v1725_v34 = vmul.f32 %v4393_v49, %v4581_v6 }
 0x259   : > { %1663 = vrot.lane.b32.xlu1 %v1644_v51, %s3804_s7  ;;  %1661 = vrot.lane.b32.xlu0 %v1643_v52, %s3804_s7  ;;  %v1533_v23 = vsub.f32 0.0, %v4525_v21 }
 0x25b   : > { %1667 = vrot.lane.b32.xlu2 %v1646_v54, %s3804_s7 }
 0x261   : > { %1552 = vrot.lane.b32.xlu1 %v1532_v0, %s3804_s7  ;;  %1699 = vrot.lane.b32.xlu0 %v4469_v48, %s3803_s4 }
 0x263   : > { %1695 = vrot.lane.b32.xlu2 %v4463_v46, %s3803_s4 }
 0x269   : > { %1659 = vrot.lane.b32.xlu0 %v1642_v50, %s3804_s7  ;;  %1550 = vrot.lane.b32.xlu1 %v1531_v5, %s3804_s7  ;;  %v1724_v50 = vmul.f32 %v4463_v46, %v4571_v63 }
 0x26b   : > { %1582 = vrot.lane.b32.xlu2 %v4499_v4, %s3803_s4 }
 0x271   : > { %1578 = vrot.lane.b32.xlu1 %v4509_v9, %s3803_s4  ;;  %1546 = vrot.lane.b32.xlu0 %v1529_v11, %s3804_s7 }
 0x273   : > { %1584 = vrot.lane.b32.xlu2 %v4486_v53, %s3803_s4 }
 0x279   : > { %1671 = vrot.lane.b32.xlu1 %v1648_v22, %s3804_s7  ;;  %1586 = vrot.lane.b32.xlu0 %v4525_v21, %s3803_s4 }
 0x27b   : > { %1554 = vrot.lane.b32.xlu2 %v1533_v23, %s3804_s7 }
 0x281   : > { %1701 = vrot.lane.b32.xlu1 %v4536_v19, %s3803_s4  ;;  %1669 = vrot.lane.b32.xlu0 %v1647_v28, %s3804_s7 }
 0x283   : > { %1703 = vrot.lane.b32.xlu2 %v4522_v16, %s3803_s4 }
 0x289   : > { %1558 = vrot.lane.b32.xlu1 %v1535_v36, %s3804_s7  ;;  %1588 = vrot.lane.b32.xlu0 %v4551_v24, %s3803_s4 }
 0x28b   : > { %1556 = vrot.lane.b32.xlu2 %v1534_v38, %s3804_s7 }
 0x291   : > { %3366 = vrot.lane.b32.xlu1 %v3365_v42, %s3799_s11  ;;  %3361 = vrot.lane.b32.xlu0 %v3365_v42, %s3800_s5 }
 0x293   : > { %1590 = vrot.lane.b32.xlu2 %v4547_v31, %s3803_s4 }
 0x29b   : > { %3371 = vrot.lane.b32.xlu2 %v3365_v42, %s3798_s8 }
 0x29d   : > { %v1690_v43 = vpop.permute.xlu2 %1689  ;;  %v1577_v45 = vpop.permute.xlu1 %1576 }
 0x2a5   : > { %v1666_v44 = vpop.permute.xlu2 %1665 }
 0x2ad   : > { %v1549_v17 = vpop.permute.xlu2 %1548 }
 0x2b3   : > { %v1694_v26 = vpop.permute.xlu1 %1693  ;;  %v1698_v25 = vpop.permute.xlu0 %1697 }
 0x2b4   : > { %v1717_v40 = vsel %vm1600_vm11, %v1666_v44, %v1698_v25  ;;  %v1722_v25 = vmul.f32 %v4447_v30, %v4571_v63  ;;  %v1609_v30 = vmul.f32 %v4322_v12, %v4581_v6 }
 0x2b5   : > { %v1668_v33 = vpop.permute.xlu2 %1667  ;;  %v1733_v32 = vmul.f32 %v1717_v40, %v4575_v2 }
 0x2b7   : > { %v1741_v44 = vadd.f32 %v1733_v32, %v1725_v34 }
 0x2bb   : > { %v1658_v51 = vpop.permute.xlu1 %1657  ;;  %v1581_v52 = vpop.permute.xlu0 %1580 }
 0x2bc   : > { %v1603_v59 = vsel %vm1600_vm11, %v1549_v17, %v1581_v52  ;;  %v1713_v17 = vsel %vm1600_vm11, %v1658_v51, %v1690_v43 }
 0x2bd   : > { %v1696_v35 = vpop.permute.xlu2 %1695  ;;  %v1619_v5 = vmul.f32 %v1603_v59, %v4575_v2  ;;  %v1729_v51 = vmul.f32 %v1713_v17, %v4575_v2  ;;  %v1615_v17 = vmul.f32 %v4551_v24, %v4581_v6  ;;  %v1616_v24 = vmul.f32 %v4547_v31, %v4571_v63 }
 0x2bf   : > { %v1627_v11 = vadd.f32 %v1619_v5, %v1611_v56  ;;  %v1610_v5 = vmul.f32 %v4509_v9, %v4571_v63 }
 0x2c1   : > { %v1635_v28 = vmul.f32 0.17677669, %v1627_v11 }
 0x2c3   : > { %v1692_v54 = vpop.permute.xlu1 %1691  ;;  %v1545_v57 = vpop.permute.xlu0 %1544 }
 0x2c4   : > { %v1601_v36 = vsel %vm1600_vm11, %v1545_v57, %v1577_v45  ;;  %v1612_v45 = vmul.f32 %v4499_v4, %v4571_v63 }
 0x2c5   : > { %v1583_v58 = vpop.permute.xlu2 %1582  ;;  %v1617_v52 = vmul.f32 %v1601_v36, %v4575_v2 }
 0x2cb   : > { %v1664_v60 = vpop.permute.xlu1 %1663  ;;  %v1662_v62 = vpop.permute.xlu0 %1661 }
 0x2cc   : > { %v1716_v0 = vsel %vm1600_vm11, %v1664_v60, %v1696_v35  ;;  %v1715_v1 = vsel %vm1600_vm11, %v1662_v62, %v1694_v26  ;;  %v1625_v60 = vadd.f32 %v1617_v52, %v1609_v30  ;;  %v1613_v62 = vmul.f32 %v4486_v53, %v4581_v6 }
 0x2cd   : > { %v1585_v15 = vpop.permute.xlu2 %1584  ;;  %v1732_v47 = vmul.f32 %v1716_v0, %v4568_v37  ;;  %v1731_v7 = vmul.f32 %v1715_v1, %v4575_v2 }
 0x2cf   : > { %v1740_v8 = vadd.f32 %v1732_v47, %v1724_v50  ;;  %v1739_v46 = vadd.f32 %v1731_v7, %v1723_v10 }
 0x2d1   : > { %3162 = vmatpush.xpose.msk.msra.mxu3 %vm1747_vm12, %v1740_v8 }
 0x2d3   : > { %v1553_v13 = vpop.permute.xlu1 %1552  ;;  %v1700_v14 = vpop.permute.xlu0 %1699 }
 0x2d4   : > { %v1718_v22 = vsel %vm1600_vm11, %v1668_v33, %v1700_v14  ;;  %v1605_v43 = vsel %vm1600_vm11, %v1553_v13, %v1585_v15  ;;  %v1614_v14 = vmul.f32 %v4525_v21, %v4571_v63 }
 0x2d5   : > { %v1734_v23 = vmul.f32 %v1718_v22, %v4568_v37  ;;  %3163 = vmatpush.xpose.msk.msra.mxu3 %vm1747_vm12, %v1739_v46  ;;  %v1555_v27 = vpop.permute.xlu2 %1554  ;;  %v1621_v59 = vmul.f32 %v1605_v43, %v4575_v2  ;;  %v1728_v46 = vmul.f32 %v4522_v16, %v4571_v63  ;;  %v1727_v16 = vmul.f32 %v4536_v19, %v4581_v6 }
 0x2d6   : > { %v1310_v43 = vrot.slane %v4542_v41, 4 }
 0x2d7   : > { %v1742_v29 = vadd.f32 %v1734_v23, %v1726_v61  ;;  %v1629_v47 = vadd.f32 %v1621_v59, %v1613_v62 }
 0x2d8   : > { %3164 = vmatmul.msk.f32.vlgmr.msra.gmra.mxu3 %vm1747_vm12, %v1635_v28 }
 0x2d9   : > { %3166 = vmatpush.xpose.msk.msrb.mxu3 %vm1747_vm12, %v1742_v29  ;;  %v1637_v7 = vmul.f32 0.17677669, %v1629_v47 }
 0x2db   : > { %v1551_v38 = vpop.permute.xlu1 %1550  ;;  %v1660_v42 = vpop.permute.xlu0 %1659 }
 0x2dc   : > { %v1604_v48 = vsel %vm1600_vm11, %v1551_v38, %v1583_v58  ;;  %v1714_v26 = vsel %vm1600_vm11, %v1660_v42, %v1692_v54  ;;  %v1721_v58 = vmul.f32 %v4403_v18, %v4581_v6  ;;  %v1633_v18 = vmul.f32 0.17677669, %v1625_v60 }
 0x2dd   : > { %v1620_v33 = vmul.f32 %v1604_v48, %v4568_v37  ;;  %v1730_v49 = vmul.f32 %v1714_v26, %v4568_v37  ;;  %3167 = vmatpush.xpose.msk.msrb.mxu3 %vm1747_vm12, %v1741_v44  ;;  %v1704_v57 = vpop.permute.xlu2 %1703 }
 0x2de   : > { %v1737_v15 = vadd.f32 %v1729_v51, %v1721_v58  ;;  %v1366_v51 = vrot.slane %v4559_v20, 4 }
 0x2df   : > { %v1738_v35 = vadd.f32 %v1730_v49, %v1722_v25  ;;  %v1628_v54 = vadd.f32 %v1620_v33, %v1612_v45 }
 0x2e1   : > { %3158 = vmatpush.xpose.msk.msrb.mxu0 %vm1747_vm12, %v1738_v35  ;;  %v1636_v4 = vmul.f32 0.17677669, %v1628_v54 }
 0x2e3   : > { %v1579_v0 = vpop.permute.xlu1 %1578  ;;  %3165 = vmatmul.msk.f32.gmra.mxu3 %vm1747_vm12, %v1636_v4  ;;  %v1547_v1 = vpop.permute.xlu0 %1546 }
 0x2e4   : > { %v1602_v12 = vsel %vm1600_vm11, %v1547_v1, %v1579_v0 }
 0x2e5   : > { %3159 = vmatpush.xpose.msk.msrb.mxu0 %vm1747_vm12, %v1737_v15  ;;  %v1618_v50 = vmul.f32 %v1602_v12, %v4568_v37  ;;  %v1557_v53 = vpop.permute.xlu2 %1556 }
 0x2e7   : > { %v1626_v8 = vadd.f32 %v1618_v50, %v1610_v5 }
 0x2e8   : > { %3160 = vmatmul.msk.f32.vlgmr.msrb.gmra.mxu0 %vm1747_vm12, %v1633_v18 }
 0x2e9   : > { %v1634_v22 = vmul.f32 0.17677669, %v1626_v8 }
 0x2eb   : > { %v1672_v56 = vpop.permute.xlu1 %1671  ;;  %3168 = vmatmul.msk.f32.vlgmr.msrb.gmra.mxu3 %vm1747_vm12, %v1637_v7  ;;  %v1587_v10 = vpop.permute.xlu0 %1586 }
 0x2ec   : > { %v1720_v11 = vsel %vm1600_vm11, %v1672_v56, %v1704_v57  ;;  %v1606_v13 = vsel %vm1600_vm11, %v1555_v27, %v1587_v10 }
 0x2ed   : > { %v1736_v9 = vmul.f32 %v1720_v11, %v4568_v37  ;;  %v1622_v40 = vmul.f32 %v1606_v13, %v4568_v37  ;;  %v1591_v21 = vpop.permute.xlu2 %1590 }
 0x2ef   : > { %v1744_v23 = vadd.f32 %v1736_v9, %v1728_v46  ;;  %v1630_v61 = vadd.f32 %v1622_v40, %v1614_v14 }
 0x2f0   : > { %3161 = vmatmul.msk.f32.gmra.mxu0 %vm1747_vm12, %v1634_v22 }
 0x2f1   : > { %3170 = vmatpush.xpose.msk.msra.mxu0 %vm1747_vm12, %v1744_v23  ;;  %v1638_v28 = vmul.f32 0.17677669, %v1630_v61 }
 0x2f3   : > { %v1702_v32 = vpop.permute.xlu1 %1701  ;;  %3169 = vmatmul.msk.f32.gmra.mxu3 %vm1747_vm12, %v1638_v28  ;;  %v1670_v27 = vpop.permute.xlu0 %1669 }
 0x2f4   : > { %v1719_v29 = vsel %vm1600_vm11, %v1670_v27, %v1702_v32 }
 0x2f5   : > { %v1735_v34 = vmul.f32 %v1719_v29, %v4575_v2  ;;  %v3372_v26 = vpop.permute.xlu2 %3371 }
 0x2f6   : > { %v3374_v49 = vunpack.i.h.bf16 %v3372_v26  ;;  %v3373_v19 = vunpack.i.l.bf16 %v3372_v26 }
 0x2f7   : > { %v1743_v36 = vadd.f32 %v1735_v34, %v1727_v16 }
 0x2f8   : > { %v1320_v58 = vrot.slane %v3374_v49, 4  ;;  %v1376_v59 = vrot.slane %v3373_v19, 4 }
 0x2f9   : > { %3171 = vmatpush.xpose.msk.msra.mxu0 %vm1747_vm12, %v1743_v36 }
 0x2fb   : > { %v1559_v38 = vpop.permute.xlu1 %1558  ;;  %v1589_v42 = vpop.permute.xlu0 %1588 }
 0x2fc   : > { %v1607_v44 = vsel %vm1600_vm11, %v1557_v53, %v1589_v42  ;;  %v1608_v25 = vsel %vm1600_vm11, %v1559_v38, %v1591_v21 }
 0x2fd   : > { %v1623_v48 = vmul.f32 %v1607_v44, %v4575_v2  ;;  %v1624_v45 = vmul.f32 %v1608_v25, %v4568_v37 }
 0x2ff   : > { %v1631_v33 = vadd.f32 %v1623_v48, %v1615_v17  ;;  %v1632_v4 = vadd.f32 %v1624_v45, %v1616_v24 }
 0x301   : > { %v1639_v52 = vmul.f32 0.17677669, %v1631_v33  ;;  %v1640_v8 = vmul.f32 0.17677669, %v1632_v4 }
 0x303   : > { %v3367_v35 = vpop.permute.xlu1 %3366  ;;  %3172 = vmatmul.msk.f32.vlgmr.msra.gmra.mxu0 %vm1747_vm12, %v1639_v52  ;;  %v3362_v54 = vpop.permute.xlu0 %3361 }
 0x304   : > { %v3369_v2 = vunpack.i.h.bf16 %v3367_v35  ;;  %v3368_v6 = vunpack.i.l.bf16 %v3367_v35  ;;  %v3364_v30 = vunpack.i.h.bf16 %v3362_v54  ;;  %v3363_v57 = vunpack.i.l.bf16 %v3362_v54 }
 0x306   : > { %v1308_v37 = vrot.slane %v3369_v2, 4  ;;  %v1311_v60 = vsel %vm828_vm10, %v3369_v2, %v1310_v43  ;;  %v1364_v62 = vrot.slane %v3368_v6, 4  ;;  %v1367_v0 = vsel %vm828_vm10, %v3368_v6, %v1366_v51 }
 0x307   : > { %v1319_v1 = vperm.slane %v1311_v60, %v4233_v39  ;;  %v1375_v15 = vperm.slane %v1367_v0, %v4233_v39  ;;  %v1321_v12 = vsel %vm828_vm10, %v1320_v58, %v3364_v30  ;;  %v1322_v31 = vrot.slane %v3364_v30, 4 }
 0x308   : > { %v1309_v63 = vsel %vm828_vm10, %v1308_v37, %v4542_v41  ;;  %v1365_v47 = vsel %vm828_vm10, %v1364_v62, %v4559_v20  ;;  %v1327_v18 = vperm.slane %v1321_v12, %v4233_v39  ;;  %v1377_v50 = vsel %vm828_vm10, %v1376_v59, %v3363_v57 }
 0x309   : > { %v1315_v5 = vperm.slane %v1309_v63, %v4233_v39  ;;  %v1346_v7 = vrot.slane %v1319_v1, 4  ;;  %v1371_v53 = vperm.slane %v1365_v47, %v4233_v39  ;;  %v1323_v56 = vsel %vm828_vm10, %v3374_v49, %v1322_v31 }
 0x30a   : > { %v1332_v10 = vrot.slane %v1327_v18, 4  ;;  %v1378_v11 = vrot.slane %v3363_v57, 4  ;;  %v1383_v13 = vperm.slane %v1377_v50, %v4233_v39  ;;  %v1331_v20 = vperm.slane %v1323_v56, %v4233_v39 }
 0x30b   : > { %v1334_v41 = vrot.slane %v1315_v5, 4  ;;  %v1390_v14 = vrot.slane %v1371_v53, 4  ;;  %3173 = vmatmul.msk.f32.gmra.mxu0 %vm1747_vm12, %v1640_v8  ;;  %v1402_v46 = vrot.slane %v1375_v15, 4 }
 0x30c   : > { %v1333_v9 = vsel %vm828_vm10, %v1332_v10, %v1315_v5  ;;  %v1379_v40 = vsel %vm828_vm10, %v3373_v19, %v1378_v11  ;;  %v1388_v22 = vrot.slane %v1383_v13, 4  ;;  %v1344_v28 = vrot.slane %v1331_v20, 4 }
 0x30d   : > { %v1335_v23 = vsel %vm828_vm10, %v1327_v18, %v1334_v41  ;;  %v1339_v61 = vperm.slane %v1333_v9, %v4243_v55  ;;  %v1347_v32 = vsel %vm828_vm10, %v1331_v20, %v1346_v7  ;;  %v1387_v29 = vperm.slane %v1379_v40, %v4233_v39 }
 0x30e   : > { %v1343_v27 = vperm.slane %v1335_v23, %v4243_v55  ;;  %v1355_v21 = vperm.slane %v1347_v32, %v4243_v55  ;;  %v1389_v16 = vsel %vm828_vm10, %v1388_v22, %v1371_v53  ;;  %v1345_v34 = vsel %vm828_vm10, %v1344_v28, %v1319_v1 }
 0x30f   : > { %v1356_v36 = vrot.slane %v1339_v61, 4  ;;  %v1391_v38 = vsel %vm828_vm10, %v1383_v13, %v1390_v14  ;;  %v1395_v42 = vperm.slane %v1389_v16, %v4243_v55  ;;  %v1351_v44 = vperm.slane %v1345_v34, %v4243_v55 }
 0x310   : > { %v1358_v17 = vrot.slane %v1343_v27, 4  ;;  %v1362_v48 = vrot.slane %v1355_v21, 4  ;;  %v1399_v26 = vperm.slane %v1391_v38, %v4243_v55  ;;  %v1400_v25 = vrot.slane %v1387_v29, 4 }
 0x311   : > { %v1403_v33 = vsel %vm828_vm10, %v1387_v29, %v1402_v46  ;;  %v1412_v49 = vrot.slane %v1395_v42, 4  ;;  %v1357_v19 = vsel %vm828_vm10, 0.0, %v1356_v36  ;;  %v1360_v52 = vrot.slane %v1351_v44, 4 }
 0x312   : > { %v1359_v45 = vsel %vm828_vm10, 0.0, %v1358_v17  ;;  %v1363_v43 = vsel %vm828_vm10, 0.0, %v1362_v48  ;;  %v1411_v51 = vperm.slane %v1403_v33, %v4243_v55  ;;  %v1401_v24 = vsel %vm828_vm10, %v1400_v25, %v1375_v15 }
 0x313   : > { %v1425_v35 = vrot.slane %v1359_v45, 4  ;;  %v1436_v54 = vrot.slane %v1363_v43, 4  ;;  %v1414_v2 = vrot.slane %v1399_v26, 4  ;;  %v1407_v6 = vperm.slane %v1401_v24, %v4243_v55 }
 0x314   : > { %v1418_v30 = vrot.slane %v1411_v51, 4  ;;  %v1413_v57 = vsel %vm828_vm10, 0.0, %v1412_v49  ;;  %v1361_v58 = vsel %vm828_vm10, 0.0, %v1360_v52  ;;  %v1420_v37 = vsel %vm828_vm10, %v1358_v17, %v1339_v61 }
 0x315   : > { %v1415_v59 = vsel %vm828_vm10, 0.0, %v1414_v2  ;;  %v1474_v4 = vsel %vm828_vm10, %v1414_v2, %v1395_v42  ;;  %v1426_v60 = vsel %vm828_vm10, %v1425_v35, %v1357_v19  ;;  %v1416_v62 = vrot.slane %v1407_v6, 4 }
 0x316   : > { %v1419_v0 = vsel %vm828_vm10, 0.0, %v1418_v30  ;;  %v1479_v1 = vrot.slane %v1415_v59, 4  ;;  %v1478_v15 = vperm.slane %v1474_v4, %v4233_v39  ;;  %v1485_v31 = vsel %vm828_vm10, %v1418_v30, %v1407_v6  ;;  %v1745_v4 = vld [vmem:[#allocation3] sm:$0xff] }
 0x317   : > { %v1490_v12 = vrot.slane %v1419_v0, 4  ;;  %v1424_v63 = vperm.slane %v1420_v37, %v4233_v39  ;;  %v1430_v47 = vperm.slane %v1426_v60, %v4233_v39  ;;  %v1417_v18 = vsel %vm828_vm10, 0.0, %v1416_v62  ;;  %v1746_v0 = vld [vmem:[#allocation3 + $0x8] sm:$0xff] }
 0x318   : > { %v1480_v50 = vsel %vm828_vm10, %v1479_v1, %v1413_v57  ;;  %v1489_v5 = vperm.slane %v1485_v31, %v4233_v39  ;;  %v1498_v7 = vrot.slane %v1478_v15, 4  ;;  %v1431_v56 = vsel %vm828_vm10, %v1362_v48, %v1351_v44 }
 0x319   : > { %v1484_v53 = vperm.slane %v1480_v50, %v4233_v39  ;;  %v1491_v8 = vsel %vm828_vm10, %v1490_v12, %v1417_v18  ;;  %v1437_v10 = vsel %vm828_vm10, %v1436_v54, %v1361_v58  ;;  %v1435_v41 = vperm.slane %v1431_v56, %v4233_v39 }
 0x31a   : > { %v1495_v11 = vperm.slane %v1491_v8, %v4233_v39  ;;  %v1510_v13 = vrot.slane %v1489_v5, 4  ;;  %v1441_v14 = vperm.slane %v1437_v10, %v4233_v39  ;;  %v1444_v9 = vrot.slane %v1424_v63, 4 }
 0x31b   : > { %v1499_v20 = vsel %vm828_vm10, %v1484_v53, %v1498_v7  ;;  %v1496_v46 = vrot.slane %v1484_v53, 4  ;;  %v1442_v40 = vrot.slane %v1430_v47, 4  ;;  %v1456_v28 = vrot.slane %v1435_v41, 4 }
 0x31c   : > { %v1507_v22 = vperm.slane %v1499_v20, %v4243_v55  ;;  %v1511_v23 = vsel %vm828_vm10, %v1495_v11, %v1510_v13  ;;  %v1508_v61 = vrot.slane %v1495_v11, 4  ;;  %v1445_v21 = vsel %vm828_vm10, %v1430_v47, %v1444_v9 }
 0x31d   : > { %v1519_v32 = vperm.slane %v1511_v23, %v4243_v55  ;;  %v1497_v27 = vsel %vm828_vm10, %v1496_v46, %v1478_v15  ;;  %v1443_v29 = vsel %vm828_vm10, %v1442_v40, %v1424_v63  ;;  %v1453_v36 = vperm.slane %v1445_v21, %v4243_v55 }
 0x31e   : > { %v1503_v16 = vperm.slane %v1497_v27, %v4243_v55  ;;  %v1509_v34 = vsel %vm828_vm10, %v1508_v61, %v1489_v5  ;;  %v1457_v38 = vsel %vm828_vm10, %v1441_v14, %v1456_v28  ;;  %v1526_v48 = vrot.slane %v1507_v22, 4 }
 0x31f   : > { %v1524_v42 = vrot.slane %v1519_v32, 4  ;;  %v1515_v44 = vperm.slane %v1509_v34, %v4243_v55  ;;  %v1465_v17 = vperm.slane %v1457_v38, %v4243_v55  ;;  %v1449_v26 = vperm.slane %v1443_v29, %v4243_v55 }
 0x320   : > { %v1454_v25 = vrot.slane %v1441_v14, 4  ;;  %v1522_v33 = vrot.slane %v1503_v16, 4  ;;  %v1472_v49 = vrot.slane %v1453_v36, 4  ;;  %v1527_v43 = vsel %vm828_vm10, %v1519_v32, %v1526_v48 }
 0x321   : > { %v1525_v19 = vsel %vm828_vm10, %v1524_v42, %v1507_v22  ;;  %v1520_v45 = vrot.slane %v1515_v44, 4  ;;  %v1470_v52 = vrot.slane %v1465_v17, 4  ;;  %2067 = vmatpush.msrb.mxu0 %v1527_v43  ;;  %v1468_v54 = vrot.slane %v1449_v26, 4 }
 0x322   : > { %2038 = vmatpush.msra.mxu3 %v1525_v19  ;;  %v1455_v51 = vsel %vm828_vm10, %v1454_v25, %v1435_v41  ;;  %v1523_v35 = vsel %vm828_vm10, %v1515_v44, %v1522_v33  ;;  %v1473_v30 = vsel %vm828_vm10, %v1465_v17, %v1472_v49 }
 0x323   : > { %v1521_v24 = vsel %vm828_vm10, %v1520_v45, %v1503_v16  ;;  %v1471_v2 = vsel %vm828_vm10, %v1470_v52, %v1453_v36  ;;  %v1461_v6 = vperm.slane %v1455_v51, %v4243_v55  ;;  %2009 = vmatpush.msrb.mxu2 %v1523_v35  ;;  %2068 = vmatpush.msrb.mxu0 %v1473_v30 }
 0x324   : > { %1980 = vmatpush.msrb.mxu1 %v1521_v24  ;;  %2039 = vmatpush.msra.mxu3 %v1471_v2 }
 0x325   : > { %v1466_v57 = vrot.slane %v1461_v6, 4  ;;  %v1469_v58 = vsel %vm828_vm10, %v1461_v6, %v1468_v54 }
 0x326   : > { %2010 = vmatpush.msrb.mxu2 %v1469_v58 }
 0x327   : > { %v1467_v59 = vsel %vm828_vm10, %v1466_v57, %v1449_v26 }
 0x328   : > { %1981 = vmatpush.msrb.mxu1 %v1467_v59 }
 0x35b   : > { %v1812_v37 = vpop.f32.mrf.mxu3 }
 0x35c   : > { %v1813_v60 = vadd.f32 %v1812_v37, %v1745_v4 }
 0x35e   : > { %v1894_v62 = vsel %vm1600_vm11, %v1813_v60, -inf }
 0x35f   : > { %1895 = vmax.xlane.f32.xlu1 %v1894_v62 }
 0x365   : > { %v1777_v1 = vpop.f32.mrf.mxu0 }
 0x366   : > { %v1778_v15 = vadd.f32 %v1777_v1, %v1745_v4  ;;  %v1815_v12 = vpop.f32.mrf.mxu3 }
 0x367   : > { %v1816_v31 = vadd.f32 %v1815_v12, %v1746_v0 }
 0x368   : > { %v1888_v63 = vsel %vm1600_vm11, %v1778_v15, -inf }
 0x369   : > { %1889 = vmax.xlane.f32.xlu2 %v1888_v63  ;;  %v1897_v47 = vsel %vm1600_vm11, %v1816_v31, -inf }
 0x36a   : > { %1898 = vmax.xlane.f32.xlu1 %v1897_v47 }
 0x36d   : > { %v1780_v8 = vpop.f32.mrf.mxu0 }
 0x36e   : > { %v1847_v18 = vpop.f32.mrf.mxu3  ;;  %v1781_v10 = vadd.f32 %v1780_v8, %v1746_v0 }
 0x36f   : > { %v1848_v50 = vadd.f32 %v1847_v18, %v1745_v4 }
 0x370   : > { %v1891_v41 = vsel %vm1600_vm11, %v1781_v10, -inf }
 0x371   : > { %v1900_v5 = vsel %vm1600_vm11, %v1848_v50, -inf }
 0x372   : > { %1901 = vmax.xlane.f32.xlu0 %v1900_v5 }
 0x376   : > { %v1850_v7 = vpop.f32.mrf.mxu3 }
 0x377   : > { %v1851_v53 = vadd.f32 %v1850_v7, %v1746_v0 }
 0x379   : > { %v1903_v56 = vsel %vm1600_vm11, %v1851_v53, -inf }
 0x37a   : > { %1904 = vmax.xlane.f32.xlu0 %v1903_v56 }
 0x380   : > { %v1882_v11 = vpop.f32.mrf.mxu0 }
 0x381   : > { %v1883_v13 = vadd.f32 %v1882_v11, %v1745_v4 }
 0x382   : > { %1892 = vmax.xlane.f32.xlu0 %v1891_v41 }
 0x383   : > { %v1906_v14 = vsel %vm1600_vm11, %v1883_v13, -inf }
 0x384   : > { %1907 = vmax.xlane.f32.xlu2 %v1906_v14 }
 0x388   : > { %v1885_v20 = vpop.f32.mrf.mxu0 }
 0x389   : > { %v1886_v46 = vadd.f32 %v1885_v20, %v1746_v0 }
 0x38b   : > { %v1909_v9 = vsel %vm1600_vm11, %v1886_v46, -inf }
 0x38c   : > { %1910 = vmax.xlane.f32.xlu2 %v1909_v9 }
 0x3d2   : > { %v1896_v40 = vpop.xlane.xlu1 %1895 }
 0x3d3   : > { %v1914_v22 = vsub.f32 %v1813_v60, %v1896_v40 }
 0x3d5   : > { %v1924_v23 = vmul.f32 1.442695, %v1914_v22 }
 0x3d7   : > { %3383 = vpow2.f32 %v1924_v23 }
 0x3dc   : > { %v1890_v61 = vpop.xlane.xlu2 %1889 }
 0x3dd   : > { %v3384_v28 = vpop.eup %3383  ;;  %v1912_v32 = vsub.f32 %v1778_v15, %v1890_v61  ;;  %v1899_v27 = vpop.xlane.xlu1 %1898 }
 0x3de   : > { %v1915_v21 = vsub.f32 %v1816_v31, %v1899_v27  ;;  %3176 = vmatmul.msk.f32.vlgmr.msrb.gmra.mxu2 %vm1600_vm11, %v3384_v28  ;;  %v1942_v54 = vsel %vm1600_vm11, %v3384_v28, 0.0 }
 0x3df   : > { %v1920_v29 = vmul.f32 1.442695, %v1912_v32 }
 0x3e0   : > { %v1926_v16 = vmul.f32 1.442695, %v1915_v21 }
 0x3e1   : > { %3385 = vpow2.f32 %v1920_v29 }
 0x3e2   : > { %3387 = vpow2.f32 %v1926_v16 }
 0x3e5   : > { %v1902_v34 = vpop.xlane.xlu0 %1901 }
 0x3e6   : > { %v1916_v36 = vsub.f32 %v1848_v50, %v1902_v34 }
 0x3e7   : > { %v3386_v38 = vpop.eup %3385 }
 0x3e8   : > { %v3388_v42 = vpop.eup %3387  ;;  %v1928_v44 = vmul.f32 1.442695, %v1916_v36  ;;  %3174 = vmatmul.msk.f32.vlgmr.msrb.gmra.mxu1 %vm1600_vm11, %v3386_v38  ;;  %v1936_v17 = vsel %vm1600_vm11, %v3386_v38, 0.0 }
 0x3e9   : > { %1937 = vadd.xlane.f32.xlu0 %v1936_v17  ;;  %3177 = vmatmul.msk.f32.gmra.mxu2 %vm1600_vm11, %v3388_v42  ;;  %v1945_v58 = vsel %vm1600_vm11, %v3388_v42, 0.0 }
 0x3ea   : > { %3389 = vpow2.f32 %v1928_v44 }
 0x3ed   : > { %v1905_v48 = vpop.xlane.xlu0 %1904 }
 0x3ee   : > { %v1917_v26 = vsub.f32 %v1851_v53, %v1905_v48 }
 0x3f0   : > { %v3390_v25 = vpop.eup %3389  ;;  %v1930_v33 = vmul.f32 1.442695, %v1917_v26 }
 0x3f1   : > { %3178 = vmatmul.msk.f32.vlgmr.msra.gmra.mxu3 %vm1600_vm11, %v3390_v25  ;;  %v1948_v49 = vsel %vm1600_vm11, %v3390_v25, 0.0 }
 0x3f2   : > { %3391 = vpow2.f32 %v1930_v33  ;;  %1949 = vadd.xlane.f32.xlu1 %v1948_v49 }
 0x3f5   : > { %v1893_v19 = vpop.xlane.xlu0 %1892 }
 0x3f6   : > { %v1913_v45 = vsub.f32 %v1781_v10, %v1893_v19 }
 0x3f7   : > { %v1908_v52 = vpop.xlane.xlu2 %1907 }
 0x3f8   : > { %v3392_v43 = vpop.eup %3391  ;;  %v1922_v51 = vmul.f32 1.442695, %v1913_v45  ;;  %v1918_v35 = vsub.f32 %v1883_v13, %v1908_v52 }
 0x3f9   : > { %3179 = vmatmul.msk.f32.gmra.mxu3 %vm1600_vm11, %v3392_v43  ;;  %v1951_v24 = vsel %vm1600_vm11, %v3392_v43, 0.0 }
 0x3fa   : > { %3393 = vpow2.f32 %v1922_v51  ;;  %v1932_v2 = vmul.f32 1.442695, %v1918_v35  ;;  %1943 = vadd.xlane.f32.xlu1 %v1942_v54  ;;  %1952 = vadd.xlane.f32.xlu0 %v1951_v24 }
 0x3fc   : > { %3395 = vpow2.f32 %v1932_v2 }
 0x3ff   : > { %v1911_v6 = vpop.xlane.xlu2 %1910 }
 0x400   : > { %v3394_v30 = vpop.eup %3393  ;;  %v1919_v57 = vsub.f32 %v1886_v46, %v1911_v6 }
 0x401   : > { %3175 = vmatmul.msk.f32.gmra.mxu1 %vm1600_vm11, %v3394_v30  ;;  %v1939_v0 = vsel %vm1600_vm11, %v3394_v30, 0.0 }
 0x402   : > { %v3396_v59 = vpop.eup %3395  ;;  %v1934_v4 = vmul.f32 1.442695, %v1919_v57  ;;  %1946 = vadd.xlane.f32.xlu0 %v1945_v58 }
 0x403   : > { %3180 = vmatmul.msk.f32.vlgmr.msrb.gmra.mxu0 %vm1600_vm11, %v3396_v59  ;;  %v1954_v37 = vsel %vm1600_vm11, %v3396_v59, 0.0 }
 0x404   : > { %3397 = vpow2.f32 %v1934_v4  ;;  %1955 = vadd.xlane.f32.xlu2 %v1954_v37 }
 0x40a   : > { %v3398_v60 = vpop.eup %3397 }
 0x40b   : > { %3181 = vmatmul.msk.f32.gmra.mxu0 %vm1600_vm11, %v3398_v60  ;;  %v1957_v62 = vsel %vm1600_vm11, %v3398_v60, 0.0 }
 0x40c   : > { %1958 = vadd.xlane.f32.xlu1 %v1957_v62  ;;  %1940 = vadd.xlane.f32.xlu2 %v1939_v0 }
 0x45c   : > { %v1938_v1 = vpop.xlane.xlu0 %1937 }
 0x45d   : > { %3399 = vrcp.f32 %v1938_v1  ;;  %v2087_v8 = vand.u32 2147483648, %v1938_v1  ;;  %vm2081_vm14 = vweird.f32 %v1938_v1  ;;  %v2085_v10 = vand.u32 2147483647, %v1938_v1 }
 0x45f   : > { %v2088_v20 = vor.u32 1.1754944e-38, %v2087_v8  ;;  %vm2086_vm1 = vcmp.eq.f32.partialorder %v2085_v10, 8.507059e+37 }
 0x463   : > { %v3400_v15 = vpop.eup %3399 }
 0x464   : > { %v2077_v12 = vmul.f32 %v3400_v15, %v1938_v1  ;;  %vm2082_vm13 = vweird.f32 %v3400_v15 }
 0x465   : > { %v1950_v31 = vpop.xlane.xlu1 %1949  ;;  %vm2083_vm15 = vmor %vm2081_vm14, %vm2082_vm13  ;;  %v1983_v27 = vpop.f32.mrf.mxu1 }
 0x466   : > { %v2078_v63 = vsub.f32 1.0, %v2077_v12  ;;  %3401 = vrcp.f32 %v1950_v31  ;;  %v2147_v11 = vand.u32 2147483648, %v1950_v31  ;;  %v2145_v14 = vand.u32 2147483647, %v1950_v31 }
 0x467   : > { %vm2141_vm2 = vweird.f32 %v1950_v31 }
 0x468   : > { %v2079_v47 = vmul.f32 %v3400_v15, %v2078_v63  ;;  %v2148_v22 = vor.u32 1.1754944e-38, %v2147_v11  ;;  %vm2146_vm4 = vcmp.eq.f32.partialorder %v2145_v14, 8.507059e+37  ;;  %v2012_v11 = vpop.f32.mrf.mxu2 }
 0x46a   : > { %v2080_v5 = vadd.f32 %v3400_v15, %v2079_v47 }
 0x46c   : > { %v3402_v18 = vpop.eup %3401  ;;  %v2084_v13 = vsel %vm2083_vm15, %v3400_v15, %v2080_v5 }
 0x46d   : > { %v2137_v50 = vmul.f32 %v3402_v18, %v1950_v31  ;;  %v1944_v7 = vpop.xlane.xlu1 %1943  ;;  %v1953_v53 = vpop.xlane.xlu0 %1952  ;;  %vm2142_vm0 = vweird.f32 %v3402_v18  ;;  %v2089_v40 = vsel %vm2086_vm1, %v2088_v20, %v2084_v13 }
 0x46e   : > { %3403 = vrcp.f32 %v1944_v7  ;;  %vm2143_vm3 = vmor %vm2141_vm2, %vm2142_vm0  ;;  %v2196_v34 = vmul.f32 %v2089_v40, %v1983_v27  ;;  %v2115_v48 = vand.u32 2147483647, %v1944_v7  ;;  %v2117_v26 = vand.u32 2147483648, %v1944_v7 }
 0x46f   : > { %v2138_v56 = vsub.f32 1.0, %v2137_v50  ;;  %3405 = vrcp.f32 %v1953_v53  ;;  %v2160_v33 = vand.u32 2147483647, %v1953_v53  ;;  %v2162_v49 = vand.u32 2147483648, %v1953_v53 }
 0x470   : > { %v2206_v19 = vrot.slane %v2196_v34, 4  ;;  %vm2111_vm7 = vweird.f32 %v1944_v7  ;;  %vm2156_vm8 = vweird.f32 %v1953_v53  ;;  %vm4772_vm9 = vcmp.eq.f32.partialorder %v2115_v48, 8.507059e+37 }
 0x471   : > { %v2139_v41 = vmul.f32 %v3402_v18, %v2138_v56  ;;  %v2118_v54 = vor.u32 1.1754944e-38, %v2117_v26  ;;  %vm2161_vm14 = vcmp.eq.f32.partialorder %v2160_v33, 8.507059e+37  ;;  %v2163_v4 = vor.u32 1.1754944e-38, %v2162_v49 }
 0x473   : > { %v2140_v46 = vadd.f32 %v3402_v18, %v2139_v41 }
 0x474   : > { %v3404_v9 = vpop.eup %3403  ;;  %v2041_v29 = vpop.f32.mrf.mxu3 }
 0x475   : > { %v3406_v23 = vpop.eup %3405  ;;  %v2107_v61 = vmul.f32 %v3404_v9, %v1944_v7  ;;  %v2144_v28 = vsel %vm2143_vm3, %v3402_v18, %v2140_v46  ;;  %v4764_v32 = vpop.xlane.xlu0 %1946  ;;  %vm2112_vm6 = vweird.f32 %v3404_v9 }
 0x476   : > { %v2152_v21 = vmul.f32 %v3406_v23, %v1953_v53  ;;  %v2149_v16 = vsel %vm2146_vm4, %v2148_v22, %v2144_v28  ;;  %3407 = vrcp.f32 %v4764_v32  ;;  %vm2157_vm5 = vweird.f32 %v3406_v23  ;;  %vm4784_vm13 = vmor %vm2111_vm7, %vm2112_vm6 }
 0x477   : > { %v2108_v36 = vsub.f32 1.0, %v2107_v61  ;;  %v2200_v38 = vmul.f32 %v2149_v16, %v2041_v29  ;;  %v4767_v42 = vpop.xlane.xlu2 %1955  ;;  %vm4780_vm11 = vmor %vm2156_vm8, %vm2157_vm5  ;;  %v2130_v58 = vand.u32 2147483647, %v4764_v32  ;;  %v2132_v31 = vand.u32 2147483648, %v4764_v32 }
 0x478   : > { %v2153_v44 = vsub.f32 1.0, %v2152_v21  ;;  %3409 = vrcp.f32 %v4767_v42  ;;  %v2175_v63 = vand.u32 2147483647, %v4767_v42  ;;  %v2177_v53 = vand.u32 2147483648, %v4767_v42 }
 0x479   : > { %v2109_v17 = vmul.f32 %v3404_v9, %v2108_v36  ;;  %v2204_v52 = vrot.slane %v2200_v38, 4  ;;  %v2207_v24 = vsel %vm828_vm10, %v2200_v38, %v2206_v19  ;;  %vm2126_vm1 = vweird.f32 %v4764_v32 }
 0x47a   : > { %v2154_v25 = vmul.f32 %v3406_v23, %v2153_v44  ;;  %v4800_v12 = vperm.slane %v2207_v24, %v4233_v39  ;;  %vm4816_vm2 = vcmp.eq.f32.partialorder %v2130_v58, 8.507059e+37  ;;  %vm2171_vm3 = vweird.f32 %v4767_v42 }
 0x47b   : > { %v2110_v45 = vadd.f32 %v3404_v9, %v2109_v17  ;;  %v2205_v60 = vsel %vm828_vm10, %v2204_v52, %v2196_v34  ;;  %v2133_v20 = vor.u32 1.1754944e-38, %v2132_v31  ;;  %vm2176_vm6 = vcmp.eq.f32.partialorder %v2175_v63, 8.507059e+37 }
 0x47c   : > { %v4770_v43 = vpop.eup %3407  ;;  %v2155_v51 = vadd.f32 %v3406_v23, %v2154_v25  ;;  %v4810_v7 = vperm.slane %v2205_v60, %v4233_v39  ;;  %v2044_v56 = vpop.f32.mrf.mxu3  ;;  %v2242_v61 = vrot.slane %v4800_v12, 4  ;;  %v2178_v28 = vor.u32 1.1754944e-38, %v2177_v53 }
 0x47d   : > { %v2122_v2 = vmul.f32 %v4770_v43, %v4764_v32  ;;  %v2114_v37 = vsel %vm4784_vm13, %v3404_v9, %v2110_v45  ;;  %vm2127_vm15 = vweird.f32 %v4770_v43 }
 0x47e   : > { %v3410_v30 = vpop.eup %3409  ;;  %v2159_v59 = vsel %vm4780_vm11, %v3406_v23, %v2155_v51  ;;  %v2119_v5 = vsel %vm4772_vm9, %v2118_v54, %v2114_v37  ;;  %vm4823_vm4 = vmor %vm2126_vm1, %vm2127_vm15  ;;  %v2230_v23 = vrot.slane %v4810_v7, 4  ;;  %v2015_v51 = vpop.f32.mrf.mxu2  ;;  %vm2453_vm1 = vcmask 785408  }
 0x47f   : > { %v2123_v62 = vsub.f32 1.0, %v2122_v2  ;;  %v2167_v0 = vmul.f32 %v3410_v30, %v4767_v42  ;;  %v4795_v1 = vpop.xlane.xlu1 %1958  ;;  %v4797_v15 = vpop.xlane.xlu2 %1940  ;;  %v2164_v50 = vsel %vm2161_vm14, %v2163_v4, %v2159_v59  ;;  %vm2172_vm0 = vweird.f32 %v3410_v30 }
 0x480   : > { %3411 = vrcp.f32 %v4795_v1  ;;  %v4820_v41 = vmul.f32 %v2164_v50, %v2044_v56  ;;  %v2100_v46 = vand.u32 2147483647, %v4797_v15  ;;  %v2198_v40 = vmul.f32 %v2119_v5, %v2012_v11  ;;  %vm2173_vm5 = vmor %vm2171_vm3, %vm2172_vm0  ;;  %v2070_v38 = vpop.f32.mrf.mxu0  ;;  %v2470_v50 = vld [vmem:[%s4100_s2 + $0x70] sm:$0xff]  ;;  %v1986_v5 = vpop.f32.mrf.mxu1 }
 0x481   : > { %v2124_v47 = vmul.f32 %v4770_v43, %v2123_v62  ;;  %v2168_v18 = vsub.f32 1.0, %v2167_v0  ;;  %3413 = vrcp.f32 %v4797_v15  ;;  %vm2096_vm7 = vweird.f32 %v4797_v15 }
 0x482   : > { %v2260_v16 = vrot.slane %v4820_v41, 4  ;;  %v2102_v36 = vand.u32 2147483648, %v4797_v15  ;;  %vm4841_vm8 = vcmp.eq.f32.partialorder %v2100_v46, 8.507059e+37  ;;  %v2218_v26 = vrot.slane %v2198_v40, 4 }
 0x483   : > { %v2125_v8 = vadd.f32 %v4770_v43, %v2124_v47  ;;  %v2169_v10 = vmul.f32 %v3410_v30, %v2168_v18  ;;  %v2190_v49 = vand.u32 2147483647, %v4795_v1  ;;  %v2192_v19 = vand.u32 2147483648, %v4795_v1  ;;  %v2471_v18 = vld [vmem:[%s4100_s2 + $0x78] sm:$0xff] }
 0x484   : > { %vm2186_vm13 = vweird.f32 %v4795_v1  ;;  %v2103_v24 = vor.u32 1.1754944e-38, %v2102_v36  ;;  %2472 = vmatpush.msra.mxu1 %v2471_v18 }
 0x485   : > { %v2170_v9 = vadd.f32 %v3410_v30, %v2169_v10  ;;  %v2129_v27 = vsel %vm4823_vm4, %v4770_v43, %v2125_v8  ;;  %vm4868_vm0 = vcmp.eq.f32.partialorder %v2190_v49, 8.507059e+37 }
 0x486   : > { %v4828_v22 = vpop.eup %3411  ;;  %v2134_v25 = vsel %vm4816_vm2, %v2133_v20, %v2129_v27  ;;  %v2469_v20 = vld [vmem:[%s4100_s2 + $0x68] sm:$0xff]  ;;  %2473 = vmatpush.msra.mxu1 %v2470_v50 }
 0x487   : > { %v3414_v32 = vpop.eup %3413  ;;  %v2182_v21 = vmul.f32 %v4828_v22, %v4795_v1  ;;  %v2174_v29 = vsel %vm2173_vm5, %v3410_v30, %v2170_v9  ;;  %vm2187_vm9 = vweird.f32 %v4828_v22  ;;  %v2199_v30 = vmul.f32 %v2134_v25, %v2015_v51 }
 0x488   : > { %v2092_v34 = vmul.f32 %v3414_v32, %v4797_v15  ;;  %v2179_v42 = vsel %vm2176_vm6, %v2178_v28, %v2174_v29  ;;  %vm2097_vm11 = vweird.f32 %v3414_v32  ;;  %vm4858_vm14 = vmor %vm2186_vm13, %vm2187_vm9  ;;  %v2193_v1 = vor.u32 1.1754944e-38, %v2192_v19  ;;  %v2073_v27 = vpop.f32.mrf.mxu0  ;;  %2474 = vmatpush.msra.mxu1 %v2469_v20 }
 0x489   : > { %v2183_v44 = vsub.f32 1.0, %v2182_v21  ;;  %v2202_v48 = vmul.f32 %v2179_v42, %v2070_v38  ;;  %vm2098_vm15 = vmor %vm2096_vm7, %vm2097_vm11  ;;  %v2274_v14 = vrot.slane %v2199_v30, 4 }
 0x48a   : > { %v2093_v33 = vsub.f32 1.0, %v2092_v34 }
 0x48b   : > { %v2216_v45 = vrot.slane %v2202_v48, 4  ;;  %v2219_v52 = vsel %vm828_vm10, %v2202_v48, %v2218_v26  ;;  %v2184_v43 = vmul.f32 %v4828_v22, %v2183_v44 }
 0x48c   : > { %v2094_v35 = vmul.f32 %v3414_v32, %v2093_v33  ;;  %v2227_v54 = vperm.slane %v2219_v52, %v4233_v39 }
 0x48d   : > { %v2217_v2 = vsel %vm828_vm10, %v2216_v45, %v2198_v40  ;;  %v2185_v6 = vadd.f32 %v4828_v22, %v2184_v43 }
 0x48e   : > { %v2095_v57 = vadd.f32 %v3414_v32, %v2094_v35  ;;  %v2223_v58 = vperm.slane %v2217_v2, %v4233_v39  ;;  %v2240_v59 = vrot.slane %v2227_v54, 4  ;;  %v2243_v4 = vsel %vm828_vm10, %v2227_v54, %v2242_v61 }
 0x48f   : > { %v2251_v60 = vperm.slane %v2243_v4, %v4243_v55  ;;  %v2189_v62 = vsel %vm4858_vm14, %v4828_v22, %v2185_v6 }
 0x490   : > { %v2099_v31 = vsel %vm2098_vm15, %v3414_v32, %v2095_v57  ;;  %v2228_v63 = vrot.slane %v2223_v58, 4  ;;  %v2231_v47 = vsel %vm828_vm10, %v2223_v58, %v2230_v23  ;;  %v2241_v15 = vsel %vm828_vm10, %v2240_v59, %v4800_v12 }
 0x491   : > { %v2104_v53 = vsel %vm4841_vm8, %v2103_v24, %v2099_v31  ;;  %v2239_v8 = vperm.slane %v2231_v47, %v4243_v55  ;;  %v2247_v56 = vperm.slane %v2241_v15, %v4243_v55  ;;  %v2258_v10 = vrot.slane %v2251_v60, 4 }
 0x492   : > { %v2197_v11 = vmul.f32 %v2104_v53, %v1986_v5  ;;  %v2229_v13 = vsel %vm828_vm10, %v2228_v63, %v4810_v7  ;;  %v2194_v12 = vsel %vm4868_vm0, %v2193_v1, %v2189_v62  ;;  %v2468_v7 = vld [vmem:[%s4100_s2 + $0x60] sm:$0xff] }
 0x493   : > { %v2235_v46 = vperm.slane %v2229_v13, %v4243_v55  ;;  %v2254_v9 = vrot.slane %v2239_v8, 4  ;;  %v2256_v40 = vrot.slane %v2247_v56, 4  ;;  %v2259_v22 = vsel %vm828_vm10, 0.0, %v2258_v10  ;;  %2475 = vmatpush.msra.mxu1 %v2468_v7 }
 0x494   : > { %v2261_v23 = vsel %vm828_vm10, %v2260_v16, %v2197_v11  ;;  %v2262_v61 = vrot.slane %v2197_v11, 4  ;;  %v2327_v28 = vsel %vm828_vm10, %v2258_v10, %v2247_v56  ;;  %v2332_v32 = vrot.slane %v2259_v22, 4 }
 0x495   : > { %v2267_v21 = vperm.slane %v2261_v23, %v4233_v39  ;;  %v2255_v29 = vsel %vm828_vm10, 0.0, %v2254_v9  ;;  %v2203_v34 = vmul.f32 %v2194_v12, %v2073_v27  ;;  %v2252_v36 = vrot.slane %v2235_v46, 4 }
 0x496   : > { %v2321_v38 = vrot.slane %v2255_v29, 4  ;;  %v2263_v42 = vsel %vm828_vm10, %v4820_v41, %v2262_v61  ;;  %v2257_v44 = vsel %vm828_vm10, 0.0, %v2256_v40  ;;  %v2316_v16 = vsel %vm828_vm10, %v2254_v9, %v2235_v46 }
 0x497   : > { %v2271_v17 = vperm.slane %v2263_v42, %v4233_v39  ;;  %v2272_v48 = vrot.slane %v2203_v34, 4  ;;  %v2275_v26 = vsel %vm828_vm10, %v2203_v34, %v2274_v14  ;;  %v2286_v25 = vrot.slane %v2267_v21, 4 }
 0x498   : > { %v2283_v33 = vperm.slane %v2275_v26, %v4233_v39  ;;  %v2253_v49 = vsel %vm828_vm10, 0.0, %v2252_v36  ;;  %v2320_v19 = vperm.slane %v2316_v16, %v4233_v39  ;;  %v2331_v45 = vperm.slane %v2327_v28, %v4233_v39 }
 0x499   : > { %v2273_v41 = vsel %vm828_vm10, %v2272_v48, %v2199_v30  ;;  %v2298_v52 = vrot.slane %v2271_v17, 4  ;;  %v2322_v43 = vsel %vm828_vm10, %v2321_v38, %v2253_v49  ;;  %v2333_v51 = vsel %vm828_vm10, %v2332_v32, %v2257_v44 }
 0x49a   : > { %v2279_v35 = vperm.slane %v2273_v41, %v4233_v39  ;;  %v2296_v54 = vrot.slane %v2283_v33, 4  ;;  %v2326_v24 = vperm.slane %v2322_v43, %v4233_v39  ;;  %v2337_v2 = vperm.slane %v2333_v51, %v4233_v39 }
 0x49b   : > { %v2299_v6 = vsel %vm828_vm10, %v2283_v33, %v2298_v52  ;;  %v2340_v57 = vrot.slane %v2320_v19, 4  ;;  %v2352_v58 = vrot.slane %v2331_v45, 4 }
 0x49c   : > { %v2284_v59 = vrot.slane %v2279_v35, 4  ;;  %v2287_v4 = vsel %vm828_vm10, %v2279_v35, %v2286_v25  ;;  %v2297_v30 = vsel %vm828_vm10, %v2296_v54, %v2271_v17  ;;  %v2307_v37 = vperm.slane %v2299_v6, %v4243_v55 }
 0x49d   : > { %v2295_v60 = vperm.slane %v2287_v4, %v4243_v55  ;;  %v2303_v62 = vperm.slane %v2297_v30, %v4243_v55  ;;  %v2341_v0 = vsel %vm828_vm10, %v2326_v24, %v2340_v57  ;;  %v2353_v1 = vsel %vm828_vm10, %v2337_v2, %v2352_v58  ;;  %v2467_v4 = vld [vmem:[%s4100_s2 + $0x58] sm:$0xff]  ;;  %v2466_v30 = vld [vmem:[%s4100_s2 + $0x50] sm:$0xff] }
 0x49e   : > { %v2285_v31 = vsel %vm828_vm10, %v2284_v59, %v2267_v21  ;;  %v2314_v63 = vrot.slane %v2307_v37, 4  ;;  %v2349_v47 = vperm.slane %v2341_v0, %v4243_v55  ;;  %v2361_v15 = vperm.slane %v2353_v1, %v4243_v55  ;;  %2476 = vmatpush.msra.mxu1 %v2467_v4  ;;  %v2465_v37 = vld [vmem:[%s4100_s2 + $0x48] sm:$0xff]  ;;  %v2462_v0 = vld [vmem:[%s4100_s2 + $0x30] sm:$0xff]  ;;  %v2570_v4 = vld [vmem:[%s4102_s28 + $0x118] sm:$0xff] }
 0x49f   : > { %v2291_v18 = vperm.slane %v2285_v31, %v4243_v55  ;;  %v2310_v50 = vrot.slane %v2295_v60, 4  ;;  %v2312_v5 = vrot.slane %v2303_v62, 4  ;;  %v2338_v53 = vrot.slane %v2326_v24, 4  ;;  %v2464_v60 = vld [vmem:[%s4100_s2 + $0x40] sm:$0xff]  ;;  %v2461_v1 = vld [vmem:[%s4100_s2 + $0x28] sm:$0xff] }
 0x4a0   : > { %v2315_v8 = vsel %vm828_vm10, 0.0, %v2314_v63  ;;  %v2366_v56 = vrot.slane %v2361_v15, 4  ;;  %v2368_v10 = vrot.slane %v2349_v47, 4  ;;  %v2350_v11 = vrot.slane %v2337_v2, 4  ;;  %2477 = vmatpush.msra.mxu1 %v2466_v30  ;;  %v2460_v31 = vld [vmem:[%s4100_s2 + $0x20] sm:$0xff] }
 0x4a1   : > { %v2308_v13 = vrot.slane %v2291_v18, 4  ;;  %v2311_v12 = vsel %vm828_vm10, 0.0, %v2310_v50  ;;  %v2386_v14 = vrot.slane %v2315_v8, 4  ;;  %v2339_v20 = vsel %vm828_vm10, %v2338_v53, %v2320_v19 }
 0x4a2   : > { %v2375_v46 = vrot.slane %v2311_v12, 4  ;;  %v2367_v9 = vsel %vm828_vm10, %v2366_v56, %v2349_v47  ;;  %v2369_v40 = vsel %vm828_vm10, %v2361_v15, %v2368_v10  ;;  %v2345_v22 = vperm.slane %v2339_v20, %v4243_v55  ;;  %2478 = vmatpush.msra.mxu1 %v2465_v37  ;;  %v2458_v47 = vld [vmem:[%s4100_s2 + $0x10] sm:$0xff]  ;;  %v2457_v15 = vld [vmem:[%s4100_s2 + $0x8] sm:$0xff] }
 0x4a3   : > { %2434 = vrot.lane.b32.xlu1 %v2367_v9, %s3799_s11  ;;  %2442 = vrot.lane.b32.xlu0 %v2369_v40, %s3800_s5  ;;  %v2351_v23 = vsel %vm828_vm10, %v2350_v11, %v2331_v45  ;;  %v2309_v61 = vsel %vm828_vm10, 0.0, %v2308_v13  ;;  %v2313_v28 = vsel %vm828_vm10, 0.0, %v2312_v5  ;;  %v2370_v32 = vsel %vm828_vm10, %v2310_v50, %v2291_v18  ;;  %v2456_v18 = vld [vmem:[%s4100_s2] sm:$0xff]  ;;  %v2596_v40 = vld [vmem:[%s4102_s28 + $0x1e8] sm:$0xff] }
 0x4a4   : > { %v2357_v27 = vperm.slane %v2351_v23, %v4243_v55  ;;  %v2364_v7 = vrot.slane %v2345_v22, 4  ;;  %v2374_v21 = vperm.slane %v2370_v32, %v4233_v39  ;;  %v2376_v29 = vsel %vm828_vm10, %v2375_v46, %v2309_v61  ;;  %2479 = vmatpush.msra.mxu1 %v2464_v60  ;;  %v2595_v9 = vld [vmem:[%s4102_s28 + $0x1e0] sm:$0xff]  ;;  %2622 = vmatpush.msrb.mxu3 %v2596_v40  ;;  %v2598_v23 = vld [vmem:[%s4102_s28 + $0x1f8] sm:$0xff]  ;;  %v2593_v32 = vld [vmem:[%s4102_s28 + $0x1d0] sm:$0xff] }
 0x4a5   : > { %v2380_v34 = vperm.slane %v2376_v29, %v4233_v39  ;;  %v2381_v36 = vsel %vm828_vm10, %v2314_v63, %v2303_v62  ;;  %v2387_v38 = vsel %vm828_vm10, %v2386_v14, %v2313_v28  ;;  %v2463_v62 = vld [vmem:[%s4100_s2 + $0x38] sm:$0xff]  ;;  %2599 = vmatpush.msra.mxu2 %v2595_v9  ;;  %v2591_v61 = vld [vmem:[%s4102_s28 + $0x1c0] sm:$0xff]  ;;  %v2592_v28 = vld [vmem:[%s4102_s28 + $0x1c8] sm:$0xff] }
 0x4a6   : > { %v2362_v42 = vrot.slane %v2357_v27, 4  ;;  %v2365_v44 = vsel %vm828_vm10, %v2357_v27, %v2364_v7  ;;  %v2385_v16 = vperm.slane %v2381_v36, %v4233_v39  ;;  %v2391_v17 = vperm.slane %v2387_v38, %v4233_v39  ;;  %2480 = vmatpush.msra.mxu1 %v2463_v62  ;;  %v2459_v63 = vld [vmem:[%s4100_s2 + $0x18] sm:$0xff]  ;;  %v2587_v7 = vld [vmem:[%s4102_s28 + $0x1a0] sm:$0xff]  ;;  %2623 = vmatpush.msrb.mxu3 %v2592_v28  ;;  %v2589_v29 = vld [vmem:[%s4102_s28 + $0x1b0] sm:$0xff] }
 0x4a7   : > { %2426 = vrot.lane.b32.xlu2 %v2365_v44, %s3798_s8  ;;  %v2394_v48 = vrot.slane %v2374_v21, 4  ;;  %v2392_v26 = vrot.slane %v2380_v34, 4  ;;  %v2594_v27 = vld [vmem:[%s4102_s28 + $0x1d8] sm:$0xff]  ;;  %2600 = vmatpush.msra.mxu2 %v2591_v61  ;;  %v3435_v38 = vld [vmem:[%s4137_s14] sm:$0xff]  ;;  %v2563_v62 = vld [vmem:[%s4102_s28 + $0xe0] sm:$0xff] }
 0x4a8   : > { %v2406_v25 = vrot.slane %v2385_v16, 4  ;;  %v2404_v33 = vrot.slane %v2391_v17, 4  ;;  %v2363_v45 = vsel %vm828_vm10, %v2362_v42, %v2345_v22  ;;  %2481 = vmatpush.msra.mxu1 %v2462_v0  ;;  %v2597_v22 = vld [vmem:[%s4102_s28 + $0x1f0] sm:$0xff]  ;;  %v2564_v0 = vld [vmem:[%s4102_s28 + $0xe8] sm:$0xff]  ;;  %v2543_v40 = vld [vmem:[%s4102_s28 + $0x40] sm:$0xff] }
 0x4a9   : > { %v2395_v49 = vsel %vm828_vm10, %v2380_v34, %v2394_v48  ;;  %v2393_v19 = vsel %vm828_vm10, %v2392_v26, %v2374_v21  ;;  %2645 = vmatpush.msra.mxu0 %v2597_v22  ;;  %v2588_v21 = vld [vmem:[%s4102_s28 + $0x1a8] sm:$0xff]  ;;  %v2590_v34 = vld [vmem:[%s4102_s28 + $0x1b8] sm:$0xff]  ;;  %2601 = vmatpush.msra.mxu2 %v2587_v7  ;;  %v2545_v61 = vld [vmem:[%s4102_s28 + $0x50] sm:$0xff] }
 0x4aa   : > { %v2403_v41 = vperm.slane %v2395_v49, %v4243_v55  ;;  %v2407_v52 = vsel %vm828_vm10, %v2391_v17, %v2406_v25  ;;  %v2399_v43 = vperm.slane %v2393_v19, %v4243_v55  ;;  %v2405_v39 = vsel %vm828_vm10, %v2404_v33, %v2385_v16  ;;  %2482 = vmatpush.msra.mxu1 %v2461_v1  ;;  %v3436_v17 = vld [vmem:[%s4137_s14 + $0x8] sm:$0xff]  ;;  %v2583_v25 = vld [vmem:[%s4102_s28 + $0x180] sm:$0xff]  ;;  %v2584_v33 = vld [vmem:[%s4102_s28 + $0x188] sm:$0xff] }
 0x4ab   : > { %v2415_v51 = vperm.slane %v2407_v52, %v4243_v55  ;;  %v2411_v35 = vperm.slane %v2405_v39, %v4243_v55  ;;  %2646 = vmatpush.msra.mxu0 %v2593_v32  ;;  %2624 = vmatpush.msrb.mxu3 %v2588_v21  ;;  %v2585_v49 = vld [vmem:[%s4102_s28 + $0x190] sm:$0xff]  ;;  %v2586_v19 = vld [vmem:[%s4102_s28 + $0x198] sm:$0xff]  ;;  %v2575_v39 = vld [vmem:[%s4102_s28 + $0x140] sm:$0xff] }
 0x4ac   : > { %v2422_v54 = vrot.slane %v2403_v41, 4  ;;  %v2418_v24 = vrot.slane %v2399_v43, 4  ;;  %2483 = vmatpush.msra.mxu1 %v2460_v31  ;;  %2602 = vmatpush.msra.mxu2 %v2583_v25  ;;  %v2581_v52 = vld [vmem:[%s4102_s28 + $0x170] sm:$0xff]  ;;  %v2566_v31 = vld [vmem:[%s4102_s28 + $0xf8] sm:$0xff]  ;;  %v2544_v22 = vld [vmem:[%s4102_s28 + $0x48] sm:$0xff] }
 0x4ad   : > { %v2420_v2 = vrot.slane %v2415_v51, 4  ;;  %v2416_v55 = vrot.slane %v2411_v35, 4  ;;  %2647 = vmatpush.msra.mxu0 %v2589_v29  ;;  %2625 = vmatpush.msrb.mxu3 %v2584_v33  ;;  %v2565_v1 = vld [vmem:[%s4102_s28 + $0xf0] sm:$0xff]  ;;  %v2546_v28 = vld [vmem:[%s4102_s28 + $0x58] sm:$0xff]  ;;  %v2540_v7 = vld [vmem:[%s4102_s28 + $0x28] sm:$0xff] }
 0x4ae   : > { %v2423_v6 = vsel %vm828_vm10, %v2415_v51, %v2422_v54  ;;  %v2419_v57 = vsel %vm828_vm10, %v2411_v35, %v2418_v24  ;;  %2484 = vmatpush.msra.mxu1 %v2459_v63  ;;  %v2576_v51 = vld [vmem:[%s4102_s28 + $0x148] sm:$0xff]  ;;  %v2577_v35 = vld [vmem:[%s4102_s28 + $0x150] sm:$0xff]  ;;  %v2578_v54 = vld [vmem:[%s4102_s28 + $0x158] sm:$0xff] }
 0x4af   : > { %2444 = vrot.lane.b32.xlu1 %v2423_v6, %s3800_s5  ;;  %v2421_v58 = vsel %vm828_vm10, %v2420_v2, %v2403_v41  ;;  %2428 = vrot.lane.b32.xlu2 %v2419_v57, %s3798_s8  ;;  %v2417_v59 = vsel %vm828_vm10, %v2416_v55, %v2399_v43  ;;  %vm2450_vm10 = vcmask 523264   ;;  %v2580_v41 = vld [vmem:[%s4102_s28 + $0x168] sm:$0xff]  ;;  %v2582_v43 = vld [vmem:[%s4102_s28 + $0x178] sm:$0xff] }
 0x4b0   : > { %2436 = vrot.lane.b32.xlu0 %v2421_v58, %s3799_s11  ;;  %2485 = vmatpush.msra.mxu1 %v2458_v47  ;;  %v2571_v24 = vld [vmem:[%s4102_s28 + $0x120] sm:$0xff]  ;;  %v2572_v2 = vld [vmem:[%s4102_s28 + $0x128] sm:$0xff]  ;;  %v2573_v6 = vld [vmem:[%s4102_s28 + $0x130] sm:$0xff] }
 0x4b1   : > { %2648 = vmatpush.msra.mxu0 %v2585_v49  ;;  %2626 = vmatpush.msrb.mxu3 %v2580_v41  ;;  %v2574_v57 = vld [vmem:[%s4102_s28 + $0x138] sm:$0xff]  ;;  %v2567_v58 = vld [vmem:[%s4102_s28 + $0x100] sm:$0xff]  ;;  %v2568_v55 = vld [vmem:[%s4102_s28 + $0x108] sm:$0xff] }
 0x4b2   : > { %2486 = vmatpush.msra.mxu1 %v2457_v15  ;;  %v2559_v63 = vld [vmem:[%s4102_s28 + $0xc0] sm:$0xff]  ;;  %v2560_v47 = vld [vmem:[%s4102_s28 + $0xc8] sm:$0xff]  ;;  %v2561_v15 = vld [vmem:[%s4102_s28 + $0xd0] sm:$0xff] }
 0x4b3   : > { %2649 = vmatpush.msra.mxu0 %v2581_v52  ;;  %2627 = vmatpush.msrb.mxu3 %v2576_v51  ;;  %v2538_v25 = vld [vmem:[%s4102_s28 + $0x18] sm:$0xff] }
 0x4b4   : > { %2487 = vmatpush.msra.mxu1 %v2456_v18  ;;  %v2562_v18 = vld [vmem:[%s4102_s28 + $0xd8] sm:$0xff] }
 0x4b5   : > { %2650 = vmatpush.msra.mxu0 %v2577_v35  ;;  %2628 = vmatpush.msrb.mxu3 %v2572_v2 }
 0x4b6   : > { %2668 = vmatpush.msrb.mxu1 %v2598_v23 }
 0x4b7   : > { %2651 = vmatpush.msra.mxu0 %v2573_v6  ;;  %2629 = vmatpush.msrb.mxu3 %v2568_v55 }
 0x4b8   : > { %2669 = vmatpush.msrb.mxu1 %v2594_v27  ;;  %v2539_v27 = vld [vmem:[%s4102_s28 + $0x20] sm:$0xff] }
 0x4b9   : > { %2630 = vmatpush.msrb.mxu3 %v2564_v0  ;;  %v2788_v0 = vld [vmem:[%s4120_s12 + $0x68] sm:$0xff] }
 0x4ba   : > { %2670 = vmatpush.msrb.mxu1 %v2590_v34  ;;  %v2541_v34 = vld [vmem:[%s4102_s28 + $0x30] sm:$0xff] }
 0x4bb   : > { %2631 = vmatpush.msrb.mxu3 %v2560_v47  ;;  %v2786_v47 = vld [vmem:[%s4120_s12 + $0x58] sm:$0xff] }
 0x4bc   : > { %2671 = vmatpush.msrb.mxu1 %v2586_v19  ;;  %v3376_v19 = vld [vmem:[%s614_s26] ss:$0 sm:$0xff] }
 0x4be   : > { %2672 = vmatpush.msrb.mxu1 %v2582_v43 }
 0x4c0   : > { %2673 = vmatpush.msrb.mxu1 %v2578_v54 }
 0x4c2   : > { %2674 = vmatpush.msrb.mxu1 %v2574_v57 }
 0x4c4   : > { %2675 = vmatpush.msrb.mxu1 %v2570_v4  ;;  %v2806_v4 = vld [vmem:[%s4120_s12 + $0xf8] sm:$0xff] }
 0x4c6   : > { %2676 = vmatpush.msrb.mxu1 %v2566_v31  ;;  %v2787_v31 = vld [vmem:[%s4120_s12 + $0x60] sm:$0xff] }
 0x4c8   : > { %2677 = vmatpush.msrb.mxu1 %v2562_v18 }
 0x501   : > { %v2427_v50 = vpop.permute.xlu2 %2426 }
 0x502   : > { %v2448_v5 = vsel %vm1747_vm12, %v2363_v45, %v2427_v50  ;;  %v2579_v45 = vld [vmem:[%s4102_s28 + $0x160] sm:$0xff] }
 0x503   : > { %2603 = vmatpush.msra.mxu2 %v2579_v45  ;;  %v2555_v50 = vld [vmem:[%s4102_s28 + $0xa0] sm:$0xff] }
 0x505   : > { %2604 = vmatpush.msra.mxu2 %v2575_v39 }
 0x507   : > { %2605 = vmatpush.msra.mxu2 %v2571_v24 }
 0x509   : > { %v2429_v11 = vpop.permute.xlu2 %2428  ;;  %2606 = vmatpush.msra.mxu2 %v2567_v58 }
 0x50a   : > { %v2449_v13 = vsel %vm1747_vm12, %v2417_v59, %v2429_v11  ;;  %v2569_v59 = vld [vmem:[%s4102_s28 + $0x110] sm:$0xff] }
 0x50b   : > { %2652 = vmatpush.msra.mxu0 %v2569_v59  ;;  %2607 = vmatpush.msra.mxu2 %v2563_v62  ;;  %v2553_v11 = vld [vmem:[%s4102_s28 + $0x90] sm:$0xff]  ;;  %v2790_v59 = vld [vmem:[%s4120_s12 + $0x78] sm:$0xff] }
 0x50c   : > { %v2805_v62 = vld [vmem:[%s4120_s12 + $0xf0] sm:$0xff] }
 0x50d   : > { %2653 = vmatpush.msra.mxu0 %v2565_v1  ;;  %2608 = vmatpush.msra.mxu2 %v2559_v63  ;;  %v2804_v1 = vld [vmem:[%s4120_s12 + $0xe8] sm:$0xff]  ;;  %v2803_v63 = vld [vmem:[%s4120_s12 + $0xe0] sm:$0xff] }
 0x50f   : > { %2654 = vmatpush.msra.mxu0 %v2561_v15  ;;  %2609 = vmatpush.msra.mxu2 %v2555_v50  ;;  %v2802_v15 = vld [vmem:[%s4120_s12 + $0xd8] sm:$0xff] }
 0x515   : > { %v2435_v53 = vpop.permute.xlu1 %2434  ;;  %v2443_v8 = vpop.permute.xlu0 %2442 }
 0x516   : > { %v2451_v56 = vsel %vm2450_vm10, %v2448_v5, %v2435_v53  ;;  %v2556_v5 = vld [vmem:[%s4102_s28 + $0xa8] sm:$0xff]  ;;  %v2557_v53 = vld [vmem:[%s4102_s28 + $0xb0] sm:$0xff] }
 0x517   : > { %v2454_v10 = vsel %vm2453_vm1, %v2451_v56, %v2443_v8  ;;  %v2558_v8 = vld [vmem:[%s4102_s28 + $0xb8] sm:$0xff]  ;;  %v2551_v56 = vld [vmem:[%s4102_s28 + $0x80] sm:$0xff]  ;;  %2632 = vmatpush.msrb.mxu3 %v2556_v5  ;;  %2655 = vmatpush.msra.mxu0 %v2557_v53 }
 0x518   : > { %2488 = vmatmul.f32.vlgmr.msra.gmra.mxu1 %v2454_v10  ;;  %v2552_v10 = vld [vmem:[%s4102_s28 + $0x88] sm:$0xff]  ;;  %2610 = vmatpush.msra.mxu2 %v2551_v56  ;;  %v2801_v56 = vld [vmem:[%s4120_s12 + $0xd0] sm:$0xff] }
 0x519   : > { %2678 = vmatpush.msrb.mxu1 %v2558_v8  ;;  %2633 = vmatpush.msrb.mxu3 %v2552_v10  ;;  %v2785_v8 = vld [vmem:[%s4120_s12 + $0x50] sm:$0xff]  ;;  %v2784_v10 = vld [vmem:[%s4120_s12 + $0x48] sm:$0xff] }
 0x51a   : > { %2656 = vmatpush.msra.mxu0 %v2553_v11  ;;  %v2800_v11 = vld [vmem:[%s4120_s12 + $0xc8] sm:$0xff] }
 0x521   : > { %v2445_v14 = vpop.permute.xlu1 %2444 }
 0x522   : > { %v2437_v12 = vpop.permute.xlu0 %2436 }
 0x523   : > { %v2452_v20 = vsel %vm2450_vm10, %v2449_v13, %v2437_v12  ;;  %v2554_v13 = vld [vmem:[%s4102_s28 + $0x98] sm:$0xff]  ;;  %v2547_v12 = vld [vmem:[%s4102_s28 + $0x60] sm:$0xff] }
 0x524   : > { %v2455_v46 = vsel %vm2453_vm1, %v2452_v20, %v2445_v14  ;;  %v2548_v14 = vld [vmem:[%s4102_s28 + $0x68] sm:$0xff]  ;;  %v2549_v20 = vld [vmem:[%s4102_s28 + $0x70] sm:$0xff]  ;;  %2679 = vmatpush.msrb.mxu1 %v2554_v13  ;;  %2611 = vmatpush.msra.mxu2 %v2547_v12 }
 0x525   : > { %2491 = vmatmul.f32.gmra.mxu1 %v2455_v46  ;;  %v2550_v46 = vld [vmem:[%s4102_s28 + $0x78] sm:$0xff]  ;;  %2634 = vmatpush.msrb.mxu3 %v2548_v14  ;;  %v2783_v14 = vld [vmem:[%s4120_s12 + $0x40] sm:$0xff] }
 0x526   : > { %2657 = vmatpush.msra.mxu0 %v2549_v20  ;;  %2680 = vmatpush.msrb.mxu1 %v2550_v46  ;;  %v2799_v20 = vld [vmem:[%s4120_s12 + $0xc0] sm:$0xff] }
 0x527   : > { %2612 = vmatpush.msra.mxu2 %v2543_v40  ;;  %2635 = vmatpush.msrb.mxu3 %v2544_v22  ;;  %v2782_v40 = vld [vmem:[%s4120_s12 + $0x38] sm:$0xff] }
 0x528   : > { %2658 = vmatpush.msra.mxu0 %v2545_v61  ;;  %2681 = vmatpush.msrb.mxu1 %v2546_v28  ;;  %v2798_v22 = vld [vmem:[%s4120_s12 + $0xb8] sm:$0xff]  ;;  %v2797_v61 = vld [vmem:[%s4120_s12 + $0xb0] sm:$0xff] }
 0x529   : > { %2613 = vmatpush.msra.mxu2 %v2539_v27  ;;  %2636 = vmatpush.msrb.mxu3 %v2540_v7  ;;  %v2780_v7 = vld [vmem:[%s4120_s12 + $0x28] sm:$0xff] }
 0x52a   : > { %2659 = vmatpush.msra.mxu0 %v2541_v34 }
 0x595   : > { %v2489_v36 = vpop.f32.mrf.mxu1 }
 0x596   : > { %v4986_v42 = vadd.f32 %v3435_v38, %v2489_v36  ;;  %v2542_v36 = vld [vmem:[%s4102_s28 + $0x38] sm:$0xff]  ;;  %v2535_v38 = vld [vmem:[%s4102_s28] sm:$0xff] }
 0x597   : > { %2682 = vmatpush.msrb.mxu1 %v2542_v36  ;;  %2614 = vmatpush.msra.mxu2 %v2535_v38  ;;  %v2779_v36 = vld [vmem:[%s4120_s12 + $0x20] sm:$0xff] }
 0x598   : > { %v2498_v44 = vmul.f32 %v4986_v42, %v4986_v42  ;;  %v2795_v38 = vld [vmem:[%s4120_s12 + $0xa0] sm:$0xff] }
 0x599   : > { %2683 = vmatpush.msrb.mxu1 %v2538_v25  ;;  %2807 = vmatpush.msrb.mxu2 %v2790_v59  ;;  %v2776_v59 = vld [vmem:[%s4120_s12 + $0x8] sm:$0xff] }
 0x59a   : > { %2500 = vadd.xlane.f32.xlu2 %v2498_v44  ;;  %v2536_v44 = vld [vmem:[%s4102_s28 + $0x8] sm:$0xff] }
 0x59b   : > { %2637 = vmatpush.msrb.mxu3 %v2536_v44 }
 0x59d   : > { %2830 = vmatpush.msra.mxu3 %v2806_v4  ;;  %v2792_v4 = vld [vmem:[%s4120_s12 + $0x88] sm:$0xff] }
 0x59f   : > { %2831 = vmatpush.msra.mxu3 %v2805_v62 }
 0x5a1   : > { %2832 = vmatpush.msra.mxu3 %v2804_v1  ;;  %v2791_v1 = vld [vmem:[%s4120_s12 + $0x80] sm:$0xff] }
 0x5a2   : > { %v2492_v16 = vpop.f32.mrf.mxu1 }
 0x5a3   : > { %v4991_v48 = vadd.f32 %v3436_v17, %v2492_v16  ;;  %2833 = vmatpush.msra.mxu3 %v2803_v63 }
 0x5a5   : > { %v2499_v26 = vmul.f32 %v4991_v48, %v4991_v48  ;;  %2834 = vmatpush.msra.mxu3 %v2802_v15 }
 0x5a7   : > { %2502 = vadd.xlane.f32.xlu0 %v2499_v26  ;;  %v2537_v26 = vld [vmem:[%s4102_s28 + $0x10] sm:$0xff]  ;;  %2835 = vmatpush.msra.mxu3 %v2801_v56  ;;  %s5297_s28 = sld [smem:[#allocation25_spill]] }
 0x5a8   : > { %2660 = vmatpush.msra.mxu0 %v2537_v26 }
 0x5a9   : > { %2836 = vmatpush.msra.mxu3 %v2800_v11 }
 0x5ab   : > { %2837 = vmatpush.msra.mxu3 %v2799_v20 }
 0x5ad   : > { %2838 = vmatpush.msra.mxu3 %v2798_v22  ;;  %p3186_p6 = scmp.ne.s32.totalorder %s5297_s28, 1 }
 0x5ae   : > { %s5298_s26 = sld [smem:[#allocation42_spill]] (!%p3186_p6) }
 0x5af   : > { %2839 = vmatpush.msra.mxu3 %v2797_v61 }
 0x60d   : > { %v2501_v30 = vpop.xlane.xlu2 %2500 }
 0x60e   : > { %v2504_v37 = vmul.f32 %v2501_v30, %v4191_v3  ;;  %v2789_v30 = vld [vmem:[%s4120_s12 + $0x70] sm:$0xff] }
 0x60f   : > { %2808 = vmatpush.msrb.mxu2 %v2789_v30 }
 0x610   : > { %v5016_v60 = vadd.f32 1e-05, %v2504_v37 }
 0x611   : > { %2809 = vmatpush.msrb.mxu2 %v2788_v0  ;;  %v2775_v0 = vld [vmem:[%s4120_s12] sm:$0xff] }
 0x612   : > { %3415 = vrsqrt.f32 %v5016_v60  ;;  %vm2514_vm2 = vweird.f32 %v5016_v60 }
 0x613   : > { %2810 = vmatpush.msrb.mxu2 %v2787_v31 }
 0x615   : > { %2811 = vmatpush.msrb.mxu2 %v2786_v47 }
 0x617   : > { %2812 = vmatpush.msrb.mxu2 %v2785_v8 }
 0x618   : > { %v3416_v9 = vpop.eup %3415 }
 0x619   : > { %v2509_v23 = vmul.f32 %v3416_v9, %v5016_v60  ;;  %vm2515_vm12 = vweird.f32 %v3416_v9  ;;  %2813 = vmatpush.msrb.mxu2 %v2784_v10 }
 0x61a   : > { %v2503_v32 = vpop.xlane.xlu0 %2502  ;;  %vm2516_vm3 = vmor %vm2514_vm2, %vm2515_vm12 }
 0x61b   : > { %v2510_v21 = vmul.f32 %v3416_v9, %v2509_v23  ;;  %v2505_v29 = vmul.f32 %v2503_v32, %v4191_v3  ;;  %2814 = vmatpush.msrb.mxu2 %v2783_v14  ;;  %v2781_v23 = vld [vmem:[%s4120_s12 + $0x30] sm:$0xff] }
 0x61d   : > { %v2511_v16 = vmul.f32 0.5, %v2510_v21  ;;  %v2507_v17 = vadd.f32 1e-05, %v2505_v29  ;;  %2815 = vmatpush.msrb.mxu2 %v2782_v40  ;;  %v2796_v21 = vld [vmem:[%s4120_s12 + $0xa8] sm:$0xff] }
 0x61e   : > { %2840 = vmatpush.msra.mxu3 %v2796_v21 }
 0x61f   : > { %v2512_v33 = vsub.f32 1.5, %v2511_v16  ;;  %3417 = vrsqrt.f32 %v2507_v17  ;;  %vm2524_vm5 = vweird.f32 %v2507_v17  ;;  %2816 = vmatpush.msrb.mxu2 %v2781_v23 }
 0x620   : > { %2841 = vmatpush.msra.mxu3 %v2795_v38 }
 0x621   : > { %v2513_v49 = vmul.f32 %v3416_v9, %v2512_v33  ;;  %2817 = vmatpush.msrb.mxu2 %v2780_v7 }
 0x623   : > { %v2517_v45 = vsel %vm2516_vm3, %v3416_v9, %v2513_v49  ;;  %2818 = vmatpush.msrb.mxu2 %v2779_v36 }
 0x624   : > { %v2528_v41 = vmul.f32 %v2517_v45, %v4986_v42  ;;  %v2778_v45 = vld [vmem:[%s4120_s12 + $0x18] sm:$0xff] }
 0x625   : > { %v3418_v52 = vpop.eup %3417  ;;  %2819 = vmatpush.msrb.mxu2 %v2778_v45 }
 0x626   : > { %v2519_v43 = vmul.f32 %v3418_v52, %v2507_v17  ;;  %v2533_v39 = vmul.f32 %v3376_v19, %v2528_v41  ;;  %vm2525_vm4 = vweird.f32 %v3418_v52  ;;  %v2794_v41 = vld [vmem:[%s4120_s12 + $0x98] sm:$0xff] }
 0x627   : > { %vm2526_vm6 = vmor %vm2524_vm5, %vm2525_vm4  ;;  %2842 = vmatpush.msra.mxu3 %v2794_v41 }
 0x628   : > { %v2520_v51 = vmul.f32 %v3418_v52, %v2519_v43  ;;  %2615 = vmatmul.f32.vlgmr.msra.gmra.mxu2 %v2533_v39  ;;  %2638 = vmatmul.f32.vlgmr.msrb.gmra.mxu3 %v2533_v39 }
 0x629   : > { %2661 = vmatmul.f32.vlgmr.msra.gmra.mxu0 %v2533_v39  ;;  %2684 = vmatmul.f32.vlgmr.msrb.gmra.mxu1 %v2533_v39 }
 0x62a   : > { %v2521_v35 = vmul.f32 0.5, %v2520_v51 }
 0x62c   : > { %v2522_v54 = vsub.f32 1.5, %v2521_v35  ;;  %v2777_v35 = vld [vmem:[%s4120_s12 + $0x10] sm:$0xff] }
 0x62d   : > { %2820 = vmatpush.msrb.mxu2 %v2777_v35 }
 0x62e   : > { %v2523_v24 = vmul.f32 %v3418_v52, %v2522_v54  ;;  %v2793_v54 = vld [vmem:[%s4120_s12 + $0x90] sm:$0xff] }
 0x62f   : > { %2843 = vmatpush.msra.mxu3 %v2793_v54  ;;  %2821 = vmatpush.msrb.mxu2 %v2776_v59 }
 0x630   : > { %v2527_v2 = vsel %vm2526_vm6, %v3418_v52, %v2523_v24 }
 0x631   : > { %v2529_v6 = vmul.f32 %v2527_v2, %v4991_v48  ;;  %2844 = vmatpush.msra.mxu3 %v2792_v4  ;;  %2822 = vmatpush.msrb.mxu2 %v2775_v0 }
 0x633   : > { %v2534_v57 = vmul.f32 %v3376_v19, %v2529_v6  ;;  %2845 = vmatpush.msra.mxu3 %v2791_v1 }
 0x635   : > { %2618 = vmatmul.f32.gmra.mxu2 %v2534_v57  ;;  %2641 = vmatmul.f32.gmra.mxu3 %v2534_v57 }
 0x636   : > { %2664 = vmatmul.f32.gmra.mxu0 %v2534_v57  ;;  %2687 = vmatmul.f32.gmra.mxu1 %v2534_v57 }
 0x6a6   : > { %v2662_v31 = vpop.f32.mrf.mxu0  ;;  %v2685_v15 = vpop.f32.mrf.mxu1 }
 0x6ab   : > { %v5061_v58 = vpop.f32.mrf.mxu2  ;;  %v5063_v55 = vpop.f32.mrf.mxu3 }
 0x6ac   : > { %v3182_v37 = vmul.f32 -1.442695, %v5061_v58  ;;  %v3183_v60 = vmul.f32 -1.442695, %v5063_v55 }
 0x6ae   : > { %3419 = vpow2.f32 %v3182_v37 }
 0x6af   : > { %3421 = vpow2.f32 %v3183_v60 }
 0x6b3   : > { %v2665_v21 = vpop.f32.mrf.mxu0 }
 0x6b4   : > { %v3420_v18 = vpop.eup %3419 }
 0x6b5   : > { %v3422_v50 = vpop.eup %3421  ;;  %v5077_v5 = vadd.f32 1.0, %v3420_v18 }
 0x6b6   : > { %v5079_v53 = vadd.f32 1.0, %v3422_v50 }
 0x6b7   : > { %3423 = vrcp.f32 %v5077_v5  ;;  %v2716_v16 = vand.u32 2147483647, %v5077_v5  ;;  %v2718_v17 = vand.u32 2147483648, %v5077_v5  ;;  %vm2712_vm9 = vweird.f32 %v5077_v5 }
 0x6b8   : > { %3425 = vrcp.f32 %v5079_v53  ;;  %v5087_v13 = vpop.f32.mrf.mxu2  ;;  %v5089_v12 = vpop.f32.mrf.mxu3  ;;  %v2733_v49 = vand.u32 2147483648, %v5079_v53  ;;  %v2731_v43 = vand.u32 2147483647, %v5079_v53  ;;  %vm2727_vm13 = vweird.f32 %v5079_v53 }
 0x6b9   : > { %v3184_v46 = vmul.f32 -1.442695, %v5087_v13  ;;  %v3185_v9 = vmul.f32 -1.442695, %v5089_v12  ;;  %v2719_v24 = vor.u32 1.1754944e-38, %v2718_v17  ;;  %vm2717_vm14 = vcmp.eq.f32.partialorder %v2716_v16, 8.507059e+37 }
 0x6ba   : > { %v2734_v57 = vor.u32 1.1754944e-38, %v2733_v49  ;;  %vm2732_vm0 = vcmp.eq.f32.partialorder %v2731_v43, 8.507059e+37 }
 0x6bb   : > { %3427 = vpow2.f32 %v3184_v46 }
 0x6bc   : > { %3429 = vpow2.f32 %v3185_v9 }
 0x6bd   : > { %v3424_v28 = vpop.eup %3423 }
 0x6be   : > { %v3426_v32 = vpop.eup %3425  ;;  %v2708_v27 = vmul.f32 %v3424_v28, %v5077_v5  ;;  %vm2713_vm7 = vweird.f32 %v3424_v28 }
 0x6bf   : > { %v2723_v29 = vmul.f32 %v3426_v32, %v5079_v53  ;;  %vm2728_vm8 = vweird.f32 %v3426_v32  ;;  %vm2714_vm11 = vmor %vm2712_vm9, %vm2713_vm7 }
 0x6c0   : > { %v2709_v34 = vsub.f32 1.0, %v2708_v27  ;;  %vm2729_vm15 = vmor %vm2727_vm13, %vm2728_vm8 }
 0x6c1   : > { %v3428_v44 = vpop.eup %3427  ;;  %v2724_v26 = vsub.f32 1.0, %v2723_v29 }
 0x6c2   : > { %v3430_v25 = vpop.eup %3429  ;;  %v2710_v33 = vmul.f32 %v3424_v28, %v2709_v34  ;;  %v5108_v19 = vadd.f32 1.0, %v3428_v44  ;;  %v2688_v34 = vpop.f32.mrf.mxu1 }
 0x6c3   : > { %v2725_v52 = vmul.f32 %v3426_v32, %v2724_v26  ;;  %v5113_v39 = vadd.f32 1.0, %v3430_v25 }
 0x6c4   : > { %v2711_v51 = vadd.f32 %v3424_v28, %v2710_v33  ;;  %3431 = vrcp.f32 %v5108_v19  ;;  %v2748_v56 = vand.u32 2147483648, %v5108_v19  ;;  %v2746_v11 = vand.u32 2147483647, %v5108_v19 }
 0x6c5   : > { %v2726_v2 = vadd.f32 %v3426_v32, %v2725_v52  ;;  %3433 = vrcp.f32 %v5113_v39  ;;  %v2763_v14 = vand.u32 2147483648, %v5113_v39  ;;  %v2761_v46 = vand.u32 2147483647, %v5113_v39 }
 0x6c6   : > { %v2715_v6 = vsel %vm2714_vm11, %v3424_v28, %v2711_v51  ;;  %vm2742_vm12 = vweird.f32 %v5108_v19  ;;  %v2749_v40 = vor.u32 1.1754944e-38, %v2748_v56  ;;  %vm2757_vm3 = vweird.f32 %v5113_v39 }
 0x6c7   : > { %v2720_v30 = vsel %vm2717_vm14, %v2719_v24, %v2715_v6  ;;  %v2730_v37 = vsel %vm2729_vm15, %v3426_v32, %v2726_v2  ;;  %vm2747_vm4 = vcmp.eq.f32.partialorder %v2746_v11, 8.507059e+37  ;;  %v2764_v61 = vor.u32 1.1754944e-38, %v2763_v14 }
 0x6c8   : > { %v2767_v60 = vmul.f32 %v2720_v30, %v5061_v58  ;;  %v2735_v62 = vsel %vm2732_vm0, %v2734_v57, %v2730_v37  ;;  %vm2762_vm6 = vcmp.eq.f32.partialorder %v2761_v46, 8.507059e+37 }
 0x6c9   : > { %v2768_v63 = vmul.f32 %v2735_v62, %v5063_v55 }
 0x6ca   : > { %v3432_v47 = vpop.eup %3431  ;;  %v2771_v18 = vmul.f32 %v2767_v60, %v2662_v31 }
 0x6cb   : > { %v3434_v50 = vpop.eup %3433  ;;  %v2772_v5 = vmul.f32 %v2768_v63, %v2685_v15  ;;  %v2738_v53 = vmul.f32 %v3432_v47, %v5108_v19  ;;  %vm2743_vm10 = vweird.f32 %v3432_v47 }
 0x6cc   : > { %v2753_v8 = vmul.f32 %v3434_v50, %v5113_v39  ;;  %2823 = vmatmul.f32.vlgmr.msrb.gmra.mxu2 %v2771_v18  ;;  %vm2758_vm1 = vweird.f32 %v3434_v50  ;;  %vm2744_vm2 = vmor %vm2742_vm12, %vm2743_vm10 }
 0x6cd   : > { %v2739_v58 = vsub.f32 1.0, %v2738_v53  ;;  %2846 = vmatmul.f32.vlgmr.msra.gmra.mxu3 %v2772_v5  ;;  %vm2759_vm5 = vmor %vm2757_vm3, %vm2758_vm1 }
 0x6ce   : > { %v2754_v10 = vsub.f32 1.0, %v2753_v8 }
 0x6cf   : > { %v2740_v55 = vmul.f32 %v3432_v47, %v2739_v58 }
 0x6d0   : > { %v2755_v20 = vmul.f32 %v3434_v50, %v2754_v10 }
 0x6d1   : > { %v2741_v9 = vadd.f32 %v3432_v47, %v2740_v55 }
 0x6d2   : > { %v2756_v22 = vadd.f32 %v3434_v50, %v2755_v20 }
 0x6d3   : > { %v2745_v23 = vsel %vm2744_vm2, %v3432_v47, %v2741_v9 }
 0x6d4   : > { %v2750_v28 = vsel %vm2747_vm4, %v2749_v40, %v2745_v23  ;;  %v2760_v32 = vsel %vm2759_vm5, %v3434_v50, %v2756_v22 }
 0x6d5   : > { %v2769_v27 = vmul.f32 %v2750_v28, %v5087_v13  ;;  %v2765_v7 = vsel %vm2762_vm6, %v2764_v61, %v2760_v32 }
 0x6d6   : > { %v2770_v29 = vmul.f32 %v2765_v7, %v5089_v12 }
 0x6d7   : > { %v2773_v36 = vmul.f32 %v2769_v27, %v2665_v21 }
 0x6d8   : > { %v2774_v38 = vmul.f32 %v2770_v29, %v2688_v34 }
 0x6d9   : > { %2826 = vmatmul.f32.gmra.mxu2 %v2773_v36 }
 0x6da   : > { %2849 = vmatmul.f32.gmra.mxu3 %v2774_v38 }
 0x74f   : > { %v2824_v44 = vpop.f32.mrf.mxu2 }
 0x750   : > { %v2847_v16 = vpop.f32.mrf.mxu3 }
 0x751   : > { %v2848_v17 = vadd.f32 %v2847_v16, %v2824_v44 }
 0x753   : > { %v2853_v26 = vadd.f32 %v2848_v17, %v4986_v42 }
 0x755   : > { %2855 = vst [vmem:[%s4137_s14] sm:$0xff] %v2853_v26 }
 0x75c   : > { %v2827_v25 = vpop.f32.mrf.mxu2 }
 0x75d   : > { %v2850_v33 = vpop.f32.mrf.mxu3 }
 0x75e   : > { %v2851_v49 = vadd.f32 %v2850_v33, %v2827_v25  ;;  %2860 = sbr.rel (%p3186_p6) target bundleno = 2044 (0x7fc), region = 96 }
 0x760   : > { %v2854_v13 = vadd.f32 %v2851_v49, %v4991_v48 }
 0x762   : > { %2856 = vst [vmem:[%s4137_s14 + $0x8] sm:$0xff] %v2854_v13 }
 0x763   : > { %v2862_v12 = vmul.f32 %v2853_v26, %v2853_v26  ;;  %v2863_v19 = vmul.f32 %v2854_v13, %v2854_v13  ;;  %v3437_v59 = vld [vmem:[%s5298_s26] ss:$0 sm:$0xff] }
 0x765   : > { %2864 = vadd.xlane.f32.xlu0 %v2862_v12 }
 0x76d   : > { %2866 = vadd.xlane.f32.xlu0 %v2863_v19 }
 0x7d8   : > { %v2865_v45 = vpop.xlane.xlu0 %2864 }
 0x7d9   : > { %v2868_v41 = vmul.f32 %v2865_v45, %v4191_v3 }
 0x7db   : > { %v2870_v52 = vadd.f32 1e-05, %v2868_v41 }
 0x7dd   : > { %3438 = vrsqrt.f32 %v2870_v52  ;;  %vm2878_vm8 = vweird.f32 %v2870_v52 }
 0x7e0   : > { %v2867_v42 = vpop.xlane.xlu0 %2866 }
 0x7e1   : > { %v2869_v43 = vmul.f32 %v2867_v42, %v4191_v3 }
 0x7e3   : > { %v3439_v39 = vpop.eup %3438  ;;  %v2871_v51 = vadd.f32 1e-05, %v2869_v43 }
 0x7e4   : > { %v2873_v35 = vmul.f32 %v3439_v39, %v2870_v52  ;;  %vm2879_vm7 = vweird.f32 %v3439_v39 }
 0x7e5   : > { %3440 = vrsqrt.f32 %v2871_v51  ;;  %vm2880_vm9 = vmor %vm2878_vm8, %vm2879_vm7  ;;  %vm2888_vm13 = vweird.f32 %v2871_v51 }
 0x7e6   : > { %v2874_v48 = vmul.f32 %v3439_v39, %v2873_v35 }
 0x7e8   : > { %v2875_v54 = vmul.f32 0.5, %v2874_v48 }
 0x7ea   : > { %v2876_v24 = vsub.f32 1.5, %v2875_v54 }
 0x7eb   : > { %v3441_v2 = vpop.eup %3440 }
 0x7ec   : > { %v2877_v6 = vmul.f32 %v3439_v39, %v2876_v24  ;;  %v2883_v57 = vmul.f32 %v3441_v2, %v2871_v51  ;;  %vm2889_vm11 = vweird.f32 %v3441_v2 }
 0x7ed   : > { %vm2890_vm14 = vmor %vm2888_vm13, %vm2889_vm11 }
 0x7ee   : > { %v2881_v3 = vsel %vm2880_vm9, %v3439_v39, %v2877_v6  ;;  %v2884_v4 = vmul.f32 %v3441_v2, %v2883_v57 }
 0x7ef   : > { %v2892_v30 = vmul.f32 %v2881_v3, %v2853_v26 }
 0x7f0   : > { %v2885_v37 = vmul.f32 0.5, %v2884_v4 }
 0x7f1   : > { %v2897_v60 = vmul.f32 %v3437_v59, %v2892_v30 }
 0x7f2   : > { %v2886_v62 = vsub.f32 1.5, %v2885_v37 }
 0x7f3   : > { %2899 = vst [vmem:[%s4122_s20] sm:$0xff] %v2897_v60 }
 0x7f4   : > { %v2887_v0 = vmul.f32 %v3441_v2, %v2886_v62 }
 0x7f6   : > { %v2891_v1 = vsel %vm2890_vm14, %v3441_v2, %v2887_v0 }
 0x7f7   : > { %v2893_v31 = vmul.f32 %v2891_v1, %v2854_v13 }
 0x7f9   : > { %v2898_v63 = vmul.f32 %v3437_v59, %v2893_v31 }
 0x7fb   : > { %2900 = vst [vmem:[%s4122_s20 + $0x8] sm:$0xff] %v2898_v63 }
 0x7fc PF: > { %s5300_s6 = sld [smem:[#allocation43_spill]]  ;;  %s2914_s14 = sshll.u32 %s4122_s20, 4  ;;  %s2915_s14 = int_to_ptr.vmem [resolvable:$true] %s2914_s14 }
 0x7fd   : > { %s2902_s1 = scalar_lea.sflag [#allocation6], %s4078_s0 }
 0x802   : > { %s2913_s3 = scalar_lea.hbm %s5300_s6, %s3157_s10  ;;  %s3672_s4 = scalar_lea.hbm %s5300_s6, 32 }
 0x803   : > { %s2916_s9 = sshll.u32 %s2913_s3, 4  ;;  %s2917_s9 = int_to_ptr.hbm [resolvable:$true] %s2916_s9 }
 0x804   : > { %s3666_s24 = sshra.s32 %s2917_s9, 4  ;;  %s3667_s24 = int_to_ptr.hbm [resolvable:$true] %s3666_s24 }
 0x805   : > { %s3668_s8 = scalar_lea.hbm %s3667_s24, 16  ;;  %p3673_p8 = scmp.lt.s32.totalorder %s3667_s24, %s5300_s6 }
 0x806   : > { %p3669_p11 = scmp.ne.s32.totalorder %s3667_s24, %s3668_s8  ;;  %p3674_p10 = scmp.lt.s32.totalorder %s3672_s4, %s3668_s8 }
 0x808   : > { %p3670_p13 = pnand %p3669_p11, %p4015_p12  ;;  %p3675_p9 = por %p3674_p10, %p3673_p8 }
 0x80a   : > { %p3671_p4 = pneg %p3670_p13 }
 0x80c   : > { %p3676_p0 = pnand %p3675_p9, %p3671_p4 }
 0x80e   : > { %3679 = shalt.err (!%p3676_p0)
}
 0x80f   : > { %s3805_s0 = smov 128   ;;  %s3806_s20 = smov 8  }
 0x810   : > { %3218 = dma.vmem_to_hbm [thread:$0]  (%p4015_p12), %s2915_s14, 256, %s2917_s9, %s2902_s1, %s3805_s0, %s3805_s0, %s3806_s20  }
 0x811 PF: > { %p3252_p2 = scmp.ge.s32.totalorder %s3786_s23, 2  ;;  %s2931_s10 = sand.u32 1, %s3758_s16  }
 0x812   : > { %s2932_s30 = scalar_lea.sflag [#allocation6], %s2931_s10 }
 0x813   : > { %p3244_p7 = pnand %p3252_p2, %p4039_p3 }
 0x815   : > { %p3245_p1 = pneg %p3244_p7 }
 0x817   : > { %3741 = dma.done.wait (%p3245_p1), %s2932_s30, 256  }
 0x818   : > { %3743 = vsyncadd (%p3245_p1), %s2932_s30, 4294967040  ;;  %s33_s23 = sadd.s32 1, %s3786_s23   ;;  %s5301_s13 = sld [smem:[#allocation22_spill]] }
 0x819   : > { %p30_p5 = scmp.ge.s32.totalorder %s33_s23, 6   ;;  %s5302_s18 = sld [smem:[#allocation32_spill]] }
 0x81a   : > { %s5303_s29 = sld [smem:[#allocation23_spill]]  ;;  %s5308_s14 = smov %s3754_s15 }
 0x81b   : > { %s5304_s28 = sld [smem:[#allocation31_spill]]  ;;  %s5310_s16 = smov %s3762_s17 }
 0x81c   : > { %s5305_s19 = sld [smem:[#allocation26_spill]]  ;;  %s5313_s20 = smov %s3782_s22 }
 0x81d   : > { %s5306_s21 = sld [smem:[#allocation29_spill]] }
 0x81e   : > { %s5307_s26 = sld [smem:[#allocation30_spill]] }
 0x81f   : > { %s5309_s15 = smov %s5302_s18 }
 0x820   : > { %s5311_s17 = smov %s5303_s29  ;;  %32 = sbr.rel (!%p30_p5) target bundleno = 26 (0x1a), region = 177 }
 0x821   : > { %s5312_s18 = smov %s5304_s28 }
 0x824   : > { %s5314_s22 = smov %s5307_s26 }
 0x825   :  { %2938 = vsyncpa [#allocation5], 1 }
 0x826   :  { %2940 = vsyncpa [#allocation5 + $0x1], 1 }
 0x827   :  { %2941 = vsyncpa [#allocation8], 1 }
 0x828   :  { %2942 = vsyncpa [#allocation11], 1 }
 0x829   :  { %2944 = vsyncpa [#allocation11 + $0x1], 1 }
 0x82a   :  { %2945 = vsyncpa [#allocation14], 1 }
 0x82b   :  { %2947 = vsyncpa [#allocation14 + $0x1], 1 }
 0x82c   :  { %2948 = vsyncpa [#allocation6], 1 }
 0x82d   :  { %2950 = vsyncpa [#allocation6 + $0x1], 1 }

</bundles_post_ra>
